<compile_context>
chip_gen: v5e
topology: v5e:2x2
jax: 0.10.0
libtpu: 0.0.40
codegen_flags: <defaults>
</compile_context>

<pallas_src>
import functools
import math

import jax
import jax.numpy as jnp
import numpy as np
from jax import lax
from jax.experimental import pallas as pl
from jax.experimental.pallas import tpu as pltpu


_LOG_CLIP = math.log(0.005)   # log of the lower clip used by the reference


def _round_up(x, m):
    return (x + m - 1) // m * m


def _kd_kernel(d_te_ref, d_st_ref, packed_ref, out_ref, *, inv_temperature):
    """One (rows, lanes) pixel tile of the KD loss -> per-tile (numer, denom)."""
    # Cast after the DMA so narrow dtypes travel over HBM at native width.
    d_te = d_te_ref[...].astype(jnp.float32)
    d_st = d_st_ref[...].astype(jnp.float32)
    pk = packed_ref[...].astype(jnp.int32)

    count = (pk >> 1).astype(jnp.float32)     # #labels matching teacher argmax (precomputed)
    lab_is1 = (pk & 1) == 1                   # label.long() == 1

    # 2-class CrossEntropyLoss(reduction='none') via a stable softplus:
    #   ce = softplus(z), z = -d if label==1 else +d
    #   softplus(z) = max(z, 0) + log(1 + exp(-|z|))   and |z| == |d|, so exp/log is shared.
    sp_te = jnp.log(1.0 + jnp.exp(-jnp.abs(d_te)))
    sp_st = jnp.log(1.0 + jnp.exp(-jnp.abs(d_st)))
    z_te = jnp.where(lab_is1, -d_te, d_te)
    z_st = jnp.where(lab_is1, -d_st, d_st)
    te_ce = jnp.maximum(z_te, 0.0) + sp_te
    st_ce = jnp.maximum(z_st, 0.0) + sp_st
    kd_mask1 = jnp.maximum(st_ce - te_ce, 0.0)            # ReLU(st_ce - te_ce)

    # teacher temperature softmax over the 2 channels: p1 = sigmoid(d/T)   (1 tanh)
    s_te1 = 0.5 * (jnp.tanh(0.5 * inv_temperature * d_te) + 1.0)
    s_te0 = 1.0 - s_te1

    # student log-probabilities at temperature T, clip applied in log space:
    #   log p1 = -softplus(-u), log p0 = -softplus(u), u = d_st / T
    u = d_st * inv_temperature
    sp_u = jnp.log(1.0 + jnp.exp(-jnp.abs(u)))
    log_p1 = -(jnp.maximum(-u, 0.0) + sp_u)
    log_p0 = -(jnp.maximum(u, 0.0) + sp_u)
    log_clip = jnp.float32(_LOG_CLIP)
    kd_pixel = -(s_te0 * jnp.maximum(log_p0, log_clip)
                 + s_te1 * jnp.maximum(log_p1, log_clip))

    # Padded pixels were written with packed == 0 -> count == 0, so they contribute
    # exactly 0 to both sums; no in-kernel masking is needed.
    w_denom = count * kd_mask1
    w_numer = w_denom * kd_pixel
    numer_t = jnp.sum(w_numer)
    denom_t = jnp.sum(w_denom)

    # Per-tile partials in lanes 0 / 1 of a lane-aligned (1, 1, 128) block.
    lane = lax.broadcasted_iota(jnp.int32, (1, 1, 128), 2)
    out_ref[...] = jnp.where(lane == 0, numer_t,
                             jnp.where(lane == 1, denom_t, 0.0))


def _contrast_kernel(tf_ref, sf_ref, out_ref, *, eps):
    """Pairwise feature-distance contrastive loss (exact diff-based form)."""
    tf = tf_ref[...].astype(jnp.float32)    # (B, F) teacher features
    sf = sf_ref[...].astype(jnp.float32)    # (B, F) student features
    B, F = tf.shape
    # Exact ||s_i - t_j||^2: avoids the catastrophic cancellation of the
    # ||t||^2 + ||s||^2 - 2 t.s expansion when s_i ~= t_j.  (B, B, F) is tiny here;
    # for very large B*F the MXU expansion would be preferable.
    diff = sf[None, :, :] - tf[:, None, :]               # (B, B, F)  [j, i, f]
    d2 = jnp.sum(diff * diff, axis=-1)                   # (B, B)     [j, i]
    inv_n = jnp.float32(1.0 / F)
    m = jnp.sqrt(d2) * inv_n

    row = lax.broadcasted_iota(jnp.int32, (B, B), 0)
    col = lax.broadcasted_iota(jnp.int32, (B, B), 1)
    on_diag = row == col
    diag_term = d2 * (inv_n * inv_n)                      # == m*m without sqrt rounding
    off_term = jnp.square(jnp.maximum(eps - m, 0.0))      # relu(eps - m)^2
    out_ref[0, 0] = jnp.sum(jnp.where(on_diag, diag_term, off_term))


def pmkl_loss_forward(teacher_out, student_out, teacher_feat, student_feat,
                      label, eps=1.0, temperature=5.0, contrast=True, kd=True,
                      block_rows=256, block_lanes=1024, kd_logit_dtype=None):
    """JAX/Pallas equivalent of pmkl_loss.forward. Returns a list of scalar losses.

    In training this function is expected to sit under the caller's jit so the small
    wrapper pre-pass (channel diffs + packed count/label + pad/reshape) stays fused.
    """
    loss = []
    if kd:
        B, C = teacher_out.shape[0], teacher_out.shape[1]
        assert C == 2, "KD path is specialized to num_cls == 2 (as in the module)"
        te = teacher_out.reshape(B, C, -1)
        st = student_out.reshape(B, C, -1)
        lab = label.reshape(B, -1)
        N = te.shape[-1]

        # ---- fused XLA pre-pass: channel differences + packed (count, label) slab ----
        d_te = te[:, 1, :] - te[:, 0, :]                  # (B, N), native dtype
        d_st = st[:, 1, :] - st[:, 0, :]
        te_pred_is1 = d_te > 0                            # argmax; ties -> class 0
        if kd_logit_dtype is not None:                    # e.g. jnp.bfloat16 on v5e
            d_te = d_te.astype(kd_logit_dtype)
            d_st = d_st.astype(kd_logit_dtype)
        lab_is1 = lab >= 1                                # label.long() == 1 for labels in [0, 2)
        # torch broadcasts label (B,1,D,H,W) against the (B,D,H,W) argmax -> (B_a,B_b,...);
        # summing the label-batch axis collapses it to a per-pixel match count.
        cnt1 = jnp.sum((lab == 1).astype(jnp.int32), axis=0, keepdims=True)   # (1, N)
        cnt0 = jnp.sum((lab == 0).astype(jnp.int32), axis=0, keepdims=True)
        count = jnp.where(te_pred_is1, cnt1, cnt0)        # (B, N) int32, in [0, B]
        pk_dtype = jnp.int8 if 2 * B + 1 <= 127 else jnp.int32
        packed = (2 * count + lab_is1.astype(jnp.int32)).astype(pk_dtype)

        # ---- sublane-dense, zero-padded (rows, lanes) layout ----
        M = B * N
        lanes = min(block_lanes, _round_up(M, 128))       # lane width, multiple of 128
        rows_needed = -(-M // lanes)
        row_align = 32 if pk_dtype == jnp.int8 else 8     # int8 sublane tiling is (32, 128)
        t_rows = min(_round_up(block_rows, row_align),
                     _round_up(rows_needed, row_align))
        rows = _round_up(rows_needed, t_rows)
        pad = rows * lanes - M

        def _as_tiles(x):
            x = x.reshape(-1)
            if pad:
                x = jnp.pad(x, (0, pad))                  # pad decodes to count == 0
            return x.reshape(rows, lanes)

        num_tiles = rows // t_rows
        spec = pl.BlockSpec((t_rows, lanes), lambda i: (i, 0))
        parts = pl.pallas_call(
            functools.partial(_kd_kernel,
                              inv_temperature=1.0 / float(temperature)),
            out_shape=jax.ShapeDtypeStruct((num_tiles, 1, 128), jnp.float32),
            grid=(num_tiles,),
            in_specs=[spec, spec, spec],
            out_specs=pl.BlockSpec((1, 1, 128), lambda i: (i, 0, 0)),
            compiler_params=pltpu.CompilerParams(
                dimension_semantics=("parallel",),        # megacore-splittable on v7x
                vmem_limit_bytes=40 * 1024 * 1024),       # fits v7x 64 MiB with headroom
        )(_as_tiles(d_te), _as_tiles(d_st), _as_tiles(packed))
        numer = jnp.sum(parts[:, 0, 0])
        denom = jnp.sum(parts[:, 0, 1])
        # NOTE: 0/0 -> NaN exactly like the torch reference when the mask is empty.
        loss.append(numer / denom)
    if contrast:
        c = pl.pallas_call(
            functools.partial(_contrast_kernel, eps=float(eps)),
            out_shape=jax.ShapeDtypeStruct((1, 1), jnp.float32),
            in_specs=[pl.BlockSpec(memory_space=pltpu.MemorySpace.VMEM)] * 2,
            out_specs=pl.BlockSpec(memory_space=pltpu.MemorySpace.SMEM),
        )(teacher_feat, student_feat)[0, 0]
        loss.append(c)
    return loss


def _reference(teacher_out, student_out, teacher_feat, student_feat, label,
               eps=1.0, temperature=5.0):
    """Pure-JAX transcription of the torch module (for a correctness check)."""
    B = teacher_out.shape[0]
    logp_te = jax.nn.log_softmax(teacher_out, axis=1)
    logp_st = jax.nn.log_softmax(student_out, axis=1)
    lab_idx = label[:, 0].astype(jnp.int32)                          # (B,D,H,W)
    te_ce = -jnp.take_along_axis(logp_te, lab_idx[:, None], axis=1)[:, 0]
    st_ce = -jnp.take_along_axis(logp_st, lab_idx[:, None], axis=1)[:, 0]
    kd_mask1 = jnp.maximum(st_ce - te_ce, 0.0)                       # (B,D,H,W)
    te_pred = jnp.argmax(teacher_out, axis=1).astype(label.dtype)    # (B,D,H,W)
    kd_mask2 = (te_pred[None] == label).astype(jnp.float32)          # (B,B,D,H,W)
    kd_mask = kd_mask2 * kd_mask1[None]
    s_te = jax.nn.softmax(teacher_out / temperature, axis=1)
    s_st = jax.nn.softmax(student_out / temperature, axis=1)
    kd_pixel = jnp.sum(-s_te * jnp.log(jnp.clip(s_st, 0.005, 1.0)), axis=1)
    kd_ce = jnp.sum(kd_pixel[None] * kd_mask) / jnp.sum(kd_mask)

    F = teacher_feat.shape[1]
    diff = student_feat[None, :, :] - teacher_feat[:, None, :]
    m = jnp.sqrt(jnp.sum(diff * diff, axis=-1)) / F
    diag = jnp.eye(B, dtype=bool)
    closs = jnp.sum(jnp.where(diag, m * m, jnp.square(jnp.maximum(eps - m, 0.0))))
    return kd_ce, closs


if __name__ == "__main__":
    key = jax.random.PRNGKey(0)
    k1, k2, k3, k4, k5 = jax.random.split(key, 5)

    # Small shapes consistent with 5-D (B, C, D, H, W) segmentation inputs.
    B, C, D, H, W, F = 2, 2, 4, 10, 16, 32
    teacher_out = jax.random.normal(k1, (B, C, D, H, W), jnp.float32)
    student_out = jax.random.normal(k2, (B, C, D, H, W), jnp.float32)
    teacher_feat = jax.random.normal(k3, (B, F), jnp.float32)
    student_feat = jax.random.normal(k4, (B, F), jnp.float32)
    label = jax.random.randint(k5, (B, 1, D, H, W), 0, C).astype(jnp.float32)

    fwd = jax.jit(pmkl_loss_forward,
                  static_argnames=("eps", "temperature", "contrast", "kd",
                                   "block_rows", "block_lanes", "kd_logit_dtype"))
    losses = fwd(teacher_out, student_out, teacher_feat, student_feat, label,
                 eps=1.0, temperature=5.0, contrast=True, kd=True)
    losses = [jax.block_until_ready(l) for l in losses]

    ref_kd, ref_contrast = _reference(teacher_out, student_out, teacher_feat,
                                      student_feat, label, eps=1.0, temperature=5.0)
    np.testing.assert_allclose(np.asarray(losses[0]), np.asarray(ref_kd),
                               rtol=1e-3, atol=1e-5)
    np.testing.assert_allclose(np.asarray(losses[1]), np.asarray(ref_contrast),
                               rtol=1e-3, atol=1e-5)
    print("KERNEL_OK")
</pallas_src>

<mosaic_0001>
module attributes {stable_mosaic.version = 11 : i64} {
  func.func @_contrast_kernel(%arg0: memref<2x32xf32, #tpu.memory_space<vmem>>, %arg1: memref<2x32xf32, #tpu.memory_space<vmem>>, %arg2: memref<1x1xf32, #tpu.memory_space<smem>>) attributes {dimension_semantics = [], scalar_prefetch = 0 : i64, scratch_operands = 0 : i64, tpu.core_type = #tpu.core_type<tc>} {
    %c0 = arith.constant 0 : index
    %c0_0 = arith.constant 0 : index
    %0 = vector.load %arg0[%c0, %c0_0] : memref<2x32xf32, #tpu.memory_space<vmem>>, vector<2x32xf32>
    %c0_1 = arith.constant 0 : index
    %c0_2 = arith.constant 0 : index
    %1 = vector.load %arg1[%c0_1, %c0_2] : memref<2x32xf32, #tpu.memory_space<vmem>>, vector<2x32xf32>
    %2 = vector.shape_cast %1 : vector<2x32xf32> to vector<1x2x32xf32>
    %3 = vector.shape_cast %0 : vector<2x32xf32> to vector<2x1x32xf32>
    %4 = vector.broadcast %2 : vector<1x2x32xf32> to vector<2x2x32xf32>
    %5 = vector.broadcast %3 : vector<2x1x32xf32> to vector<2x2x32xf32>
    %6 = arith.subf %4, %5 : vector<2x2x32xf32>
    %7 = arith.mulf %6, %6 : vector<2x2x32xf32>
    %cst = arith.constant dense<0.000000e+00> : vector<2x2xf32>
    %8 = vector.multi_reduction <add>, %7, %cst [2] : vector<2x2x32xf32> to vector<2x2xf32>
    %9 = math.sqrt %8 : vector<2x2xf32>
    %cst_3 = arith.constant 3.125000e-02 : f32
    %10 = vector.broadcast %cst_3 : f32 to vector<2x2xf32>
    %11 = arith.mulf %9, %10 : vector<2x2xf32>
    %12 = tpu.iota {dimensions = array<i32: 0>} : vector<2x2xi32>
    %13 = tpu.iota {dimensions = array<i32: 1>} : vector<2x2xi32>
    %14 = arith.cmpi eq, %12, %13 : vector<2x2xi32>
    %cst_4 = arith.constant 3.125000e-02 : f32
    %cst_5 = arith.constant 3.125000e-02 : f32
    %15 = arith.mulf %cst_4, %cst_5 : f32
    %16 = vector.broadcast %15 : f32 to vector<2x2xf32>
    %17 = arith.mulf %8, %16 : vector<2x2xf32>
    %cst_6 = arith.constant 1.000000e+00 : f32
    %18 = vector.broadcast %cst_6 : f32 to vector<2x2xf32>
    %19 = arith.subf %18, %11 : vector<2x2xf32>
    %cst_7 = arith.constant 0.000000e+00 : f32
    %20 = vector.broadcast %cst_7 : f32 to vector<2x2xf32>
    %21 = arith.maximumf %19, %20 : vector<2x2xf32>
    %22 = arith.mulf %21, %21 : vector<2x2xf32>
    %23 = arith.select %14, %17, %22 : vector<2x2xi1>, vector<2x2xf32>
    %24 = vector.shape_cast %23 : vector<2x2xf32> to vector<1x2x2xf32>
    %cst_8 = arith.constant dense<0.000000e+00> : vector<1xf32>
    %25 = vector.multi_reduction <add>, %24, %cst_8 [1, 2] : vector<1x2x2xf32> to vector<1xf32>
    %26 = vector.shape_cast %25 : vector<1xf32> to vector<1x1x1xf32>
    %27 = vector.extract %26[0, 0, 0] : f32 from vector<1x1x1xf32>
    %c0_9 = arith.constant 0 : index
    %c0_10 = arith.constant 0 : index
    %28 = memref.load %arg2[%c0_9, %c0_10] : memref<1x1xf32, #tpu.memory_space<smem>>
    memref.store %27, %arg2[%c0_9, %c0_10] : memref<1x1xf32, #tpu.memory_space<smem>>
    return
  }
}

module attributes {stable_mosaic.version = 11 : i64} {
  func.func @_kd_kernel(%arg0: i32, %arg1: memref<32x1024xf32, #tpu.memory_space<vmem>>, %arg2: memref<32x1024xf32, #tpu.memory_space<vmem>>, %arg3: memref<32x1024xi8, #tpu.memory_space<vmem>>, %arg4: memref<1x1x128xf32, #tpu.memory_space<vmem>>) attributes {dimension_semantics = [#tpu.dimension_semantics<parallel>], iteration_bounds = array<i64: 1>, scalar_prefetch = 0 : i64, scratch_operands = 0 : i64, tpu.core_type = #tpu.core_type<tc>, window_params = [{transform_indices = @transform_0, window_bounds = array<i64: 32, 1024>}, {transform_indices = @transform_1, window_bounds = array<i64: 32, 1024>}, {transform_indices = @transform_2, window_bounds = array<i64: 32, 1024>}, {transform_indices = @transform_3, window_bounds = array<i64: 1, 1, 128>}]} {
    %c0 = arith.constant 0 : index
    %c0_0 = arith.constant 0 : index
    %0 = vector.load %arg1[%c0, %c0_0] : memref<32x1024xf32, #tpu.memory_space<vmem>>, vector<32x1024xf32>
    %c0_1 = arith.constant 0 : index
    %c0_2 = arith.constant 0 : index
    %1 = vector.load %arg2[%c0_1, %c0_2] : memref<32x1024xf32, #tpu.memory_space<vmem>>, vector<32x1024xf32>
    %c0_3 = arith.constant 0 : index
    %c0_4 = arith.constant 0 : index
    %2 = vector.load %arg3[%c0_3, %c0_4] : memref<32x1024xi8, #tpu.memory_space<vmem>>, vector<32x1024xi8>
    %3 = arith.extsi %2 : vector<32x1024xi8> to vector<32x1024xi32>
    %c1_i32 = arith.constant 1 : i32
    %4 = vector.broadcast %c1_i32 : i32 to vector<32x1024xi32>
    %5 = arith.shrsi %3, %4 : vector<32x1024xi32>
    %6 = arith.sitofp %5 : vector<32x1024xi32> to vector<32x1024xf32>
    %c1_i32_5 = arith.constant 1 : i32
    %7 = vector.broadcast %c1_i32_5 : i32 to vector<32x1024xi32>
    %8 = arith.andi %3, %7 : vector<32x1024xi32>
    %c1_i32_6 = arith.constant 1 : i32
    %9 = vector.broadcast %c1_i32_6 : i32 to vector<32x1024xi32>
    %10 = arith.cmpi eq, %8, %9 : vector<32x1024xi32>
    %11 = math.absf %0 : vector<32x1024xf32>
    %cst = arith.constant 0.000000e+00 : f32
    %12 = vector.broadcast %cst : f32 to vector<32x1024xf32>
    %13 = arith.subf %12, %11 : vector<32x1024xf32>
    %14 = math.exp %13 : vector<32x1024xf32>
    %cst_7 = arith.constant 1.000000e+00 : f32
    %15 = vector.broadcast %cst_7 : f32 to vector<32x1024xf32>
    %16 = arith.addf %15, %14 : vector<32x1024xf32>
    %17 = math.log %16 : vector<32x1024xf32>
    %18 = math.absf %1 : vector<32x1024xf32>
    %cst_8 = arith.constant 0.000000e+00 : f32
    %19 = vector.broadcast %cst_8 : f32 to vector<32x1024xf32>
    %20 = arith.subf %19, %18 : vector<32x1024xf32>
    %21 = math.exp %20 : vector<32x1024xf32>
    %cst_9 = arith.constant 1.000000e+00 : f32
    %22 = vector.broadcast %cst_9 : f32 to vector<32x1024xf32>
    %23 = arith.addf %22, %21 : vector<32x1024xf32>
    %24 = math.log %23 : vector<32x1024xf32>
    %cst_10 = arith.constant 0.000000e+00 : f32
    %25 = vector.broadcast %cst_10 : f32 to vector<32x1024xf32>
    %26 = arith.subf %25, %0 : vector<32x1024xf32>
    %27 = arith.select %10, %26, %0 : vector<32x1024xi1>, vector<32x1024xf32>
    %cst_11 = arith.constant 0.000000e+00 : f32
    %28 = vector.broadcast %cst_11 : f32 to vector<32x1024xf32>
    %29 = arith.subf %28, %1 : vector<32x1024xf32>
    %30 = arith.select %10, %29, %1 : vector<32x1024xi1>, vector<32x1024xf32>
    %cst_12 = arith.constant 0.000000e+00 : f32
    %31 = vector.broadcast %cst_12 : f32 to vector<32x1024xf32>
    %32 = arith.maximumf %27, %31 : vector<32x1024xf32>
    %33 = arith.addf %32, %17 : vector<32x1024xf32>
    %cst_13 = arith.constant 0.000000e+00 : f32
    %34 = vector.broadcast %cst_13 : f32 to vector<32x1024xf32>
    %35 = arith.maximumf %30, %34 : vector<32x1024xf32>
    %36 = arith.addf %35, %24 : vector<32x1024xf32>
    %37 = arith.subf %36, %33 : vector<32x1024xf32>
    %cst_14 = arith.constant 0.000000e+00 : f32
    %38 = vector.broadcast %cst_14 : f32 to vector<32x1024xf32>
    %39 = arith.maximumf %37, %38 : vector<32x1024xf32>
    %cst_15 = arith.constant 1.000000e-01 : f32
    %40 = vector.broadcast %cst_15 : f32 to vector<32x1024xf32>
    %41 = arith.mulf %40, %0 : vector<32x1024xf32>
    %42 = math.tanh %41 : vector<32x1024xf32>
    %cst_16 = arith.constant 1.000000e+00 : f32
    %43 = vector.broadcast %cst_16 : f32 to vector<32x1024xf32>
    %44 = arith.addf %42, %43 : vector<32x1024xf32>
    %cst_17 = arith.constant 5.000000e-01 : f32
    %45 = vector.broadcast %cst_17 : f32 to vector<32x1024xf32>
    %46 = arith.mulf %45, %44 : vector<32x1024xf32>
    %cst_18 = arith.constant 1.000000e+00 : f32
    %47 = vector.broadcast %cst_18 : f32 to vector<32x1024xf32>
    %48 = arith.subf %47, %46 : vector<32x1024xf32>
    %cst_19 = arith.constant 2.000000e-01 : f32
    %49 = vector.broadcast %cst_19 : f32 to vector<32x1024xf32>
    %50 = arith.mulf %1, %49 : vector<32x1024xf32>
    %51 = math.absf %50 : vector<32x1024xf32>
    %cst_20 = arith.constant 0.000000e+00 : f32
    %52 = vector.broadcast %cst_20 : f32 to vector<32x1024xf32>
    %53 = arith.subf %52, %51 : vector<32x1024xf32>
    %54 = math.exp %53 : vector<32x1024xf32>
    %cst_21 = arith.constant 1.000000e+00 : f32
    %55 = vector.broadcast %cst_21 : f32 to vector<32x1024xf32>
    %56 = arith.addf %55, %54 : vector<32x1024xf32>
    %57 = math.log %56 : vector<32x1024xf32>
    %cst_22 = arith.constant 0.000000e+00 : f32
    %58 = vector.broadcast %cst_22 : f32 to vector<32x1024xf32>
    %59 = arith.subf %58, %50 : vector<32x1024xf32>
    %cst_23 = arith.constant 0.000000e+00 : f32
    %60 = vector.broadcast %cst_23 : f32 to vector<32x1024xf32>
    %61 = arith.maximumf %59, %60 : vector<32x1024xf32>
    %62 = arith.addf %61, %57 : vector<32x1024xf32>
    %cst_24 = arith.constant 0.000000e+00 : f32
    %63 = vector.broadcast %cst_24 : f32 to vector<32x1024xf32>
    %64 = arith.subf %63, %62 : vector<32x1024xf32>
    %cst_25 = arith.constant 0.000000e+00 : f32
    %65 = vector.broadcast %cst_25 : f32 to vector<32x1024xf32>
    %66 = arith.maximumf %50, %65 : vector<32x1024xf32>
    %67 = arith.addf %66, %57 : vector<32x1024xf32>
    %cst_26 = arith.constant 0.000000e+00 : f32
    %68 = vector.broadcast %cst_26 : f32 to vector<32x1024xf32>
    %69 = arith.subf %68, %67 : vector<32x1024xf32>
    %cst_27 = arith.constant -5.29831743 : f32
    %70 = vector.broadcast %cst_27 : f32 to vector<32x1024xf32>
    %71 = arith.maximumf %69, %70 : vector<32x1024xf32>
    %72 = arith.mulf %48, %71 : vector<32x1024xf32>
    %cst_28 = arith.constant -5.29831743 : f32
    %73 = vector.broadcast %cst_28 : f32 to vector<32x1024xf32>
    %74 = arith.maximumf %64, %73 : vector<32x1024xf32>
    %75 = arith.mulf %46, %74 : vector<32x1024xf32>
    %76 = arith.addf %72, %75 : vector<32x1024xf32>
    %cst_29 = arith.constant 0.000000e+00 : f32
    %77 = vector.broadcast %cst_29 : f32 to vector<32x1024xf32>
    %78 = arith.subf %77, %76 : vector<32x1024xf32>
    %79 = arith.mulf %6, %39 : vector<32x1024xf32>
    %80 = arith.mulf %79, %78 : vector<32x1024xf32>
    %81 = vector.shape_cast %80 : vector<32x1024xf32> to vector<1x32x1024xf32>
    %cst_30 = arith.constant dense<0.000000e+00> : vector<1xf32>
    %82 = vector.multi_reduction <add>, %81, %cst_30 [1, 2] : vector<1x32x1024xf32> to vector<1xf32>
    %83 = vector.shape_cast %82 : vector<1xf32> to vector<1x1x1xf32>
    %84 = vector.extract %83[0, 0, 0] : f32 from vector<1x1x1xf32>
    %85 = vector.shape_cast %79 : vector<32x1024xf32> to vector<1x32x1024xf32>
    %cst_31 = arith.constant dense<0.000000e+00> : vector<1xf32>
    %86 = vector.multi_reduction <add>, %85, %cst_31 [1, 2] : vector<1x32x1024xf32> to vector<1xf32>
    %87 = vector.shape_cast %86 : vector<1xf32> to vector<1x1x1xf32>
    %88 = vector.extract %87[0, 0, 0] : f32 from vector<1x1x1xf32>
    %89 = tpu.iota {dimensions = array<i32: 2>} : vector<1x1x128xi32>
    %c0_i32 = arith.constant 0 : i32
    %90 = vector.broadcast %c0_i32 : i32 to vector<1x1x128xi32>
    %91 = arith.cmpi eq, %89, %90 : vector<1x1x128xi32>
    %c1_i32_32 = arith.constant 1 : i32
    %92 = vector.broadcast %c1_i32_32 : i32 to vector<1x1x128xi32>
    %93 = arith.cmpi eq, %89, %92 : vector<1x1x128xi32>
    %cst_33 = arith.constant 0.000000e+00 : f32
    %94 = vector.broadcast %88 : f32 to vector<1x1x128xf32>
    %95 = vector.broadcast %cst_33 : f32 to vector<1x1x128xf32>
    %96 = arith.select %93, %94, %95 : vector<1x1x128xi1>, vector<1x1x128xf32>
    %97 = vector.broadcast %84 : f32 to vector<1x1x128xf32>
    %98 = arith.select %91, %97, %96 : vector<1x1x128xi1>, vector<1x1x128xf32>
    %c0_34 = arith.constant 0 : index
    %c0_35 = arith.constant 0 : index
    %c0_36 = arith.constant 0 : index
    %99 = vector.load %arg4[%c0_34, %c0_35, %c0_36] : memref<1x1x128xf32, #tpu.memory_space<vmem>>, vector<1x1x128xf32>
    tpu.vector_store %arg4[%c0_34, %c0_35, %c0_36], %98 {strides = array<i32>} : memref<1x1x128xf32, #tpu.memory_space<vmem>>, vector<1x1x128xf32>,
    return
  }
  func.func @transform_0(%arg0: i32) -> (i32, i32) {
    %c0_i32 = arith.constant 0 : i32
    %c0_i32_0 = arith.constant 0 : i32
    return %arg0, %c0_i32 : i32, i32
  }
  func.func @transform_1(%arg0: i32) -> (i32, i32) {
    %c0_i32 = arith.constant 0 : i32
    %c0_i32_0 = arith.constant 0 : i32
    return %arg0, %c0_i32 : i32, i32
  }
  func.func @transform_2(%arg0: i32) -> (i32, i32) {
    %c0_i32 = arith.constant 0 : i32
    %c0_i32_0 = arith.constant 0 : i32
    return %arg0, %c0_i32 : i32, i32
  }
  func.func @transform_3(%arg0: i32) -> (i32, i32, i32) {
    %c0_i32 = arith.constant 0 : i32
    %c0_i32_0 = arith.constant 0 : i32
    %c0_i32_1 = arith.constant 0 : i32
    return %arg0, %c0_i32, %c0_i32_0 : i32, i32, i32
  }
}

</mosaic_0001>

<bundles_post_ra>
// kernel: pmkl_loss_forward.3
= control target key start
LH: loop header
LB: loop body
LE: loop exit
PB: predicated region body
PF: predicated region fallthrough
CT: control target
= control target key end

     0   :  { %s158_s0 = inlined_call_operand.vmem [shape: f32[2,32], index: 0, kind: input, shape index: {}]   ;;  %s159_s1 = inlined_call_operand.vmem [shape: f32[2,32], index: 1, kind: input, shape index: {}]   ;;  %s160_s2 = inlined_call_operand.hbm [shape: f32[1,1], index: 2, kind: output, shape index: {}]  }
   0x1   :  { %v12_v0 = vld [vmem:[%s158_s0] sm:$0x3] }
   0x2   :  { %v13_v1 = vld [vmem:[%s159_s1] sm:$0x3]  ;;  %v16_v2 = vperm.slane %v12_v0, 0  ;;  %v15_v3 = vrot.slane %v12_v0, 1 }
   0x3   :  { %7 = vsyncpa [#allocation3], 0  ;;  %vm24_vm0 = vcmask 254976   ;;  %v57_v35 = vlaneseq  ;;  %vm74_vm5 = vcmask 1041409   ;;  %vm84_vm7 = vcmask 9216   ;;  %s102_s13 = sshll.u32 %s160_s2, 4  ;;  %s103_s13 = int_to_ptr.hbm [resolvable:$true] %s102_s13 }
   0x4   :  { %v20_v4 = vsub.f32 %v13_v1, %v16_v2  ;;  %v17_v5 = vperm.slane %v15_v3, 0  ;;  %s133_s15 = smov [#allocation2]  }
   0x5   :  { %v60_v40 = vand.u32 127, %v57_v35  ;;  %v58_v41 = vshrl.u32 %v57_v35, 7 }
   0x6   :  { %v22_v6 = vmul.f32 %v20_v4, %v20_v4  ;;  %v21_v7 = vsub.f32 %v13_v1, %v17_v5 }
   0x7   :  { %vm61_vm6 = vcmp.eq.s32.totalorder %v58_v41, %v60_v40 }
   0x8   :  { %v25_v8 = vsel %vm24_vm0, %v22_v6, 0.0  ;;  %v23_v9 = vmul.f32 %v21_v7, %v21_v7 }
   0x9   :  { %26 = vadd.xlane.f32.xlu0 %v25_v8 }
   0xa   :  { %v28_v10 = vsel %vm24_vm0, %v23_v9, 0.0 }
  0x11   :  { %29 = vadd.xlane.f32.xlu0 %v28_v10 }
  0x7c   :  { %v27_v11 = vpop.xlane.xlu0 %26 }
  0x7d   :  { %115 = vrsqrt.f32 %v27_v11  ;;  %vm38_vm1 = vcmp.eq.f32.partialorder %v27_v11, inf  ;;  %v41_v23 = vand.u32 2147483648, %v27_v11  ;;  %vm40_vm2 = vcmp.eq.f32.partialorder %v27_v11, 0.0 }
  0x7e   :  { %v62_v42 = vmul.f32 0.0009765625, %v27_v11 }
  0x80   :  { %v72_v47 = vperm.slane %v62_v42, %v60_v40 }
  0x83   :  { %v116_v12 = vpop.eup %115 }
  0x84   :  { %v32_v13 = vmul.f32 %v116_v12, %v27_v11  ;;  %v30_v14 = vpop.xlane.xlu0 %29 }
  0x85   :  { %117 = vrsqrt.f32 %v30_v14  ;;  %vm50_vm3 = vcmp.eq.f32.partialorder %v30_v14, inf  ;;  %v53_v32 = vand.u32 2147483648, %v30_v14  ;;  %vm52_vm4 = vcmp.eq.f32.partialorder %v30_v14, 0.0 }
  0x86   :  { %v33_v15 = vmul.f32 %v116_v12, %v32_v13  ;;  %v63_v38 = vmul.f32 0.0009765625, %v30_v14 }
  0x88   :  { %v34_v16 = vmul.f32 0.5, %v33_v15  ;;  %v73_v46 = vperm.slane %v63_v38, %v60_v40 }
  0x8a   :  { %v35_v17 = vsub.f32 1.5, %v34_v16  ;;  %v75_v50 = vsel %vm74_vm5, %v73_v46, %v72_v47 }
  0x8b   :  { %v118_v18 = vpop.eup %117 }
  0x8c   :  { %v44_v19 = vmul.f32 %v118_v18, %v30_v14  ;;  %v36_v20 = vmul.f32 %v116_v12, %v35_v17 }
  0x8e   :  { %v45_v21 = vmul.f32 %v118_v18, %v44_v19  ;;  %v37_v22 = vmul.f32 %v36_v20, %v27_v11 }
  0x90   :  { %v46_v24 = vmul.f32 0.5, %v45_v21  ;;  %v39_v25 = vsel %vm38_vm1, %v27_v11, %v37_v22 }
  0x91   :  { %v42_v26 = vsel %vm40_vm2, %v41_v23, %v39_v25 }
  0x92   :  { %v47_v27 = vsub.f32 1.5, %v46_v24  ;;  %v55_v28 = vmul.f32 0.03125, %v42_v26 }
  0x94   :  { %v48_v29 = vmul.f32 %v118_v18, %v47_v27  ;;  %v64_v31 = vsub.f32 1.0, %v55_v28 }
  0x96   :  { %v49_v30 = vmul.f32 %v48_v29, %v30_v14  ;;  %v66_v37 = vmax.f32 %v64_v31, 0.0 }
  0x98   :  { %v51_v33 = vsel %vm50_vm3, %v30_v14, %v49_v30  ;;  %v68_v44 = vmul.f32 %v66_v37, %v66_v37 }
  0x99   :  { %v54_v34 = vsel %vm52_vm4, %v53_v32, %v51_v33 }
  0x9a   :  { %v56_v36 = vmul.f32 0.03125, %v54_v34  ;;  %v79_v48 = vperm.slane %v68_v44, %v60_v40 }
  0x9c   :  { %v65_v39 = vsub.f32 1.0, %v56_v36 }
  0x9e   :  { %v67_v43 = vmax.f32 %v65_v39, 0.0 }
  0xa0   :  { %v69_v45 = vmul.f32 %v67_v43, %v67_v43 }
  0xa2   :  { %v80_v49 = vperm.slane %v69_v45, %v60_v40 }
  0xa4   :  { %v81_v51 = vsel %vm74_vm5, %v80_v49, %v79_v48 }
  0xa5   :  { %v83_v52 = vsel %vm61_vm6, %v75_v50, %v81_v51 }
  0xa6   :  { %v85_v53 = vsel %vm84_vm7, %v83_v52, 0.0 }
  0xa7   :  { %86 = vadd.xlane.f32.xlu1 %v85_v53 }
 0x11a   :  { %v87_v54 = vpop.xlane.xlu1 %86 }
 0x11b   :  { %v88_v55 = vrot.slane %v87_v54, 4 }
 0x11d   :  { %v89_v56 = vadd.f32 %v88_v55, %v87_v54 }
 0x11f   :  { %v90_v57 = vrot.slane %v89_v56, 2 }
 0x121   :  { %v91_v58 = vadd.f32 %v90_v57, %v89_v56 }
 0x123   :  { %v92_v59 = vrot.slane %v91_v58, 1 }
 0x125   :  { %v93_v60 = vadd.f32 %v92_v59, %v91_v58 }
 0x127   :  { %112 = vpush %v93_v60 }
 0x158   :  { %s113_s14 = spop %112 }
 0x159   :  { %96 = sst [smem:[#allocation2]] %s113_s14 }
 0x15a   :  { %105 = dma.smem_to_hbm %s133_s15, 16, %s103_s13, [#allocation3]  }
 0x15b   :  { %131 = dma.done.wait [#allocation3], 16  }
 0x15c   :  { %132 = vsyncadd [#allocation3], 4294967280 }
 0x15d   :  { %110 = sfence }
 0x15e   :  { %111 = vsyncpa [#allocation3], 1 }

// kernel: pmkl_loss_forward.2
= control target key start
LH: loop header
LB: loop body
LE: loop exit
PB: predicated region body
PF: predicated region fallthrough
CT: control target
= control target key end

     0   :  { %s6204_s0 = inlined_call_operand.vmem [shape: f32[32,1024], index: 0, kind: input, shape index: {}]   ;;  %s6205_s2 = inlined_call_operand.vmem [shape: s8[32,1024], index: 2, kind: input, shape index: {}]   ;;  %s6206_s1 = inlined_call_operand.vmem [shape: f32[32,1024], index: 1, kind: input, shape index: {}]   ;;  %s6207_s3 = inlined_call_operand.vmem [shape: f32[1,1,128], index: 3, kind: output, shape index: {}]  }
   0x1   :  { %v14_v0 = vld [vmem:[%s6204_s0] sm:$0xff]  ;;  %v15_v1 = vld [vmem:[%s6204_s0 + $0x8] sm:$0xff]  ;;  %v16_v2 = vld [vmem:[%s6204_s0 + $0x10] sm:$0xff] }
   0x2   :  { %v17_v3 = vld [vmem:[%s6204_s0 + $0x18] sm:$0xff]  ;;  %v18_v4 = vld [vmem:[%s6204_s0 + $0x20] sm:$0xff]  ;;  %v19_v5 = vld [vmem:[%s6204_s0 + $0x28] sm:$0xff]  ;;  %v246_v6 = vand.u32 2147483647, %v14_v0 }
   0x3   :  { %v2560_v7 = vld [vmem:[%s6204_s0 + $0x30] sm:$0xff]  ;;  %v2565_v8 = vld [vmem:[%s6204_s0 + $0x38] sm:$0xff]  ;;  %v247_v9 = vand.u32 2147483647, %v15_v1  ;;  %v248_v10 = vand.u32 2147483647, %v16_v2 }
   0x4   :  { %v2570_v11 = vld [vmem:[%s6204_s0 + $0x40] sm:$0xff]  ;;  %v249_v12 = vand.u32 2147483647, %v17_v3  ;;  %v2575_v13 = vld [vmem:[%s6204_s0 + $0x48] sm:$0xff]  ;;  %v2580_v14 = vld [vmem:[%s6204_s0 + $0x50] sm:$0xff]  ;;  %v2589_v20 = vsub.f32 0.0, %v246_v6 }
   0x5   :  { %v250_v15 = vand.u32 2147483647, %v18_v4  ;;  %v251_v16 = vand.u32 2147483647, %v19_v5  ;;  %v2585_v17 = vld [vmem:[%s6205_s2] sm:$0xff]  ;;  %v2594_v21 = vld [vmem:[%s6205_s2 + $0x8] sm:$0xff] }
   0x6   :  { %v2599_v22 = vld [vmem:[%s6205_s2 + $0x10] sm:$0xff]  ;;  %v2602_v24 = vsub.f32 0.0, %v247_v9  ;;  %v2604_v25 = vsub.f32 0.0, %v248_v10  ;;  %v2609_v26 = vld [vmem:[%s6205_s2 + $0x18] sm:$0xff]  ;;  %v2614_v27 = vld [vmem:[%s6205_s2 + $0x20] sm:$0xff]  ;;  %v2622_v30 = vsub.f32 0.0, %v249_v12  ;;  %v86_v33 = vunpack.c.0.s8 %v2585_v17 }
   0x7   :  { %v2619_v28 = vld [vmem:[%s6205_s2 + $0x28] sm:$0xff]  ;;  %v2627_v31 = vld [vmem:[%s6205_s2 + $0x30] sm:$0xff]  ;;  %v2632_v32 = vld [vmem:[%s6205_s2 + $0x38] sm:$0xff]  ;;  %v2636_v35 = vsub.f32 0.0, %v250_v15  ;;  %v2638_v36 = vsub.f32 0.0, %v251_v16  ;;  %v87_v37 = vunpack.c.0.s8 %v2594_v21  ;;  %v88_v38 = vunpack.c.0.s8 %v2599_v22 }
   0x8   :  { %v6208_v39 = vunpack.c.1.s8 %v2585_v17  ;;  %v6209_v40 = vunpack.c.1.s8 %v2594_v21  ;;  %v6235_v41 = vunpack.c.0.s8 %v2609_v26  ;;  %v6233_v42 = vunpack.c.0.s8 %v2614_v27 }
   0x9   :  { %v6231_v43 = vunpack.c.0.s8 %v2619_v28  ;;  %v6210_v44 = vunpack.c.1.s8 %v2599_v22  ;;  %v6229_v45 = vunpack.c.0.s8 %v2627_v31  ;;  %v6227_v46 = vunpack.c.0.s8 %v2632_v32 }
   0xa   :  { %v6211_v47 = vunpack.c.1.s8 %v2609_v26  ;;  %v6212_v48 = vunpack.c.1.s8 %v2614_v27  ;;  %v6213_v49 = vunpack.c.1.s8 %v2619_v28  ;;  %v6214_v50 = vunpack.c.1.s8 %v2627_v31 }
   0xb   :  { %v6215_v51 = vunpack.c.1.s8 %v2632_v32  ;;  %v6216_v52 = vunpack.c.2.s8 %v2585_v17  ;;  %v6217_v53 = vunpack.c.2.s8 %v2594_v21  ;;  %v6218_v54 = vunpack.c.2.s8 %v2599_v22 }
   0xc   :  { %v6219_v55 = vunpack.c.2.s8 %v2609_v26  ;;  %v6220_v56 = vunpack.c.2.s8 %v2614_v27  ;;  %v6221_v57 = vunpack.c.2.s8 %v2619_v28  ;;  %v6222_v58 = vunpack.c.2.s8 %v2627_v31 }
   0xd   :  { %v6223_v59 = vunpack.c.2.s8 %v2632_v32  ;;  %v6224_v60 = vunpack.c.3.s8 %v2585_v17  ;;  %v6225_v61 = vunpack.c.3.s8 %v2594_v21  ;;  %v6226_v62 = vunpack.c.3.s8 %v2599_v22 }
   0xe   :  { %v6228_v63 = vunpack.c.3.s8 %v2609_v26  ;;  %v6230_v0 = vunpack.c.3.s8 %v2614_v27  ;;  %v6232_v1 = vunpack.c.3.s8 %v2619_v28  ;;  %v6234_v2 = vunpack.c.3.s8 %v2627_v31 }
   0xf   :  { %v6236_v3 = vunpack.c.3.s8 %v2632_v32  ;;  %v2673_v4 = vshra.s32 %v86_v33, 1  ;;  %v2677_v5 = vshra.s32 %v87_v37, 1  ;;  %v2681_v6 = vshra.s32 %v88_v38, 1 }
  0x10   :  { %v2685_v9 = vshra.s32 %v6235_v41, 1  ;;  %v2689_v10 = vshra.s32 %v6233_v42, 1  ;;  %v2693_v12 = vshra.s32 %v6231_v43, 1  ;;  %v2697_v15 = vshra.s32 %v6229_v45, 1 }
  0x11   :  { %6556 = vst [vmem:[#allocation2_spill] sm:$0xff] %v2673_v4  ;;  %v2701_v16 = vshra.s32 %v6227_v46, 1  ;;  %v2705_v34 = vshra.s32 %v6208_v39, 1  ;;  %v2709_v29 = vshra.s32 %v6209_v40, 1  ;;  %v2713_v23 = vshra.s32 %v6210_v44, 1 }
  0x12   :  { %6557 = vst [vmem:[#allocation3_spill] sm:$0xff] %v2677_v5  ;;  %v2717_v19 = vshra.s32 %v6211_v47, 1  ;;  %v2721_v18 = vshra.s32 %v6212_v48, 1  ;;  %v2725_v39 = vshra.s32 %v6213_v49, 1  ;;  %v2729_v40 = vshra.s32 %v6214_v50, 1 }
  0x13   :  { %6558 = vst [vmem:[#allocation4_spill] sm:$0xff] %v2681_v6  ;;  %v2733_v44 = vshra.s32 %v6215_v51, 1  ;;  %v2737_v47 = vshra.s32 %v6216_v52, 1  ;;  %v2741_v48 = vshra.s32 %v6217_v53, 1  ;;  %v2745_v49 = vshra.s32 %v6218_v54, 1  ;;  %v2931_v6 = vld [vmem:[%s6204_s0 + $0x90] sm:$0xff] }
  0x14   :  { %6559 = vst [vmem:[#allocation5_spill] sm:$0xff] %v2685_v9  ;;  %v2749_v50 = vshra.s32 %v6219_v55, 1  ;;  %v2753_v51 = vshra.s32 %v6220_v56, 1  ;;  %v2757_v52 = vshra.s32 %v6221_v57, 1  ;;  %v2761_v53 = vshra.s32 %v6222_v58, 1 }
  0x15   :  { %6560 = vst [vmem:[#allocation6_spill] sm:$0xff] %v2689_v10  ;;  %v2765_v54 = vshra.s32 %v6223_v59, 1  ;;  %v2769_v55 = vshra.s32 %v6224_v60, 1  ;;  %v2773_v56 = vshra.s32 %v6225_v61, 1  ;;  %v2777_v57 = vshra.s32 %v6226_v62, 1 }
  0x16   :  { %6561 = vst [vmem:[#allocation7_spill] sm:$0xff] %v2693_v12  ;;  %v2781_v58 = vshra.s32 %v6228_v63, 1  ;;  %v2785_v59 = vshra.s32 %v6230_v0, 1  ;;  %v2789_v60 = vshra.s32 %v6232_v1, 1  ;;  %v2793_v61 = vshra.s32 %v6234_v2, 1 }
  0x17   :  { %6562 = vst [vmem:[#allocation8_spill] sm:$0xff] %v2697_v15  ;;  %v2797_v62 = vshra.s32 %v6236_v3, 1  ;;  %v2819_v41 = vand.u32 1, %v86_v33  ;;  %v2823_v46 = vand.u32 1, %v87_v37  ;;  %v2827_v45 = vand.u32 1, %v88_v38  ;;  %v2848_v38 = vld [vmem:[%s6204_s0 + $0x58] sm:$0xff] }
  0x18   :  { %6563 = vst [vmem:[#allocation9_spill] sm:$0xff] %v2701_v16  ;;  %v6590_v43 = vunpack.c.0.s8 %v2609_v26  ;;  %v6592_v42 = vunpack.c.0.s8 %v2614_v27  ;;  %v6594_v2 = vunpack.c.0.s8 %v2619_v28  ;;  %v6596_v63 = vunpack.c.0.s8 %v2627_v31 }
  0x19   :  { %6564 = vst [vmem:[#allocation10_spill] sm:$0xff] %v2705_v34  ;;  %v6618_v15 = vunpack.c.2.s8 %v2594_v21  ;;  %v6620_v10 = vunpack.c.2.s8 %v2599_v22  ;;  %vm214_vm0 = vcmp.eq.s32.totalorder %v2819_v41, 1 }
  0x1a   :  { %6565 = vst [vmem:[#allocation11_spill] sm:$0xff] %v2709_v29  ;;  %v2831_v0 = vand.u32 1, %v6590_v43  ;;  %v2835_v1 = vand.u32 1, %v6592_v42  ;;  %v2839_v33 = vand.u32 1, %v6594_v2  ;;  %v2843_v37 = vand.u32 1, %v6596_v63  ;;  %v2900_v29 = vld [vmem:[%s6204_s0 + $0x78] sm:$0xff] }
  0x1b   :  { %6566 = vst [vmem:[#allocation12_spill] sm:$0xff] %v2713_v23  ;;  %v6598_v43 = vunpack.c.0.s8 %v2632_v32  ;;  %v6600_v42 = vunpack.c.1.s8 %v2585_v17  ;;  %v6602_v2 = vunpack.c.1.s8 %v2594_v21  ;;  %v6604_v63 = vunpack.c.1.s8 %v2599_v22 }
  0x1c   :  { %6567 = vst [vmem:[#allocation13_spill] sm:$0xff] %v2717_v19  ;;  %v6612_v19 = vunpack.c.1.s8 %v2627_v31  ;;  %v2922_v12 = vand.u32 1, %v6618_v15  ;;  %v2926_v9 = vand.u32 1, %v6620_v10  ;;  %v6624_v15 = vunpack.c.2.s8 %v2614_v27 }
  0x1d   :  { %6568 = vst [vmem:[#allocation14_spill] sm:$0xff] %v2721_v18  ;;  %v2852_v3 = vand.u32 1, %v6598_v43  ;;  %v2874_v43 = vld [vmem:[%s6204_s0 + $0x68] sm:$0xff]  ;;  %v6626_v10 = vunpack.c.2.s8 %v2619_v28 }
  0x1e   :  { %6569 = vst [vmem:[#allocation15_spill] sm:$0xff] %v2725_v39  ;;  %v6610_v39 = vunpack.c.1.s8 %v2619_v28  ;;  %v2895_v23 = vand.u32 1, %v6612_v19  ;;  %v6616_v19 = vunpack.c.2.s8 %v2585_v17  ;;  %v2944_v4 = vand.u32 1, %v6624_v15 }
  0x1f   :  { %6570 = vst [vmem:[#allocation16_spill] sm:$0xff] %v2729_v40  ;;  %v6630_v15 = vunpack.c.2.s8 %v2632_v32 }
  0x20   :  { %6571 = vst [vmem:[#allocation17_spill] sm:$0xff] %v2733_v44  ;;  %v2891_v18 = vand.u32 1, %v6610_v39  ;;  %v6614_v39 = vunpack.c.1.s8 %v2632_v32  ;;  %v2918_v16 = vand.u32 1, %v6616_v19  ;;  %v6622_v19 = vunpack.c.2.s8 %v2609_v26 }
  0x21   :  { %6572 = vst [vmem:[#allocation18_spill] sm:$0xff] %v2737_v47  ;;  %v2869_v47 = vld [vmem:[%s6204_s0 + $0x60] sm:$0xff] }
  0x22   :  { %6573 = vst [vmem:[#allocation19_spill] sm:$0xff] %v2741_v48  ;;  %v2864_v48 = vand.u32 1, %v6604_v63  ;;  %v6608_v63 = vunpack.c.1.s8 %v2614_v27  ;;  %v2914_v34 = vand.u32 1, %v6614_v39  ;;  %v2936_v39 = vld [vmem:[%s6204_s0 + $0x98] sm:$0xff]  ;;  %v2940_v5 = vand.u32 1, %v6622_v19  ;;  %v2962_v19 = vld [vmem:[%s6204_s0 + $0xa8] sm:$0xff] }
  0x23   :  { %6574 = vst [vmem:[#allocation20_spill] sm:$0xff] %v2745_v49  ;;  %v310_v49 = vmul.f32 1.442695, %v2589_v20  ;;  %v6646_v20 = vand.u32 2147483647, %v2560_v7 }
  0x24   :  { %6575 = vst [vmem:[#allocation21_spill] sm:$0xff] %v2749_v50  ;;  %v2887_v40 = vand.u32 1, %v6608_v63  ;;  %v2910_v63 = vld [vmem:[%s6204_s0 + $0x88] sm:$0xff]  ;;  %v312_v50 = vmul.f32 1.442695, %v2602_v24 }
  0x25   :  { %6576 = vst [vmem:[#allocation22_spill] sm:$0xff] %v2753_v51  ;;  %v284_v51 = vsub.f32 0.0, %v6646_v20  ;;  %2007 = vpow2.f32 %v310_v49  ;;  %v320_v20 = vmul.f32 1.442695, %v2638_v36 }
  0x26   :  { %6577 = vst [vmem:[#allocation23_spill] sm:$0xff] %v2757_v52  ;;  %2009 = vpow2.f32 %v312_v50 }
  0x27   :  { %6578 = vst [vmem:[#allocation24_spill] sm:$0xff] %v2761_v53  ;;  %v6636_v53 = vunpack.c.3.s8 %v2599_v22  ;;  %v257_v22 = vand.u32 2147483647, %v2848_v38  ;;  %v267_v38 = vand.u32 2147483647, %v2962_v19 }
  0x28   :  { %6579 = vst [vmem:[#allocation25_spill] sm:$0xff] %v2765_v54  ;;  %v6649_v19 = vand.u32 2147483647, %v2565_v8  ;;  %v3062_v8 = vld [vmem:[%s6204_s0 + $0xe0] sm:$0xff] }
  0x29   :  { %6580 = vst [vmem:[#allocation26_spill] sm:$0xff] %v2769_v55  ;;  %v289_v50 = vsub.f32 0.0, %v257_v22 }
  0x2a   :  { %6581 = vst [vmem:[#allocation27_spill] sm:$0xff] %v2773_v56  ;;  %v2966_v56 = vand.u32 1, %v6630_v15  ;;  %v6638_v15 = vunpack.c.3.s8 %v2609_v26  ;;  %v285_v24 = vsub.f32 0.0, %v6649_v19  ;;  %v322_v19 = vmul.f32 1.442695, %v284_v51 }
  0x2b   :  { %6582 = vst [vmem:[#allocation28_spill] sm:$0xff] %v2777_v57  ;;  %v2957_v57 = vld [vmem:[%s6204_s0 + $0xa0] sm:$0xff]  ;;  %v3082_v52 = vpop.eup %2007 }
  0x2c   :  { %6583 = vst [vmem:[#allocation29_spill] sm:$0xff] %v2781_v58  ;;  %v324_v36 = vmul.f32 1.442695, %v285_v24  ;;  %v3084_v24 = vpop.eup %2009 }
  0x2d   :  { %6584 = vst [vmem:[#allocation30_spill] sm:$0xff] %v2785_v59  ;;  %v6628_v59 = vunpack.c.2.s8 %v2627_v31 }
  0x2e   :  { %6585 = vst [vmem:[#allocation31_spill] sm:$0xff] %v2789_v60  ;;  %v2948_v60 = vand.u32 1, %v6626_v10  ;;  %v6632_v10 = vunpack.c.3.s8 %v2585_v17  ;;  %v6640_v17 = vunpack.c.3.s8 %v2614_v27 }
  0x2f   :  { %6586 = vst [vmem:[#allocation32_spill] sm:$0xff] %v2793_v61  ;;  %v2860_v61 = vand.u32 1, %v6602_v2  ;;  %v6606_v2 = vunpack.c.1.s8 %v2609_v26  ;;  %v2952_v58 = vand.u32 1, %v6628_v59  ;;  %v6634_v59 = vunpack.c.3.s8 %v2594_v21 }
  0x30   :  { %6587 = vst [vmem:[#allocation33_spill] sm:$0xff] %v2797_v62  ;;  %v2856_v62 = vand.u32 1, %v6600_v42  ;;  %v2879_v42 = vld [vmem:[%s6204_s0 + $0x70] sm:$0xff]  ;;  %v2970_v55 = vand.u32 1, %v6632_v10  ;;  %v2991_v10 = vand.u32 1, %v6640_v17  ;;  %v6642_v21 = vunpack.c.3.s8 %v2619_v28  ;;  %v3010_v28 = vld [vmem:[%s6204_s0 + $0xc0] sm:$0xff] }
  0x31   :  { %6588 = vst [vmem:[#allocation34_spill] sm:$0xff] %v2823_v46  ;;  %v2883_v44 = vand.u32 1, %v6606_v2  ;;  %v2905_v2 = vld [vmem:[%s6204_s0 + $0x80] sm:$0xff]  ;;  %v2974_v54 = vand.u32 1, %v6634_v59  ;;  %v258_v26 = vand.u32 2147483647, %v2869_v47 }
  0x32   :  { %6589 = vst [vmem:[#allocation35_spill] sm:$0xff] %v2827_v45  ;;  %v2995_v59 = vand.u32 1, %v6642_v21  ;;  %v260_v27 = vand.u32 2147483647, %v2879_v42  ;;  %v261_v17 = vand.u32 2147483647, %v2900_v29 }
  0x33   :  { %6591 = vst [vmem:[#allocation36_spill] sm:$0xff] %v2831_v0  ;;  %v262_v21 = vand.u32 2147483647, %v2905_v2  ;;  %v3019_v47 = vld [vmem:[%s6204_s0 + $0xc8] sm:$0xff]  ;;  %v264_v42 = vand.u32 2147483647, %v2931_v6 }
  0x34   :  { %6593 = vst [vmem:[#allocation37_spill] sm:$0xff] %v2835_v1  ;;  %v3028_v29 = vld [vmem:[%s6204_s0 + $0xd0] sm:$0xff]  ;;  %v270_v7 = vand.u32 2147483647, %v3010_v28 }
  0x35   :  { %6595 = vst [vmem:[#allocation38_spill] sm:$0xff] %v2839_v33  ;;  %v272_v49 = vand.u32 2147483647, %v3028_v29  ;;  %v274_v29 = vand.u32 2147483647, %v3062_v8  ;;  %v3513_v45 = vld [vmem:[%s6206_s1 + $0xf0] sm:$0xff] }
  0x36   :  { %6597 = vst [vmem:[#allocation39_spill] sm:$0xff] %v2843_v37 }
  0x37   :  { %6599 = vst [vmem:[#allocation40_spill] sm:$0xff] %v2852_v3 }
  0x38   :  { %6601 = vst [vmem:[#allocation41_spill] sm:$0xff] %v2856_v62 }
  0x39   :  { %6603 = vst [vmem:[#allocation42_spill] sm:$0xff] %v2860_v61 }
  0x3a   :  { %6605 = vst [vmem:[#allocation43_spill] sm:$0xff] %v2864_v48 }
  0x3b   :  { %6607 = vst [vmem:[#allocation44_spill] sm:$0xff] %v2883_v44 }
  0x3c   :  { %6609 = vst [vmem:[#allocation45_spill] sm:$0xff] %v2887_v40  ;;  %v3230_v40 = vld [vmem:[%s6206_s1 + $0x70] sm:$0xff] }
  0x3d   :  { %6611 = vst [vmem:[#allocation46_spill] sm:$0xff] %v2891_v18 }
  0x3e   :  { %6613 = vst [vmem:[#allocation47_spill] sm:$0xff] %v2895_v23 }
  0x3f   :  { %6615 = vst [vmem:[#allocation48_spill] sm:$0xff] %v2914_v34  ;;  %v3218_v34 = vld [vmem:[%s6206_s1 + $0x68] sm:$0xff] }
  0x40   :  { %6617 = vst [vmem:[#allocation49_spill] sm:$0xff] %v2918_v16  ;;  %v3213_v16 = vld [vmem:[%s6206_s1 + $0x60] sm:$0xff] }
  0x41   :  { %6619 = vst [vmem:[#allocation50_spill] sm:$0xff] %v2922_v12 }
  0x42   :  { %6621 = vst [vmem:[#allocation51_spill] sm:$0xff] %v2926_v9 }
  0x43   :  { %6623 = vst [vmem:[#allocation52_spill] sm:$0xff] %v2940_v5  ;;  %v3201_v5 = vld [vmem:[%s6206_s1 + $0x58] sm:$0xff] }
  0x44   :  { %6625 = vst [vmem:[#allocation53_spill] sm:$0xff] %v2944_v4  ;;  %v3196_v4 = vld [vmem:[%s6206_s1 + $0x50] sm:$0xff] }
  0x45   :  { %6627 = vst [vmem:[#allocation54_spill] sm:$0xff] %v2948_v60  ;;  %v2983_v60 = vld [vmem:[%s6204_s0 + $0xb0] sm:$0xff] }
  0x46   :  { %6629 = vst [vmem:[#allocation55_spill] sm:$0xff] %v2952_v58  ;;  %v2978_v58 = vand.u32 1, %v6636_v53  ;;  %v3001_v53 = vld [vmem:[%s6204_s0 + $0xb8] sm:$0xff] }
  0x47   :  { %6631 = vst [vmem:[#allocation56_spill] sm:$0xff] %v2966_v56  ;;  %v2987_v56 = vand.u32 1, %v6638_v15  ;;  %v259_v15 = vand.u32 2147483647, %v2874_v43  ;;  %v6644_v43 = vunpack.c.3.s8 %v2627_v31  ;;  %v316_v31 = vmul.f32 1.442695, %v2622_v30 }
  0x48   :  { %6633 = vst [vmem:[#allocation57_spill] sm:$0xff] %v2970_v55  ;;  %v271_v30 = vand.u32 2147483647, %v3019_v47  ;;  %v44_v47 = vld [vmem:[%s6204_s0 + $0xf0] sm:$0xff] }
  0x49   :  { %6635 = vst [vmem:[#allocation58_spill] sm:$0xff] %v2974_v54  ;;  %v3036_v6 = vand.u32 1, %v6644_v43  ;;  %v291_v51 = vsub.f32 0.0, %v259_v15  ;;  %v332_v54 = vmul.f32 1.442695, %v289_v50 }
  0x4a   :  { %6637 = vst [vmem:[#allocation59_spill] sm:$0xff] %v2978_v58  ;;  %v265_v58 = vand.u32 2147483647, %v2936_v39  ;;  %v268_v39 = vand.u32 2147483647, %v2983_v60  ;;  %v3053_v60 = vld [vmem:[%s6204_s0 + $0xd8] sm:$0xff] }
  0x4b   :  { %6639 = vst [vmem:[#allocation60_spill] sm:$0xff] %v2987_v56  ;;  %v6647_v56 = vunpack.c.3.s8 %v2632_v32  ;;  %v318_v32 = vmul.f32 1.442695, %v2636_v35  ;;  %v6652_v35 = vand.u32 2147483647, %v2580_v14 }
  0x4c   :  { %6641 = vst [vmem:[#allocation61_spill] sm:$0xff] %v2991_v10  ;;  %v314_v10 = vmul.f32 1.442695, %v2604_v25  ;;  %v6650_v25 = vand.u32 2147483647, %v2570_v11  ;;  %v43_v11 = vld [vmem:[%s6204_s0 + $0xe8] sm:$0xff] }
  0x4d   :  { %6643 = vst [vmem:[#allocation62_spill] sm:$0xff] %v2995_v59  ;;  %v263_v59 = vand.u32 2147483647, %v2910_v63  ;;  %v266_v63 = vand.u32 2147483647, %v2957_v57  ;;  %v3044_v2 = vand.u32 1, %v6647_v56 }
  0x4e   :  { %6645 = vst [vmem:[#allocation63_spill] sm:$0xff] %v3036_v6  ;;  %v269_v57 = vand.u32 2147483647, %v3001_v53  ;;  %v286_v43 = vsub.f32 0.0, %v6650_v25  ;;  %v6651_v56 = vand.u32 2147483647, %v2575_v13  ;;  %2011 = vpow2.f32 %v314_v10 }
  0x4f   :  { %6648 = vst [vmem:[#allocation64_spill] sm:$0xff] %v3044_v2  ;;  %v288_v28 = vsub.f32 0.0, %v6652_v35  ;;  %v273_v13 = vand.u32 2147483647, %v3053_v60  ;;  %2013 = vpow2.f32 %v316_v31  ;;  %v45_v25 = vld [vmem:[%s6204_s0 + $0xf8] sm:$0xff]  ;;  %v292_v60 = vsub.f32 0.0, %v260_v27 }
  0x50   :  { %v287_v53 = vsub.f32 0.0, %v6651_v56  ;;  %v290_v56 = vsub.f32 0.0, %v258_v26  ;;  %2015 = vpow2.f32 %v318_v32  ;;  %v326_v14 = vmul.f32 1.442695, %v286_v43  ;;  %6663 = vst [vmem:[#allocation75_spill] sm:$0xff] %v3196_v4 }
  0x51   :  { %v275_v10 = vand.u32 2147483647, %v43_v11  ;;  %2017 = vpow2.f32 %v320_v20  ;;  %v276_v2 = vand.u32 2147483647, %v44_v47  ;;  %v330_v22 = vmul.f32 1.442695, %v288_v28 }
  0x52   :  { %v328_v35 = vmul.f32 1.442695, %v287_v53  ;;  %2019 = vpow2.f32 %v322_v19  ;;  %v277_v31 = vand.u32 2147483647, %v45_v25  ;;  %v293_v6 = vsub.f32 0.0, %v261_v17  ;;  %6664 = vst [vmem:[#allocation76_spill] sm:$0xff] %v3201_v5 }
  0x53   :  { %2021 = vpow2.f32 %v324_v36  ;;  %v294_v26 = vsub.f32 0.0, %v262_v21  ;;  %v295_v43 = vsub.f32 0.0, %v263_v59  ;;  %v334_v15 = vmul.f32 1.442695, %v290_v56  ;;  %6665 = vst [vmem:[#allocation77_spill] sm:$0xff] %v3213_v16 }
  0x54   :  { %v3086_v8 = vpop.eup %2011  ;;  %2023 = vpow2.f32 %v326_v14  ;;  %v296_v53 = vsub.f32 0.0, %v264_v42  ;;  %v297_v20 = vsub.f32 0.0, %v265_v58  ;;  %v336_v27 = vmul.f32 1.442695, %v291_v51  ;;  %6666 = vst [vmem:[#allocation78_spill] sm:$0xff] %v3218_v34 }
  0x55   :  { %v3088_v32 = vpop.eup %2013  ;;  %2025 = vpow2.f32 %v328_v35  ;;  %v298_v28 = vsub.f32 0.0, %v266_v63  ;;  %v299_v19 = vsub.f32 0.0, %v267_v38  ;;  %v338_v17 = vmul.f32 1.442695, %v292_v60  ;;  %6667 = vst [vmem:[#allocation79_spill] sm:$0xff] %v3230_v40 }
  0x56   :  { %v3090_v11 = vpop.eup %2015  ;;  %2027 = vpow2.f32 %v330_v22  ;;  %v300_v50 = vsub.f32 0.0, %v268_v39  ;;  %v301_v36 = vsub.f32 0.0, %v269_v57  ;;  %v340_v59 = vmul.f32 1.442695, %v293_v6  ;;  %6688 = vst [vmem:[#allocation98_spill] sm:$0xff] %v3513_v45 }
  0x57   :  { %v3092_v47 = vpop.eup %2017  ;;  %2029 = vpow2.f32 %v332_v54  ;;  %v302_v25 = vsub.f32 0.0, %v270_v7  ;;  %v303_v56 = vsub.f32 0.0, %v271_v30  ;;  %v342_v58 = vmul.f32 1.442695, %v294_v26 }
  0x58   :  { %v3094_v21 = vpop.eup %2019  ;;  %2031 = vpow2.f32 %v334_v15  ;;  %v304_v14 = vsub.f32 0.0, %v272_v49  ;;  %v305_v51 = vsub.f32 0.0, %v273_v13  ;;  %v344_v38 = vmul.f32 1.442695, %v295_v43 }
  0x59   :  { %v3096_v42 = vpop.eup %2021  ;;  %2033 = vpow2.f32 %v336_v27  ;;  %v306_v35 = vsub.f32 0.0, %v274_v29  ;;  %v307_v60 = vsub.f32 0.0, %v275_v10  ;;  %v346_v39 = vmul.f32 1.442695, %v296_v53 }
  0x5a   :  { %v3098_v63 = vpop.eup %2023  ;;  %2035 = vpow2.f32 %v338_v17  ;;  %v308_v6 = vsub.f32 0.0, %v276_v2  ;;  %v309_v57 = vsub.f32 0.0, %v277_v31  ;;  %v348_v7 = vmul.f32 1.442695, %v297_v20  ;;  %v3111_v2 = vld [vmem:[%s6206_s1] sm:$0xff]  ;;  %v3116_v31 = vld [vmem:[%s6206_s1 + $0x8] sm:$0xff] }
  0x5b   :  { %v3100_v54 = vpop.eup %2025  ;;  %2037 = vpow2.f32 %v340_v59  ;;  %v350_v22 = vmul.f32 1.442695, %v298_v28  ;;  %v352_v49 = vmul.f32 1.442695, %v299_v19  ;;  %v354_v13 = vmul.f32 1.442695, %v300_v50 }
  0x5c   :  { %v3102_v30 = vpop.eup %2027  ;;  %2039 = vpow2.f32 %v342_v58  ;;  %v356_v43 = vmul.f32 1.442695, %v301_v36  ;;  %v358_v29 = vmul.f32 1.442695, %v302_v25  ;;  %v360_v10 = vmul.f32 1.442695, %v303_v56 }
  0x5d   :  { %v3104_v26 = vpop.eup %2029  ;;  %2041 = vpow2.f32 %v344_v38  ;;  %6653 = vst [vmem:[#allocation65_spill] sm:$0xff] %v3111_v2  ;;  %v362_v53 = vmul.f32 1.442695, %v304_v14  ;;  %v364_v20 = vmul.f32 1.442695, %v305_v51  ;;  %v3123_v19 = vld [vmem:[%s6206_s1 + $0x10] sm:$0xff] }
  0x5e   :  { %v3106_v15 = vpop.eup %2031  ;;  %6654 = vst [vmem:[#allocation66_spill] sm:$0xff] %v3116_v31  ;;  %2043 = vpow2.f32 %v346_v39  ;;  %v366_v27 = vmul.f32 1.442695, %v306_v35  ;;  %v3125_v17 = vmul.f32 1.442695, %v307_v60  ;;  %v3136_v25 = vld [vmem:[%s6206_s1 + $0x18] sm:$0xff] }
  0x5f   :  { %v3118_v28 = vpop.eup %2033  ;;  %6655 = vst [vmem:[#allocation67_spill] sm:$0xff] %v3123_v19  ;;  %2045 = vpow2.f32 %v348_v7  ;;  %v3127_v50 = vmul.f32 1.442695, %v308_v6  ;;  %v3129_v36 = vmul.f32 1.442695, %v309_v57  ;;  %v3141_v56 = vld [vmem:[%s6206_s1 + $0x20] sm:$0xff] }
  0x60   :  { %v3131_v59 = vpop.eup %2035  ;;  %6656 = vst [vmem:[#allocation68_spill] sm:$0xff] %v3136_v25  ;;  %v3146_v58 = vld [vmem:[%s6206_s1 + $0x28] sm:$0xff]  ;;  %2047 = vpow2.f32 %v350_v22  ;;  %v3149_v14 = vadd.f32 1.0, %v3082_v52  ;;  %v3152_v51 = vadd.f32 1.0, %v3084_v24  ;;  %v3155_v38 = vadd.f32 1.0, %v3086_v8  ;;  %v3162_v60 = vld [vmem:[%s6206_s1 + $0x30] sm:$0xff] }
  0x61   :  { %6657 = vst [vmem:[#allocation69_spill] sm:$0xff] %v3141_v56  ;;  %v3157_v35 = vpop.eup %2037  ;;  %v3167_v39 = vld [vmem:[%s6206_s1 + $0x38] sm:$0xff]  ;;  %2049 = vpow2.f32 %v352_v49  ;;  %v3170_v52 = vadd.f32 1.0, %v3088_v32  ;;  %v470_v24 = vand.u32 2147483647, %v3111_v2  ;;  %v3179_v57 = vld [vmem:[%s6206_s1 + $0x40] sm:$0xff] }
  0x62   :  { %6658 = vst [vmem:[#allocation70_spill] sm:$0xff] %v3146_v58  ;;  %v471_v8 = vand.u32 2147483647, %v3116_v31  ;;  %v3174_v6 = vpop.eup %2039  ;;  %v3184_v7 = vld [vmem:[%s6206_s1 + $0x48] sm:$0xff]  ;;  %2051 = vpow2.f32 %v354_v13  ;;  %v3187_v32 = vadd.f32 1.0, %v3090_v11  ;;  %v3204_v11 = vadd.f32 1.0, %v3092_v47 }
  0x63   :  { %6659 = vst [vmem:[#allocation71_spill] sm:$0xff] %v3162_v60  ;;  %v472_v22 = vand.u32 2147483647, %v3123_v19  ;;  %v473_v49 = vand.u32 2147483647, %v3136_v25  ;;  %v3191_v55 = vpop.eup %2041  ;;  %2053 = vpow2.f32 %v356_v43  ;;  %v3221_v47 = vadd.f32 1.0, %v3094_v21 }
  0x64   :  { %6660 = vst [vmem:[#allocation72_spill] sm:$0xff] %v3167_v39  ;;  %v474_v13 = vand.u32 2147483647, %v3141_v56  ;;  %v475_v9 = vand.u32 2147483647, %v3146_v58  ;;  %v3208_v12 = vpop.eup %2043  ;;  %2055 = vpow2.f32 %v358_v29  ;;  %v3233_v44 = vadd.f32 1.0, %v3096_v42 }
  0x65   :  { %6661 = vst [vmem:[#allocation73_spill] sm:$0xff] %v3179_v57  ;;  %v476_v43 = vand.u32 2147483647, %v3162_v60  ;;  %v477_v23 = vand.u32 2147483647, %v3167_v39  ;;  %v3225_v18 = vpop.eup %2045  ;;  %2057 = vpow2.f32 %v360_v10  ;;  %v3242_v39 = vld [vmem:[%s6206_s1 + $0x78] sm:$0xff] }
  0x66   :  { %6662 = vst [vmem:[#allocation74_spill] sm:$0xff] %v3184_v7  ;;  %v478_v29 = vand.u32 2147483647, %v3179_v57  ;;  %v479_v21 = vand.u32 2147483647, %v3184_v7  ;;  %v3237_v58 = vpop.eup %2047  ;;  %2059 = vpow2.f32 %v362_v53  ;;  %v3245_v60 = vadd.f32 1.0, %v3098_v63 }
  0x67   :  { %6668 = vst [vmem:[#allocation80_spill] sm:$0xff] %v3242_v39  ;;  %v480_v10 = vand.u32 2147483647, %v3196_v4  ;;  %v481_v42 = vand.u32 2147483647, %v3201_v5  ;;  %v3249_v48 = vpop.eup %2049  ;;  %v3254_v7 = vld [vmem:[%s6206_s1 + $0x80] sm:$0xff]  ;;  %2061 = vpow2.f32 %v364_v20 }
  0x68   :  { %6669 = vst [vmem:[#allocation81_spill] sm:$0xff] %v3254_v7  ;;  %v3257_v57 = vadd.f32 1.0, %v3100_v54  ;;  %v482_v53 = vand.u32 2147483647, %v3213_v16  ;;  %v483_v63 = vand.u32 2147483647, %v3218_v34  ;;  %v3261_v56 = vpop.eup %2051  ;;  %2063 = vpow2.f32 %v366_v27 }
  0x69   :  { %v3266_v5 = vld [vmem:[%s6206_s1 + $0x88] sm:$0xff]  ;;  %v3269_v4 = vadd.f32 1.0, %v3102_v30  ;;  %v484_v20 = vand.u32 2147483647, %v3230_v40  ;;  %v3273_v61 = vpop.eup %2053  ;;  %2065 = vpow2.f32 %v3125_v17  ;;  %v3277_v34 = vadd.f32 1.0, %v3104_v26  ;;  %v3286_v30 = vld [vmem:[%s6206_s1 + $0x90] sm:$0xff] }
  0x6a   :  { %6670 = vst [vmem:[#allocation82_spill] sm:$0xff] %v3266_v5  ;;  %v486_v16 = vand.u32 2147483647, %v3254_v7  ;;  %v3281_v62 = vpop.eup %2055  ;;  %2067 = vpow2.f32 %v3127_v50  ;;  %v3290_v27 = vadd.f32 1.0, %v3106_v15  ;;  %v3292_v17 = vsub.f32 0.0, %v470_v24  ;;  %v3310_v15 = vld [vmem:[%s6206_s1 + $0x98] sm:$0xff] }
  0x6b   :  { %6671 = vst [vmem:[#allocation83_spill] sm:$0xff] %v3286_v30  ;;  %v3294_v26 = vsub.f32 0.0, %v471_v8  ;;  %v3296_v54 = vpop.eup %2057  ;;  %2069 = vpow2.f32 %v3129_v36  ;;  %v3300_v25 = vadd.f32 1.0, %v3118_v28  ;;  %v488_v7 = vand.u32 2147483647, %v3286_v30 }
  0x6c   :  { %v3303_v40 = vsub.f32 0.0, %v472_v22  ;;  %v3305_v19 = vpop.eup %2059  ;;  %6672 = vst [vmem:[#allocation84_spill] sm:$0xff] %v3310_v15  ;;  %v3313_v50 = vadd.f32 1.0, %v3131_v59  ;;  %2071 = vlog2.f32 %v3149_v14  ;;  %v3316_v36 = vsub.f32 0.0, %v473_v49  ;;  %v3334_v59 = vld [vmem:[%s6206_s1 + $0xa0] sm:$0xff] }
  0x6d   :  { %v3318_v28 = vsub.f32 0.0, %v474_v13  ;;  %v3320_v24 = vpop.eup %2061  ;;  %v3323_v8 = vadd.f32 1.0, %v3157_v35  ;;  %2073 = vlog2.f32 %v3152_v51  ;;  %v489_v22 = vand.u32 2147483647, %v3310_v15  ;;  %6673 = vst [vmem:[#allocation85_spill] sm:$0xff] %v3334_v59 }
  0x6e   :  { %v3327_v30 = vsub.f32 0.0, %v475_v9  ;;  %v3329_v3 = vpop.eup %2063  ;;  %v3337_v14 = vadd.f32 1.0, %v3174_v6  ;;  %2075 = vlog2.f32 %v3155_v38  ;;  %v3340_v35 = vsub.f32 0.0, %v476_v43  ;;  %v3358_v38 = vld [vmem:[%s6206_s1 + $0xa8] sm:$0xff] }
  0x6f   :  { %v3342_v49 = vsub.f32 0.0, %v477_v23  ;;  %v3344_v51 = vpop.eup %2065  ;;  %v3347_v9 = vadd.f32 1.0, %v3191_v55  ;;  %2077 = vlog2.f32 %v3170_v52  ;;  %v490_v13 = vand.u32 2147483647, %v3334_v59  ;;  %6674 = vst [vmem:[#allocation86_spill] sm:$0xff] %v3358_v38 }
  0x70   :  { %v3351_v15 = vsub.f32 0.0, %v478_v29  ;;  %v3353_v31 = vpop.eup %2067  ;;  %v3361_v23 = vadd.f32 1.0, %v3208_v12  ;;  %2079 = vlog2.f32 %v3187_v32  ;;  %v3364_v55 = vsub.f32 0.0, %v479_v21  ;;  %v3382_v12 = vld [vmem:[%s6206_s1 + $0xb0] sm:$0xff] }
  0x71   :  { %v3366_v6 = vsub.f32 0.0, %v480_v10  ;;  %v3368_v52 = vpop.eup %2069  ;;  %v3371_v43 = vadd.f32 1.0, %v3225_v18  ;;  %2081 = vlog2.f32 %v3204_v11  ;;  %v491_v29 = vand.u32 2147483647, %v3358_v38  ;;  %6675 = vst [vmem:[#allocation87_spill] sm:$0xff] %v3382_v12 }
  0x72   :  { %v3375_v59 = vsub.f32 0.0, %v481_v42  ;;  %v3377_v2 = vpop.eup %2071  ;;  %v3385_v32 = vadd.f32 1.0, %v3237_v58  ;;  %2083 = vlog2.f32 %v3221_v47  ;;  %v3388_v18 = vsub.f32 0.0, %v482_v53  ;;  %v3406_v58 = vld [vmem:[%s6206_s1 + $0xb8] sm:$0xff] }
  0x73   :  { %v3390_v21 = vsub.f32 0.0, %v483_v63  ;;  %v3392_v11 = vpop.eup %2073  ;;  %v3395_v10 = vadd.f32 1.0, %v3249_v48  ;;  %2085 = vlog2.f32 %v3233_v44  ;;  %v492_v42 = vand.u32 2147483647, %v3382_v12  ;;  %6676 = vst [vmem:[#allocation88_spill] sm:$0xff] %v3406_v58 }
  0x74   :  { %v3399_v38 = vsub.f32 0.0, %v484_v20  ;;  %v3401_v37 = vpop.eup %2075  ;;  %v3409_v47 = vadd.f32 1.0, %v3261_v56  ;;  %2087 = vlog2.f32 %v3245_v60  ;;  %v6677_v48 = vand.u32 2147483647, %v3242_v39  ;;  %v3423_v20 = vld [vmem:[%s6206_s1 + $0xc0] sm:$0xff]  ;;  %v3439_v39 = vld [vmem:[%s6206_s1 + $0xc8] sm:$0xff] }
  0x75   :  { %v3416_v44 = vsub.f32 0.0, %v486_v16  ;;  %v3418_v63 = vpop.eup %2077  ;;  %6678 = vst [vmem:[#allocation89_spill] sm:$0xff] %v3423_v20  ;;  %v3426_v12 = vadd.f32 1.0, %v3273_v61  ;;  %2089 = vlog2.f32 %v3257_v57  ;;  %v493_v56 = vand.u32 2147483647, %v3406_v58 }
  0x76   :  { %v3414_v53 = vsub.f32 0.0, %v6677_v48  ;;  %v6679_v60 = vand.u32 2147483647, %v3266_v5  ;;  %v3434_v16 = vpop.eup %2079  ;;  %6680 = vst [vmem:[#allocation90_spill] sm:$0xff] %v3439_v39  ;;  %v3442_v33 = vadd.f32 1.0, %v3281_v62  ;;  %2091 = vlog2.f32 %v3269_v4 }
  0x77   :  { %v494_v61 = vand.u32 2147483647, %v3423_v20  ;;  %v3446_v57 = vsub.f32 0.0, %v488_v7  ;;  %v3448_v58 = vpop.eup %2081  ;;  %2093 = vlog2.f32 %v3277_v34  ;;  %v495_v5 = vand.u32 2147483647, %v3439_v39  ;;  %v3472_v34 = vld [vmem:[%s6206_s1 + $0xd0] sm:$0xff] }
  0x78   :  { %v3432_v48 = vsub.f32 0.0, %v6679_v60  ;;  %v3451_v60 = vadd.f32 1.0, %v3296_v54  ;;  %v3455_v1 = vsub.f32 0.0, %v489_v22  ;;  %v3457_v0 = vpop.eup %2083  ;;  %v3460_v62 = vadd.f32 1.0, %v3305_v19  ;;  %6681 = vst [vmem:[#allocation91_spill] sm:$0xff] %v3472_v34  ;;  %v3508_v39 = vld [vmem:[%s6206_s1 + $0xe8] sm:$0xff] }
  0x79   :  { %2095 = vlog2.f32 %v3290_v27  ;;  %v3463_v4 = vsub.f32 0.0, %v490_v13  ;;  %v3465_v7 = vsub.f32 0.0, %v491_v29  ;;  %v3467_v20 = vpop.eup %2085  ;;  %v3475_v54 = vadd.f32 1.0, %v3320_v24  ;;  %v3487_v13 = vld [vmem:[%s6206_s1 + $0xd8] sm:$0xff]  ;;  %v3492_v29 = vld [vmem:[%s6206_s1 + $0xe0] sm:$0xff]  ;;  %6687 = vst [vmem:[#allocation97_spill] sm:$0xff] %v3508_v39 }
  0x7a   :  { %2097 = vlog2.f32 %v3300_v25  ;;  %v3478_v19 = vsub.f32 0.0, %v492_v42  ;;  %v3480_v22 = vsub.f32 0.0, %v493_v56  ;;  %v3482_v27 = vpop.eup %2087  ;;  %6684 = vst [vmem:[#allocation94_spill] sm:$0xff] %v3487_v13  ;;  %v3495_v24 = vadd.f32 1.0, %v3329_v3 }
  0x7b   :  { %6685 = vst [vmem:[#allocation95_spill] sm:$0xff] %v3492_v29  ;;  %2099 = vlog2.f32 %v3313_v50  ;;  %v3498_v25 = vsub.f32 0.0, %v494_v61  ;;  %v3501_v42 = vmul.f32 1.442695, %v3292_v17  ;;  %v3503_v56 = vpop.eup %2089  ;;  %v3516_v3 = vadd.f32 1.0, %v3344_v51 }
  0x7c   :  { %6682 = vst [vmem:[#allocation92_spill] sm:$0xff] %v3478_v19  ;;  %2101 = vlog2.f32 %v3323_v8  ;;  %v496_v17 = vand.u32 2147483647, %v3472_v34  ;;  %v3520_v50 = vsub.f32 0.0, %v495_v5  ;;  %v2092_v61 = vpop.eup %2091  ;;  %v497_v51 = vand.u32 2147483647, %v3487_v13 }
  0x7d   :  { %6683 = vst [vmem:[#allocation93_spill] sm:$0xff] %v3480_v22  ;;  %v3528_v22 = vadd.f32 1.0, %v3353_v31  ;;  %2103 = vlog2.f32 %v3337_v14  ;;  %v498_v46 = vand.u32 2147483647, %v3492_v29  ;;  %v2094_v8 = vpop.eup %2093  ;;  %v499_v5 = vand.u32 2147483647, %v3508_v39 }
  0x7e   :  { %6686 = vst [vmem:[#allocation96_spill] sm:$0xff] %v3498_v25  ;;  %v3525_v25 = vld [vmem:[%s6206_s1 + $0xf8] sm:$0xff]  ;;  %2105 = vlog2.f32 %v3347_v9  ;;  %v500_v34 = vand.u32 2147483647, %v3513_v45  ;;  %v3540_v31 = vadd.f32 1.0, %v3368_v52 }
  0x7f   :  { %6689 = vst [vmem:[#allocation99_spill] sm:$0xff] %v3520_v50  ;;  %v3537_v50 = vmul.f32 1.442695, %v3294_v26  ;;  %v2096_v19 = vpop.eup %2095  ;;  %2107 = vlog2.f32 %v3361_v23  ;;  %v501_v14 = vand.u32 2147483647, %v3525_v25  ;;  %v3554_v26 = vsub.f32 0.0, %v496_v17 }
  0x80   :  { %6690 = vst [vmem:[#allocation100_spill] sm:$0xff] %v3525_v25  ;;  %v3545_v29 = vmul.f32 1.442695, %v3303_v40  ;;  %v2098_v13 = vpop.eup %2097  ;;  %v3548_v9 = vmul.f32 0.6931472, %v3377_v2  ;;  %2109 = vlog2.f32 %v3371_v43  ;;  %v3560_v23 = vsub.f32 0.0, %v497_v51 }
  0x81   :  { %v3551_v45 = vmul.f32 0.6931472, %v3392_v11  ;;  %v2100_v52 = vpop.eup %2099  ;;  %v3557_v39 = vmul.f32 0.6931472, %v3401_v37  ;;  %2111 = vlog2.f32 %v3385_v32  ;;  %v3562_v40 = vsub.f32 0.0, %v498_v46 }
  0x82   :  { %6691 = vst [vmem:[#allocation101_spill] sm:$0xff] %v3548_v9  ;;  %v2102_v25 = vpop.eup %2101  ;;  %v3565_v2 = vmul.f32 0.6931472, %v3418_v63  ;;  %2113 = vlog2.f32 %v3395_v10  ;;  %v3568_v11 = vsub.f32 0.0, %v499_v5  ;;  %v3570_v43 = vsub.f32 0.0, %v500_v34 }
  0x83   :  { %6692 = vst [vmem:[#allocation102_spill] sm:$0xff] %v3551_v45  ;;  %v2104_v17 = vpop.eup %2103  ;;  %v3573_v37 = vmul.f32 0.6931472, %v3434_v16  ;;  %2115 = vlog2.f32 %v3409_v47  ;;  %v3576_v32 = vsub.f32 0.0, %v501_v14  ;;  %v3579_v46 = vmul.f32 1.442695, %v3316_v36 }
  0x84   :  { %6693 = vst [vmem:[#allocation103_spill] sm:$0xff] %v3557_v39  ;;  %v2106_v51 = vpop.eup %2105  ;;  %v3582_v63 = vmul.f32 0.6931472, %v3448_v58  ;;  %2117 = vlog2.f32 %v3426_v12  ;;  %v3586_v10 = vmul.f32 1.442695, %v3318_v28 }
  0x85   :  { %6694 = vst [vmem:[#allocation104_spill] sm:$0xff] %v3565_v2  ;;  %v3589_v34 = vmul.f32 1.442695, %v3327_v30  ;;  %v2108_v16 = vpop.eup %2107  ;;  %v3592_v47 = vmul.f32 0.6931472, %v3457_v0  ;;  %2119 = vlog2.f32 %v3442_v33 }
  0x86   :  { %6695 = vst [vmem:[#allocation105_spill] sm:$0xff] %v3573_v37  ;;  %v3596_v36 = vmul.f32 1.442695, %v3340_v35  ;;  %v3599_v58 = vmul.f32 1.442695, %v3342_v49  ;;  %v2110_v5 = vpop.eup %2109  ;;  %2121 = vlog2.f32 %v3451_v60 }
  0x87   :  { %6696 = vst [vmem:[#allocation106_spill] sm:$0xff] %v3582_v63  ;;  %v3602_v12 = vmul.f32 0.6931472, %v3467_v20  ;;  %v3606_v30 = vmul.f32 1.442695, %v3351_v15  ;;  %v2112_v28 = vpop.eup %2111  ;;  %2123 = vlog2.f32 %v3460_v62 }
  0x88   :  { %6697 = vst [vmem:[#allocation107_spill] sm:$0xff] %v3592_v47  ;;  %v3609_v0 = vmul.f32 1.442695, %v3364_v55  ;;  %v3612_v33 = vmul.f32 0.6931472, %v3482_v27  ;;  %v2114_v20 = vpop.eup %2113  ;;  %2125 = vlog2.f32 %v3475_v54 }
  0x89   :  { %6698 = vst [vmem:[#allocation108_spill] sm:$0xff] %v3602_v12  ;;  %v3616_v35 = vmul.f32 1.442695, %v3366_v6  ;;  %v3619_v49 = vmul.f32 1.442695, %v3375_v59  ;;  %v2116_v27 = vpop.eup %2115  ;;  %2127 = vlog2.f32 %v3495_v24 }
  0x8a   :  { %6699 = vst [vmem:[#allocation109_spill] sm:$0xff] %v3612_v33  ;;  %v3622_v60 = vmul.f32 0.6931472, %v3503_v56  ;;  %v3626_v15 = vmul.f32 1.442695, %v3388_v18  ;;  %v2118_v56 = vpop.eup %2117  ;;  %2129 = vlog2.f32 %v3516_v3 }
  0x8b   :  { %v3629_v55 = vmul.f32 1.442695, %v3390_v21  ;;  %v3631_v62 = vmul.f32 0.6931472, %v2092_v61  ;;  %v3635_v59 = vmul.f32 1.442695, %v3399_v38  ;;  %v2120_v54 = vpop.eup %2119  ;;  %2131 = vlog2.f32 %v3528_v22 }
  0x8c   :  { %6700 = vst [vmem:[#allocation110_spill] sm:$0xff] %v3622_v60  ;;  %v3638_v6 = vmul.f32 1.442695, %v3414_v53  ;;  %v3640_v14 = vmul.f32 0.6931472, %v2094_v8  ;;  %v2122_v24 = vpop.eup %2121  ;;  %2133 = vlog2.f32 %v3540_v31  ;;  %v6708_v31 = vld [vmem:[#allocation34_spill] sm:$0xff] }
  0x8d   :  { %6701 = vst [vmem:[#allocation111_spill] sm:$0xff] %v3631_v62  ;;  %v3644_v18 = vmul.f32 1.442695, %v3416_v44  ;;  %v3647_v21 = vmul.f32 1.442695, %v3432_v48  ;;  %2135 = vpow2.f32 %v3501_v42  ;;  %vm215_vm1 = vcmp.eq.s32.totalorder %v6708_v31, 1 }
  0x8e   :  { %6702 = vst [vmem:[#allocation112_spill] sm:$0xff] %v3640_v14  ;;  %v3649_v61 = vmul.f32 0.6931472, %v2096_v19  ;;  %v3653_v38 = vmul.f32 1.442695, %v3446_v57  ;;  %v2124_v19 = vpop.eup %2123  ;;  %2137 = vpow2.f32 %v3537_v50 }
  0x8f   :  { %v3656_v53 = vmul.f32 1.442695, %v3455_v1  ;;  %v3658_v8 = vmul.f32 0.6931472, %v2098_v13  ;;  %v3662_v44 = vmul.f32 1.442695, %v3463_v4  ;;  %v2126_v3 = vpop.eup %2125  ;;  %2139 = vpow2.f32 %v3545_v29 }
  0x90   :  { %6703 = vst [vmem:[#allocation113_spill] sm:$0xff] %v3649_v61  ;;  %v3665_v48 = vmul.f32 1.442695, %v3465_v7  ;;  %v3668_v22 = vmul.f32 0.6931472, %v2100_v52  ;;  %v6707_v1 = vld [vmem:[#allocation92_spill] sm:$0xff]  ;;  %2141 = vpow2.f32 %v3579_v46 }
  0x91   :  { %6704 = vst [vmem:[#allocation114_spill] sm:$0xff] %v3658_v8  ;;  %v3670_v57 = vmul.f32 0.6931472, %v2102_v25  ;;  %v3674_v13 = vmul.f32 1.442695, %v6707_v1  ;;  %v6710_v7 = vld [vmem:[#allocation93_spill] sm:$0xff]  ;;  %v2128_v25 = vpop.eup %2127  ;;  %2143 = vpow2.f32 %v3586_v10 }
  0x92   :  { %6705 = vst [vmem:[#allocation115_spill] sm:$0xff] %v3668_v22  ;;  %v3677_v4 = vmul.f32 0.6931472, %v2104_v17  ;;  %v3681_v8 = vmul.f32 1.442695, %v6710_v7  ;;  %v6711_v61 = vld [vmem:[#allocation96_spill] sm:$0xff]  ;;  %2145 = vpow2.f32 %v3589_v34 }
  0x93   :  { %6706 = vst [vmem:[#allocation116_spill] sm:$0xff] %v3670_v57  ;;  %v3684_v52 = vmul.f32 1.442695, %v6711_v61  ;;  %v6712_v57 = vld [vmem:[#allocation35_spill] sm:$0xff]  ;;  %v3687_v42 = vmul.f32 0.6931472, %v2106_v51  ;;  %2147 = vpow2.f32 %v3596_v36 }
  0x94   :  { %6709 = vst [vmem:[#allocation92_spill] sm:$0xff] %v3677_v4  ;;  %vm216_vm2 = vcmp.eq.s32.totalorder %v6712_v57, 1  ;;  %v3689_v1 = vmul.f32 0.6931472, %v2108_v16  ;;  %v6715_v22 = vld [vmem:[#allocation99_spill] sm:$0xff]  ;;  %v2130_v4 = vpop.eup %2129  ;;  %2149 = vpow2.f32 %v3599_v58 }
  0x95   :  { %6713 = vst [vmem:[#allocation34_spill] sm:$0xff] %v3687_v42  ;;  %v3693_v17 = vmul.f32 1.442695, %v6715_v22  ;;  %v3695_v50 = vmul.f32 0.6931472, %v2110_v5  ;;  %v2132_v51 = vpop.eup %2131  ;;  %v6717_v42 = vld [vmem:[#allocation36_spill] sm:$0xff]  ;;  %2151 = vpow2.f32 %v3606_v30 }
  0x96   :  { %6714 = vst [vmem:[#allocation93_spill] sm:$0xff] %v3689_v1  ;;  %v3699_v61 = vmul.f32 1.442695, %v3554_v26  ;;  %v3702_v7 = vmul.f32 1.442695, %v3560_v23  ;;  %vm217_vm3 = vcmp.eq.s32.totalorder %v6717_v42, 1  ;;  %v2134_v22 = vpop.eup %2133  ;;  %2153 = vpow2.f32 %v3609_v0 }
  0x97   :  { %6716 = vst [vmem:[#allocation96_spill] sm:$0xff] %v3695_v50  ;;  %v3705_v16 = vmul.f32 0.6931472, %v2112_v28  ;;  %v3707_v29 = vmul.f32 0.6931472, %v2114_v20  ;;  %v2136_v28 = vpop.eup %2135  ;;  %v3751_v58 = vld [vmem:[%s6204_s0 + $0x8] sm:$0xff]  ;;  %2155 = vpow2.f32 %v3616_v35 }
  0x98   :  { %v3711_v5 = vmul.f32 1.442695, %v3562_v40  ;;  %v3713_v46 = vmul.f32 0.6931472, %v2116_v27  ;;  %v3717_v26 = vmul.f32 1.442695, %v3568_v11  ;;  %v2138_v27 = vpop.eup %2137  ;;  %2157 = vpow2.f32 %v3619_v49 }
  0x99   :  { %6718 = vst [vmem:[#allocation35_spill] sm:$0xff] %v3705_v16  ;;  %v3720_v23 = vmul.f32 1.442695, %v3570_v43  ;;  %v6721_v16 = vld [vmem:[#allocation37_spill] sm:$0xff]  ;;  %v3723_v20 = vmul.f32 0.6931472, %v2118_v56  ;;  %2159 = vpow2.f32 %v3626_v15 }
  0x9a   :  { %6719 = vst [vmem:[#allocation99_spill] sm:$0xff] %v3707_v29  ;;  %vm218_vm4 = vcmp.eq.s32.totalorder %v6721_v16, 1  ;;  %v3725_v10 = vmul.f32 0.6931472, %v2120_v54  ;;  %v3729_v40 = vmul.f32 1.442695, %v3576_v32  ;;  %v2140_v54 = vpop.eup %2139  ;;  %2161 = vpow2.f32 %v3629_v55 }
  0x9b   :  { %6720 = vst [vmem:[#allocation36_spill] sm:$0xff] %v3713_v46  ;;  %v3731_v34 = vmul.f32 0.6931472, %v2122_v24  ;;  %v3733_v11 = vmul.f32 0.6931472, %v2124_v19  ;;  %v3739_v43 = vld [vmem:[%s6204_s0] sm:$0xff]  ;;  %v2142_v19 = vpop.eup %2141  ;;  %2163 = vpow2.f32 %v3635_v59 }
  0x9c   :  { %6722 = vst [vmem:[#allocation37_spill] sm:$0xff] %v3723_v20  ;;  %v694_v56 = vsub.f32 0.0, %v3739_v43  ;;  %v3743_v36 = vmul.f32 0.6931472, %v2126_v3  ;;  %v3745_v32 = vmul.f32 0.6931472, %v2128_v25  ;;  %v2144_v25 = vpop.eup %2143  ;;  %2165 = vpow2.f32 %v3638_v6 }
  0x9d   :  { %6723 = vst [vmem:[#allocation117_spill] sm:$0xff] %v3725_v10  ;;  %v6727_v10 = vld [vmem:[#allocation38_spill] sm:$0xff]  ;;  %v695_v24 = vsub.f32 0.0, %v3751_v58  ;;  %v3762_v3 = vld [vmem:[%s6204_s0 + $0x10] sm:$0xff]  ;;  %v2146_v20 = vpop.eup %2145  ;;  %v3772_v0 = vadd.f32 1.0, %v2136_v28  ;;  %v3777_v46 = vld [vmem:[%s6204_s0 + $0x18] sm:$0xff]  ;;  %2167 = vpow2.f32 %v3644_v18 }
  0x9e   :  { %6724 = vst [vmem:[#allocation118_spill] sm:$0xff] %v3731_v34  ;;  %vm219_vm5 = vcmp.eq.s32.totalorder %v6727_v10, 1  ;;  %v3756_v34 = vmul.f32 0.6931472, %v2132_v51  ;;  %v696_v30 = vsub.f32 0.0, %v3762_v3  ;;  %v6737_v51 = vld [vmem:[#allocation66_spill] sm:$0xff]  ;;  %v3783_v35 = vsel %vm214_vm0, %v694_v56, %v3739_v43 }
  0x9f   :  { %6725 = vst [vmem:[#allocation119_spill] sm:$0xff] %v3733_v11  ;;  %v3754_v11 = vmul.f32 0.6931472, %v2130_v4  ;;  %v6736_v4 = vld [vmem:[#allocation65_spill] sm:$0xff]  ;;  %v697_v29 = vsub.f32 0.0, %v3777_v46  ;;  %v3787_v49 = vadd.f32 1.0, %v2138_v27  ;;  %v3792_v28 = vsel %vm215_vm1, %v695_v24, %v3751_v58 }
  0xa0   :  { %6726 = vst [vmem:[#allocation120_spill] sm:$0xff] %v3739_v43  ;;  %v6742_v50 = vld [vmem:[#allocation67_spill] sm:$0xff]  ;;  %v3796_v62 = vadd.f32 1.0, %v2140_v54  ;;  %v3801_v56 = vld [vmem:[%s6204_s0 + $0x20] sm:$0xff]  ;;  %v3807_v27 = vsel %vm216_vm2, %v696_v30, %v3762_v3  ;;  %v3811_v55 = vadd.f32 1.0, %v2142_v19  ;;  %v6746_v54 = vld [vmem:[#allocation68_spill] sm:$0xff]  ;;  %2169 = vpow2.f32 %v3647_v21 }
  0xa1   :  { %6728 = vst [vmem:[#allocation38_spill] sm:$0xff] %v3743_v36  ;;  %v3766_v36 = vmul.f32 0.6931472, %v2134_v22  ;;  %v2148_v22 = vpop.eup %2147  ;;  %v760_v1 = vsub.f32 0.0, %v6742_v50  ;;  %v698_v15 = vsub.f32 0.0, %v3801_v56  ;;  %v761_v43 = vsub.f32 0.0, %v6746_v54 }
  0xa2   :  { %6729 = vst [vmem:[#allocation121_spill] sm:$0xff] %v3745_v32  ;;  %v6734_v32 = vld [vmem:[#allocation39_spill] sm:$0xff]  ;;  %v2150_v14 = vpop.eup %2149  ;;  %v3820_v12 = vadd.f32 1.0, %v2144_v25  ;;  %v3831_v19 = vsel %vm217_vm3, %v697_v29, %v3777_v46  ;;  %v3835_v6 = vadd.f32 1.0, %v2146_v20  ;;  %v6751_v25 = vld [vmem:[#allocation69_spill] sm:$0xff]  ;;  %v3844_v47 = vadd.f32 1.0, %v2148_v22 }
  0xa3   :  { %6730 = vst [vmem:[#allocation122_spill] sm:$0xff] %v3751_v58  ;;  %vm220_vm6 = vcmp.eq.s32.totalorder %v6734_v32, 1  ;;  %v2152_v24 = vpop.eup %2151  ;;  %v6745_v58 = vld [vmem:[#allocation41_spill] sm:$0xff]  ;;  %v3825_v30 = vld [vmem:[%s6204_s0 + $0x28] sm:$0xff]  ;;  %v3849_v29 = vld [vmem:[%s6204_s0 + $0x30] sm:$0xff]  ;;  %v3855_v20 = vsel %vm218_vm4, %v698_v15, %v3801_v56  ;;  %2171 = vpow2.f32 %v3653_v38  ;;  %v3859_v21 = vadd.f32 1.0, %v2150_v14 }
  0xa4   :  { %6731 = vst [vmem:[#allocation123_spill] sm:$0xff] %v3754_v11  ;;  %v758_v11 = vsub.f32 0.0, %v6736_v4  ;;  %vm222_vm8 = vcmp.eq.s32.totalorder %v6745_v58, 1  ;;  %v2154_v33 = vpop.eup %2153  ;;  %v699_v59 = vsub.f32 0.0, %v3825_v30  ;;  %v700_v18 = vsub.f32 0.0, %v3849_v29  ;;  %v3873_v15 = vld [vmem:[%s6204_s0 + $0x38] sm:$0xff] }
  0xa5   :  { %6732 = vst [vmem:[#allocation124_spill] sm:$0xff] %v3756_v34  ;;  %v759_v34 = vsub.f32 0.0, %v6737_v51  ;;  %v2156_v41 = vpop.eup %2155  ;;  %2173 = vpow2.f32 %v3656_v53  ;;  %v3868_v63 = vadd.f32 1.0, %v2152_v24  ;;  %v701_v14 = vsub.f32 0.0, %v3873_v15 }
  0xa6   :  { %6733 = vst [vmem:[#allocation125_spill] sm:$0xff] %v3762_v3  ;;  %v3817_v60 = vsel %vm214_vm0, %v758_v11, %v6736_v4  ;;  %v6750_v11 = vld [vmem:[#allocation42_spill] sm:$0xff]  ;;  %v762_v4 = vsub.f32 0.0, %v6751_v25  ;;  %v3879_v38 = vsel %vm219_vm5, %v699_v59, %v3825_v30  ;;  %2175 = vpow2.f32 %v3662_v44 }
  0xa7   :  { %6735 = vst [vmem:[#allocation39_spill] sm:$0xff] %v3766_v36  ;;  %v6740_v36 = vld [vmem:[#allocation40_spill] sm:$0xff]  ;;  %vm223_vm9 = vcmp.eq.s32.totalorder %v6750_v11, 1  ;;  %v3841_v3 = vsel %vm215_vm1, %v759_v34, %v6737_v51  ;;  %v6755_v34 = vld [vmem:[#allocation43_spill] sm:$0xff]  ;;  %v6756_v51 = vld [vmem:[#allocation70_spill] sm:$0xff]  ;;  %v3883_v53 = vadd.f32 1.0, %v2154_v33  ;;  %2177 = vpow2.f32 %v3665_v48 }
  0xa8   :  { %6738 = vst [vmem:[#allocation65_spill] sm:$0xff] %v3777_v46  ;;  %vm221_vm7 = vcmp.eq.s32.totalorder %v6740_v36, 1  ;;  %vm224_vm10 = vcmp.eq.s32.totalorder %v6755_v34, 1  ;;  %v763_v22 = vsub.f32 0.0, %v6756_v51  ;;  %v3865_v46 = vsel %vm216_vm2, %v760_v1, %v6742_v50  ;;  %v6760_v1 = vld [vmem:[#allocation44_spill] sm:$0xff]  ;;  %v6761_v50 = vld [vmem:[#allocation71_spill] sm:$0xff] }
  0xa9   :  { %6739 = vst [vmem:[#allocation66_spill] sm:$0xff] %v3783_v35  ;;  %vm225_vm11 = vcmp.eq.s32.totalorder %v6760_v1, 1  ;;  %v764_v24 = vsub.f32 0.0, %v6761_v50  ;;  %v3892_v37 = vadd.f32 1.0, %v2156_v41  ;;  %v3897_v59 = vld [vmem:[%s6204_s0 + $0x40] sm:$0xff]  ;;  %v3903_v44 = vsel %vm220_vm6, %v700_v18, %v3849_v29  ;;  %v3921_v18 = vld [vmem:[%s6204_s0 + $0x48] sm:$0xff] }
  0xaa   :  { %6741 = vst [vmem:[#allocation40_spill] sm:$0xff] %v3792_v28  ;;  %v702_v33 = vsub.f32 0.0, %v3897_v59  ;;  %2179 = vpow2.f32 %v3674_v13  ;;  %v3927_v13 = vsel %vm221_vm7, %v701_v14, %v3873_v15  ;;  %v3945_v14 = vld [vmem:[%s6204_s0 + $0x50] sm:$0xff]  ;;  %v4208_v28 = vld [vmem:[%s6204_s0 + $0xc8] sm:$0xff] }
  0xab   :  { %6743 = vst [vmem:[#allocation67_spill] sm:$0xff] %v3801_v56  ;;  %v3889_v56 = vsel %vm217_vm3, %v761_v43, %v6746_v54  ;;  %v6765_v43 = vld [vmem:[#allocation45_spill] sm:$0xff]  ;;  %v6766_v54 = vld [vmem:[#allocation72_spill] sm:$0xff]  ;;  %2181 = vpow2.f32 %v3681_v8  ;;  %v719_v35 = vsub.f32 0.0, %v4208_v28 }
  0xac   :  { %6744 = vst [vmem:[#allocation126_spill] sm:$0xff] %v3807_v27  ;;  %vm226_vm12 = vcmp.eq.s32.totalorder %v6765_v43, 1  ;;  %v765_v41 = vsub.f32 0.0, %v6766_v54  ;;  %2183 = vpow2.f32 %v3684_v52  ;;  %v704_v52 = vsub.f32 0.0, %v3945_v14  ;;  %v6813_v43 = vld [vmem:[#allocation54_spill] sm:$0xff]  ;;  %v6838_v27 = vld [vmem:[#allocation64_spill] sm:$0xff] }
  0xad   :  { %6747 = vst [vmem:[#allocation41_spill] sm:$0xff] %v3817_v60  ;;  %v2158_v60 = vpop.eup %2157  ;;  %2185 = vpow2.f32 %v3693_v17 }
  0xae   :  { %6748 = vst [vmem:[#allocation68_spill] sm:$0xff] %v3825_v30  ;;  %v2160_v31 = vpop.eup %2159  ;;  %v3907_v48 = vadd.f32 1.0, %v2158_v60  ;;  %v3913_v30 = vsel %vm218_vm4, %v762_v4, %v6751_v25  ;;  %v703_v60 = vsub.f32 0.0, %v3921_v18  ;;  %v6770_v25 = vld [vmem:[#allocation46_spill] sm:$0xff]  ;;  %v6771_v4 = vld [vmem:[#allocation73_spill] sm:$0xff]  ;;  %2187 = vpow2.f32 %v3699_v61 }
  0xaf   :  { %6749 = vst [vmem:[#allocation127_spill] sm:$0xff] %v3831_v19  ;;  %v3916_v2 = vadd.f32 1.0, %v2160_v31  ;;  %vm227_vm13 = vcmp.eq.s32.totalorder %v6770_v25, 1  ;;  %v766_v31 = vsub.f32 0.0, %v6771_v4  ;;  %2189 = vpow2.f32 %v3702_v7 }
  0xb0   :  { %6752 = vst [vmem:[#allocation42_spill] sm:$0xff] %v3841_v3  ;;  %v2162_v3 = vpop.eup %2161  ;;  %2191 = vpow2.f32 %v3711_v5 }
  0xb1   :  { %6753 = vst [vmem:[#allocation69_spill] sm:$0xff] %v3849_v29  ;;  %v2164_v57 = vpop.eup %2163  ;;  %v3931_v8 = vadd.f32 1.0, %v2162_v3  ;;  %v3937_v29 = vsel %vm219_vm5, %v763_v22, %v6756_v51  ;;  %v3951_v3 = vsel %vm222_vm8, %v702_v33, %v3897_v59  ;;  %v6775_v51 = vld [vmem:[#allocation47_spill] sm:$0xff]  ;;  %v6776_v22 = vld [vmem:[#allocation74_spill] sm:$0xff]  ;;  %v3969_v33 = vld [vmem:[%s6204_s0 + $0x58] sm:$0xff]  ;;  %2193 = vpow2.f32 %v3717_v26 }
  0xb2   :  { %6754 = vst [vmem:[#allocation128_spill] sm:$0xff] %v3855_v20  ;;  %v3940_v39 = vadd.f32 1.0, %v2164_v57  ;;  %vm228_vm14 = vcmp.eq.s32.totalorder %v6775_v51, 1  ;;  %v767_v57 = vsub.f32 0.0, %v6776_v22  ;;  %v705_v61 = vsub.f32 0.0, %v3969_v33 }
  0xb3   :  { %6757 = vst [vmem:[#allocation43_spill] sm:$0xff] %v3865_v46  ;;  %v2166_v46 = vpop.eup %2165  ;;  %2195 = vpow2.f32 %v3720_v23  ;;  %vm235_vm5 = vcmp.eq.s32.totalorder %v6813_v43, 1 }
  0xb4   :  { %6758 = vst [vmem:[#allocation70_spill] sm:$0xff] %v3873_v15  ;;  %v2168_v42 = vpop.eup %2167  ;;  %v3955_v17 = vadd.f32 1.0, %v2166_v46  ;;  %v3961_v15 = vsel %vm220_vm6, %v764_v24, %v6761_v50  ;;  %v3975_v46 = vsel %vm223_vm9, %v703_v60, %v3921_v18  ;;  %v6780_v50 = vld [vmem:[#allocation48_spill] sm:$0xff]  ;;  %v6781_v24 = vld [vmem:[#allocation75_spill] sm:$0xff]  ;;  %v3993_v60 = vld [vmem:[%s6204_s0 + $0x60] sm:$0xff]  ;;  %2197 = vpow2.f32 %v3729_v40 }
  0xb5   :  { %6759 = vst [vmem:[#allocation129_spill] sm:$0xff] %v3879_v38  ;;  %v3964_v45 = vadd.f32 1.0, %v2168_v42  ;;  %vm6375_vm15 = vcmp.eq.s32.totalorder %v6780_v50, 1  ;;  %v768_v42 = vsub.f32 0.0, %v6781_v24  ;;  %v706_v5 = vsub.f32 0.0, %v3993_v60  ;;  %v6790_v40 = vld [vmem:[#allocation77_spill] sm:$0xff] }
  0xb6   :  { %6762 = vst [vmem:[#allocation44_spill] sm:$0xff] %v3889_v56  ;;  %v2170_v56 = vpop.eup %2169  ;;  %2199 = vlog2.f32 %v3772_v0  ;;  %v4192_v38 = vld [vmem:[%s6204_s0 + $0xb8] sm:$0xff] }
  0xb7   :  { %6763 = vst [vmem:[#allocation71_spill] sm:$0xff] %v3897_v59  ;;  %v2172_v16 = vpop.eup %2171  ;;  %v3979_v7 = vadd.f32 1.0, %v2170_v56  ;;  %v3985_v59 = vsel %vm221_vm7, %v765_v41, %v6766_v54  ;;  %v3999_v56 = vsel %vm224_vm10, %v704_v52, %v3945_v14  ;;  %v6785_v54 = vld [vmem:[#allocation49_spill] sm:$0xff]  ;;  %v6786_v41 = vld [vmem:[#allocation76_spill] sm:$0xff]  ;;  %v4017_v52 = vld [vmem:[%s6204_s0 + $0x68] sm:$0xff]  ;;  %2201 = vlog2.f32 %v3787_v49 }
  0xb8   :  { %6764 = vst [vmem:[#allocation130_spill] sm:$0xff] %v3903_v44  ;;  %v3988_v9 = vadd.f32 1.0, %v2172_v16  ;;  %vm6374_vm0 = vcmp.eq.s32.totalorder %v6785_v54, 1  ;;  %v769_v16 = vsub.f32 0.0, %v6786_v41  ;;  %v707_v23 = vsub.f32 0.0, %v4017_v52 }
  0xb9   :  { %6767 = vst [vmem:[#allocation45_spill] sm:$0xff] %v3913_v30  ;;  %v2174_v30 = vpop.eup %2173  ;;  %v4046_v0 = vsel %vm226_vm12, %v706_v5, %v3993_v60  ;;  %2203 = vlog2.f32 %v3796_v62  ;;  %v4055_v49 = vsel %vm224_vm10, %v768_v42, %v6781_v24  ;;  %v4063_v5 = vld [vmem:[%s6204_s0 + $0x78] sm:$0xff]  ;;  %v717_v20 = vsub.f32 0.0, %v4192_v38 }
  0xba   :  { %6768 = vst [vmem:[#allocation72_spill] sm:$0xff] %v3921_v18  ;;  %v2176_v10 = vpop.eup %2175  ;;  %v4003_v26 = vadd.f32 1.0, %v2174_v30  ;;  %v4009_v18 = vsel %vm222_vm8, %v766_v31, %v6771_v4  ;;  %v4023_v30 = vsel %vm225_vm11, %v705_v61, %v3969_v33  ;;  %v770_v31 = vsub.f32 0.0, %v6790_v40  ;;  %v4040_v61 = vld [vmem:[%s6204_s0 + $0x70] sm:$0xff] }
  0xbb   :  { %6769 = vst [vmem:[#allocation131_spill] sm:$0xff] %v3927_v13  ;;  %2205 = vlog2.f32 %v3811_v55  ;;  %v4069_v62 = vsel %vm227_vm13, %v707_v23, %v4017_v52  ;;  %v4078_v55 = vsel %vm225_vm11, %v769_v16, %v6786_v41  ;;  %v4086_v23 = vld [vmem:[%s6204_s0 + $0x80] sm:$0xff]  ;;  %v6804_v16 = vld [vmem:[#allocation51_spill] sm:$0xff] }
  0xbc   :  { %6772 = vst [vmem:[#allocation46_spill] sm:$0xff] %v3937_v29  ;;  %v2178_v29 = vpop.eup %2177  ;;  %2207 = vlog2.f32 %v3820_v12  ;;  %v6803_v41 = vld [vmem:[#allocation50_spill] sm:$0xff]  ;;  %vm232_vm2 = vcmp.eq.s32.totalorder %v6804_v16, 1 }
  0xbd   :  { %6773 = vst [vmem:[#allocation73_spill] sm:$0xff] %v3945_v14  ;;  %v2180_v32 = vpop.eup %2179  ;;  %v4025_v4 = vadd.f32 1.0, %v2178_v29  ;;  %v708_v29 = vsub.f32 0.0, %v4040_v61  ;;  %2209 = vlog2.f32 %v3835_v6  ;;  %vm231_vm1 = vcmp.eq.s32.totalorder %v6803_v41, 1  ;;  %v6833_v13 = vld [vmem:[#allocation62_spill] sm:$0xff] }
  0xbe   :  { %6774 = vst [vmem:[#allocation132_spill] sm:$0xff] %v3951_v3  ;;  %2211 = vlog2.f32 %v3844_v47  ;;  %v4468_v16 = vld [vmem:[%s6206_s1 + $0xa0] sm:$0xff] }
  0xbf   :  { %6777 = vst [vmem:[#allocation74_spill] sm:$0xff] %v3961_v15  ;;  %v2182_v15 = vpop.eup %2181  ;;  %v4092_v12 = vsel %vm228_vm14, %v708_v29, %v4040_v61  ;;  %v6809_v29 = vld [vmem:[#allocation53_spill] sm:$0xff]  ;;  %2213 = vlog2.f32 %v3859_v21 }
  0xc0   :  { %6778 = vst [vmem:[#allocation133_spill] sm:$0xff] %v3969_v33  ;;  %v2184_v36 = vpop.eup %2183  ;;  %vm234_vm4 = vcmp.eq.s32.totalorder %v6809_v29, 1  ;;  %2215 = vlog2.f32 %v3868_v63  ;;  %v4136_v63 = vld [vmem:[%s6204_s0 + $0x88] sm:$0xff] }
  0xc1   :  { %6779 = vst [vmem:[#allocation134_spill] sm:$0xff] %v3975_v46  ;;  %v4012_v46 = vadd.f32 1.0, %v2176_v10  ;;  %v4032_v10 = vsel %vm223_vm9, %v767_v57, %v6776_v22  ;;  %v4048_v22 = vadd.f32 1.0, %v2182_v15  ;;  %v6794_v57 = vld [vmem:[#allocation78_spill] sm:$0xff]  ;;  %v709_v15 = vsub.f32 0.0, %v4063_v5 }
  0xc2   :  { %6782 = vst [vmem:[#allocation75_spill] sm:$0xff] %v3985_v59  ;;  %v2186_v59 = vpop.eup %2185  ;;  %2217 = vlog2.f32 %v3883_v53  ;;  %v4152_v53 = vld [vmem:[%s6204_s0 + $0x90] sm:$0xff] }
  0xc3   :  { %6783 = vst [vmem:[#allocation135_spill] sm:$0xff] %v3993_v60  ;;  %v2188_v58 = vpop.eup %2187  ;;  %v4071_v24 = vadd.f32 1.0, %v2186_v59  ;;  %v710_v59 = vsub.f32 0.0, %v4086_v23  ;;  %v4115_v47 = vsel %vm6375_vm15, %v709_v15, %v4063_v5  ;;  %v6819_v15 = vld [vmem:[#allocation57_spill] sm:$0xff]  ;;  %2219 = vlog2.f32 %v3892_v37 }
  0xc4   :  { %6784 = vst [vmem:[#allocation136_spill] sm:$0xff] %v3999_v56  ;;  %v2190_v14 = vpop.eup %2189  ;;  %vm238_vm8 = vcmp.eq.s32.totalorder %v6819_v15, 1  ;;  %2221 = vlog2.f32 %v3907_v48  ;;  %vm6396_vm15 = vcmp.eq.s32.totalorder %v6838_v27, 1 }
  0xc5   :  { %6787 = vst [vmem:[#allocation76_spill] sm:$0xff] %v4009_v18  ;;  %v4034_v18 = vadd.f32 1.0, %v2180_v32  ;;  %v2192_v11 = vpop.eup %2191  ;;  %v771_v32 = vsub.f32 0.0, %v6794_v57  ;;  %v4142_v25 = vsel %vm6374_vm0, %v710_v59, %v4086_v23  ;;  %v4158_v59 = vld [vmem:[%s6204_s0 + $0x98] sm:$0xff]  ;;  %2223 = vlog2.f32 %v3916_v2  ;;  %v4202_v2 = vld [vmem:[%s6204_s0 + $0xc0] sm:$0xff] }
  0xc6   :  { %6788 = vst [vmem:[#allocation137_spill] sm:$0xff] %v4017_v52  ;;  %v2194_v33 = vpop.eup %2193  ;;  %v4103_v52 = vsel %vm226_vm12, %v770_v31, %v6790_v40  ;;  %v6814_v40 = vld [vmem:[#allocation55_spill] sm:$0xff]  ;;  %2225 = vlog2.f32 %v3931_v8  ;;  %v4217_v8 = vld [vmem:[%s6204_s0 + $0xd0] sm:$0xff] }
  0xc7   :  { %6789 = vst [vmem:[#allocation138_spill] sm:$0xff] %v4023_v30  ;;  %v2196_v34 = vpop.eup %2195  ;;  %vm236_vm6 = vcmp.eq.s32.totalorder %v6814_v40, 1  ;;  %v4126_v21 = vsel %vm227_vm13, %v771_v32, %v6794_v57  ;;  %v6823_v32 = vld [vmem:[#allocation58_spill] sm:$0xff]  ;;  %v4175_v30 = vld [vmem:[%s6204_s0 + $0xa8] sm:$0xff]  ;;  %vm243_vm13 = vcmp.eq.s32.totalorder %v6833_v13, 1  ;;  %2227 = vlog2.f32 %v3940_v39 }
  0xc8   :  { %6791 = vst [vmem:[#allocation77_spill] sm:$0xff] %v4032_v10  ;;  %v4057_v10 = vadd.f32 1.0, %v2184_v36  ;;  %v2198_v60 = vpop.eup %2197  ;;  %v4119_v31 = vadd.f32 1.0, %v2196_v34  ;;  %v711_v34 = vsub.f32 0.0, %v4136_v63  ;;  %vm239_vm9 = vcmp.eq.s32.totalorder %v6823_v32, 1  ;;  %v6824_v36 = vld [vmem:[#allocation59_spill] sm:$0xff] }
  0xc9   :  { %6792 = vst [vmem:[#allocation139_spill] sm:$0xff] %v4040_v61  ;;  %v2200_v1 = vpop.eup %2199  ;;  %v4107_v61 = vadd.f32 1.0, %v2192_v11  ;;  %vm240_vm10 = vcmp.eq.s32.totalorder %v6824_v36, 1  ;;  %v715_v56 = vsub.f32 0.0, %v4175_v30  ;;  %2229 = vlog2.f32 %v3955_v17  ;;  %v4232_v39 = vld [vmem:[%s6204_s0 + $0xe0] sm:$0xff]  ;;  %v4247_v17 = vld [vmem:[%s6204_s0 + $0xf0] sm:$0xff] }
  0xca   :  { %6793 = vst [vmem:[#allocation140_spill] sm:$0xff] %v4046_v0  ;;  %2231 = vlog2.f32 %v3964_v45  ;;  %v4262_v45 = vsel %vm231_vm1, %v711_v34, %v4136_v63  ;;  %v6925_v13 = vld [vmem:[#allocation126_spill] sm:$0xff] }
  0xcb   :  { %6795 = vst [vmem:[#allocation78_spill] sm:$0xff] %v4055_v49  ;;  %v4080_v49 = vadd.f32 1.0, %v2188_v58  ;;  %v4096_v58 = vadd.f32 1.0, %v2190_v14 }
  0xcc   :  { %6796 = vst [vmem:[#allocation141_spill] sm:$0xff] %v4063_v5  ;;  %v4130_v5 = vadd.f32 1.0, %v2198_v60  ;;  %v4146_v60 = vmul.f32 0.6931472, %v2200_v1  ;;  %v6829_v1 = vld [vmem:[#allocation61_spill] sm:$0xff] }
  0xcd   :  { %6797 = vst [vmem:[#allocation142_spill] sm:$0xff] %v4069_v62  ;;  %v6808_v62 = vld [vmem:[#allocation52_spill] sm:$0xff]  ;;  %vm242_vm12 = vcmp.eq.s32.totalorder %v6829_v1, 1  ;;  %v6922_v1 = vld [vmem:[#allocation66_spill] sm:$0xff] }
  0xce   :  { %6799 = vst [vmem:[#allocation143_spill] sm:$0xff] %v4078_v55  ;;  %v2202_v55 = vpop.eup %2201  ;;  %vm233_vm3 = vcmp.eq.s32.totalorder %v6808_v62, 1  ;;  %2233 = vlog2.f32 %v3979_v7  ;;  %v4478_v62 = vld [vmem:[%s6206_s1 + $0xa8] sm:$0xff] }
  0xcf   :  { %6800 = vst [vmem:[#allocation144_spill] sm:$0xff] %v4080_v49  ;;  %v2204_v14 = vpop.eup %2203  ;;  %v4163_v37 = vmul.f32 0.6931472, %v2202_v55  ;;  %v6834_v55 = vld [vmem:[#allocation63_spill] sm:$0xff]  ;;  %2235 = vlog2.f32 %v3988_v9 }
  0xd0   :  { %6801 = vst [vmem:[#allocation145_spill] sm:$0xff] %v4086_v23  ;;  %v713_v23 = vsub.f32 0.0, %v4158_v59  ;;  %vm244_vm0 = vcmp.eq.s32.totalorder %v6834_v55, 1  ;;  %v4180_v48 = vmul.f32 0.6931472, %v2204_v14  ;;  %v6927_v55 = vld [vmem:[#allocation128_spill] sm:$0xff] }
  0xd1   :  { %6802 = vst [vmem:[#allocation146_spill] sm:$0xff] %v4092_v12  ;;  %v4109_v12 = vadd.f32 1.0, %v2194_v33  ;;  %v2206_v33 = vpop.eup %2205  ;;  %2237 = vlog2.f32 %v4003_v26 }
  0xd2   :  { %6805 = vst [vmem:[#allocation50_spill] sm:$0xff] %v4096_v58  ;;  %v2208_v57 = vpop.eup %2207  ;;  %v4196_v14 = vmul.f32 0.6931472, %v2206_v33  ;;  %v720_v33 = vsub.f32 0.0, %v4217_v8  ;;  %2239 = vlog2.f32 %v4012_v46 }
  0xd3   :  { %6807 = vst [vmem:[#allocation51_spill] sm:$0xff] %v4103_v52  ;;  %v6818_v52 = vld [vmem:[#allocation56_spill] sm:$0xff]  ;;  %v4211_v11 = vmul.f32 0.6931472, %v2208_v57  ;;  %v722_v57 = vsub.f32 0.0, %v4232_v39 }
  0xd4   :  { %6810 = vst [vmem:[#allocation52_spill] sm:$0xff] %v4107_v61  ;;  %vm237_vm7 = vcmp.eq.s32.totalorder %v6818_v52, 1 }
  0xd5   :  { %6811 = vst [vmem:[#allocation53_spill] sm:$0xff] %v4109_v12 }
  0xd6   :  { %6812 = vst [vmem:[#allocation147_spill] sm:$0xff] %v4115_v47  ;;  %v6828_v47 = vld [vmem:[#allocation60_spill] sm:$0xff] }
  0xd7   :  { %6815 = vst [vmem:[#allocation54_spill] sm:$0xff] %v4119_v31  ;;  %vm241_vm11 = vcmp.eq.s32.totalorder %v6828_v47, 1 }
  0xd8   :  { %6817 = vst [vmem:[#allocation55_spill] sm:$0xff] %v4126_v21  ;;  %v712_v21 = vsub.f32 0.0, %v4152_v53 }
  0xd9   :  { %6820 = vst [vmem:[#allocation56_spill] sm:$0xff] %v4130_v5 }
  0xda   :  { %6821 = vst [vmem:[#allocation57_spill] sm:$0xff] %v4136_v63 }
  0xdb   :  { %6822 = vst [vmem:[#allocation148_spill] sm:$0xff] %v4142_v25  ;;  %v2210_v25 = vpop.eup %2209  ;;  %2241 = vlog2.f32 %v4025_v4 }
  0xdc   :  { %6825 = vst [vmem:[#allocation58_spill] sm:$0xff] %v4146_v60  ;;  %v4169_v60 = vld [vmem:[%s6204_s0 + $0xa0] sm:$0xff]  ;;  %v2212_v3 = vpop.eup %2211  ;;  %v4226_v51 = vmul.f32 0.6931472, %v2210_v25  ;;  %v724_v25 = vsub.f32 0.0, %v4247_v17  ;;  %2243 = vlog2.f32 %v4034_v18 }
  0xdd   :  { %6826 = vst [vmem:[#allocation59_spill] sm:$0xff] %v4152_v53  ;;  %v714_v0 = vsub.f32 0.0, %v4169_v60  ;;  %v2214_v19 = vpop.eup %2213  ;;  %v4241_v31 = vmul.f32 0.6931472, %v2212_v3  ;;  %v4267_v3 = vsel %vm232_vm2, %v712_v21, %v4152_v53  ;;  %2245 = vlog2.f32 %v4048_v22  ;;  %v6866_v22 = vld [vmem:[#allocation82_spill] sm:$0xff] }
  0xde   :  { %6827 = vst [vmem:[#allocation149_spill] sm:$0xff] %v4158_v59  ;;  %v2216_v54 = vpop.eup %2215  ;;  %v4256_v58 = vmul.f32 0.6931472, %v2214_v19  ;;  %v4275_v19 = vsel %vm233_vm3, %v713_v23, %v4158_v59  ;;  %v4345_v18 = vsel %vm244_vm0, %v724_v25, %v4247_v17  ;;  %2247 = vlog2.f32 %v4057_v10  ;;  %v6871_v10 = vld [vmem:[#allocation144_spill] sm:$0xff]  ;;  %v6880_v59 = vld [vmem:[#allocation89_spill] sm:$0xff]  ;;  %v6881_v53 = vld [vmem:[#allocation90_spill] sm:$0xff] }
  0xdf   :  { %6830 = vst [vmem:[#allocation60_spill] sm:$0xff] %v4163_v37  ;;  %v4186_v37 = vld [vmem:[%s6204_s0 + $0xb0] sm:$0xff]  ;;  %v2218_v6 = vpop.eup %2217  ;;  %v4269_v49 = vmul.f32 0.6931472, %v2216_v54  ;;  %v4280_v7 = vsel %vm234_vm4, %v714_v0, %v4169_v60  ;;  %v4288_v54 = vsel %vm235_vm5, %v715_v56, %v4175_v30  ;;  %v4301_v0 = vsel %vm237_vm7, %v717_v20, %v4192_v38 }
  0xe0   :  { %6831 = vst [vmem:[#allocation61_spill] sm:$0xff] %v4169_v60  ;;  %v716_v44 = vsub.f32 0.0, %v4186_v37  ;;  %v2220_v5 = vpop.eup %2219  ;;  %v4282_v63 = vmul.f32 0.6931472, %v2218_v6  ;;  %v4319_v20 = vsel %vm240_vm10, %v720_v33, %v4217_v8  ;;  %2249 = vlog2.f32 %v4071_v24 }
  0xe1   :  { %6832 = vst [vmem:[#allocation150_spill] sm:$0xff] %v4175_v30  ;;  %v2222_v61 = vpop.eup %2221  ;;  %v4295_v21 = vmul.f32 0.6931472, %v2220_v5  ;;  %2251 = vlog2.f32 %v6871_v10  ;;  %v6877_v30 = vld [vmem:[#allocation88_spill] sm:$0xff]  ;;  %v782_v10 = vsub.f32 0.0, %v6880_v59 }
  0xe2   :  { %6835 = vst [vmem:[#allocation62_spill] sm:$0xff] %v4180_v48  ;;  %v718_v48 = vsub.f32 0.0, %v4202_v2  ;;  %v4293_v9 = vsel %vm236_vm6, %v716_v44, %v4186_v37  ;;  %v4308_v6 = vmul.f32 0.6931472, %v2222_v61  ;;  %v4314_v44 = vsel %vm239_vm9, %v719_v35, %v4208_v28 }
  0xe3   :  { %6836 = vst [vmem:[#allocation63_spill] sm:$0xff] %v4186_v37  ;;  %v4332_v35 = vsel %vm242_vm12, %v722_v57, %v4232_v39  ;;  %v6876_v37 = vld [vmem:[#allocation87_spill] sm:$0xff] }
  0xe4   :  { %6837 = vst [vmem:[#allocation151_spill] sm:$0xff] %v4192_v38  ;;  %v4306_v56 = vsel %vm238_vm8, %v718_v48, %v4202_v2  ;;  %v780_v24 = vsub.f32 0.0, %v6876_v37 }
  0xe5   :  { %6839 = vst [vmem:[#allocation64_spill] sm:$0xff] %v4196_v14  ;;  %v4223_v14 = vld [vmem:[%s6204_s0 + $0xd8] sm:$0xff] }
  0xe6   :  { %6840 = vst [vmem:[#allocation152_spill] sm:$0xff] %v4202_v2  ;;  %v721_v50 = vsub.f32 0.0, %v4223_v14 }
  0xe7   :  { %6841 = vst [vmem:[#allocation153_spill] sm:$0xff] %v4208_v28  ;;  %v6872_v28 = vld [vmem:[#allocation85_spill] sm:$0xff] }
  0xe8   :  { %6842 = vst [vmem:[#allocation154_spill] sm:$0xff] %v4211_v11  ;;  %v4238_v11 = vld [vmem:[%s6204_s0 + $0xe8] sm:$0xff]  ;;  %v4327_v61 = vsel %vm241_vm11, %v721_v50, %v4223_v14  ;;  %v778_v2 = vsub.f32 0.0, %v6872_v28  ;;  %v783_v28 = vsub.f32 0.0, %v6881_v53 }
  0xe9   :  { %6843 = vst [vmem:[#allocation155_spill] sm:$0xff] %v4217_v8  ;;  %v723_v42 = vsub.f32 0.0, %v4238_v11 }
  0xea   :  { %6844 = vst [vmem:[#allocation156_spill] sm:$0xff] %v4223_v14 }
  0xeb   :  { %6845 = vst [vmem:[#allocation157_spill] sm:$0xff] %v4226_v51  ;;  %v4253_v51 = vld [vmem:[%s6204_s0 + $0xf8] sm:$0xff] }
  0xec   :  { %6846 = vst [vmem:[#allocation158_spill] sm:$0xff] %v4232_v39  ;;  %v725_v12 = vsub.f32 0.0, %v4253_v51 }
  0xed   :  { %6847 = vst [vmem:[#allocation159_spill] sm:$0xff] %v4238_v11 }
  0xee   :  { %6848 = vst [vmem:[#allocation160_spill] sm:$0xff] %v4241_v31  ;;  %v2224_v31 = vpop.eup %2223  ;;  %v4353_v57 = vsel %vm6396_vm15, %v725_v12, %v4253_v51  ;;  %v6873_v12 = vld [vmem:[#allocation86_spill] sm:$0xff] }
  0xef   :  { %6849 = vst [vmem:[#allocation161_spill] sm:$0xff] %v4247_v17  ;;  %v2226_v34 = vpop.eup %2225  ;;  %v4321_v5 = vmul.f32 0.6931472, %v2224_v31  ;;  %v4340_v31 = vsel %vm243_vm13, %v723_v42, %v4238_v11  ;;  %v6868_v11 = vld [vmem:[#allocation83_spill] sm:$0xff]  ;;  %v6869_v17 = vld [vmem:[#allocation84_spill] sm:$0xff] }
  0xf0   :  { %6850 = vst [vmem:[#allocation162_spill] sm:$0xff] %v4253_v51  ;;  %v2228_v23 = vpop.eup %2227  ;;  %v4334_v48 = vmul.f32 0.6931472, %v2226_v34  ;;  %v775_v34 = vsub.f32 0.0, %v6866_v22  ;;  %v776_v25 = vsub.f32 0.0, %v6868_v11  ;;  %v777_v14 = vsub.f32 0.0, %v6869_v17 }
  0xf1   :  { %6851 = vst [vmem:[#allocation163_spill] sm:$0xff] %v4256_v58  ;;  %v2230_v26 = vpop.eup %2229  ;;  %v4347_v33 = vmul.f32 0.6931472, %v2228_v23  ;;  %v779_v51 = vsub.f32 0.0, %v6873_v12  ;;  %v781_v11 = vsub.f32 0.0, %v6877_v30  ;;  %v6893_v58 = vld [vmem:[#allocation100_spill] sm:$0xff] }
  0xf2   :  { %6852 = vst [vmem:[#allocation164_spill] sm:$0xff] %v4269_v49  ;;  %v2232_v46 = vpop.eup %2231  ;;  %v4356_v42 = vmul.f32 0.6931472, %v2230_v26  ;;  %v6875_v26 = vld [vmem:[#allocation50_spill] sm:$0xff] }
  0xf3   :  { %6853 = vst [vmem:[#allocation165_spill] sm:$0xff] %v4282_v63  ;;  %v2234_v4 = vpop.eup %2233  ;;  %v4361_v8 = vmul.f32 0.6931472, %v2232_v46  ;;  %2253 = vlog2.f32 %v6875_v26  ;;  %v6879_v46 = vld [vmem:[#allocation52_spill] sm:$0xff]  ;;  %v4495_v29 = vsel %vm237_vm7, %v781_v11, %v6877_v30 }
  0xf4   :  { %6854 = vst [vmem:[#allocation166_spill] sm:$0xff] %v4295_v21  ;;  %v2236_v50 = vpop.eup %2235  ;;  %v4366_v22 = vmul.f32 0.6931472, %v2234_v4  ;;  %2255 = vlog2.f32 %v6879_v46  ;;  %v6883_v4 = vld [vmem:[#allocation53_spill] sm:$0xff] }
  0xf5   :  { %6855 = vst [vmem:[#allocation167_spill] sm:$0xff] %v4308_v6  ;;  %v2238_v39 = vpop.eup %2237  ;;  %v4371_v17 = vmul.f32 0.6931472, %v2236_v50  ;;  %2257 = vlog2.f32 %v6883_v4  ;;  %v6887_v50 = vld [vmem:[#allocation54_spill] sm:$0xff]  ;;  %v6889_v6 = vld [vmem:[#allocation97_spill] sm:$0xff] }
  0xf6   :  { %6856 = vst [vmem:[#allocation168_spill] sm:$0xff] %v4314_v44  ;;  %v2240_v23 = vpop.eup %2239  ;;  %v4376_v12 = vmul.f32 0.6931472, %v2238_v39  ;;  %2259 = vlog2.f32 %v6887_v50  ;;  %v787_v21 = vsub.f32 0.0, %v6889_v6  ;;  %v6891_v39 = vld [vmem:[#allocation56_spill] sm:$0xff]  ;;  %v6896_v50 = vld [vmem:[#allocation79_spill] sm:$0xff] }
  0xf7   :  { %6857 = vst [vmem:[#allocation169_spill] sm:$0xff] %v4319_v20  ;;  %v2242_v38 = vpop.eup %2241  ;;  %2261 = vlog2.f32 %v6891_v39  ;;  %v4408_v39 = vld [vmem:[%s6206_s1 + $0x78] sm:$0xff] }
  0xf8   :  { %6858 = vst [vmem:[#allocation170_spill] sm:$0xff] %v4321_v5  ;;  %v2244_v60 = vpop.eup %2243  ;;  %v4381_v5 = vmul.f32 0.6931472, %v2240_v23  ;;  %v4386_v49 = vmul.f32 0.6931472, %v2242_v38  ;;  %v4396_v23 = vld [vmem:[%s6206_s1 + $0x70] sm:$0xff]  ;;  %v4529_v32 = vsel %vm243_vm13, %v787_v21, %v6889_v6 }
  0xf9   :  { %6859 = vst [vmem:[#allocation171_spill] sm:$0xff] %v4327_v61  ;;  %v824_v21 = vmax.f32 %v6925_v13, 0.0  ;;  %v6926_v6 = vld [vmem:[#allocation127_spill] sm:$0xff] }
  0xfa   :  { %6860 = vst [vmem:[#allocation172_spill] sm:$0xff] %v4332_v35 }
  0xfb   :  { %6861 = vst [vmem:[#allocation173_spill] sm:$0xff] %v4334_v48 }
  0xfc   :  { %6862 = vst [vmem:[#allocation174_spill] sm:$0xff] %v4340_v31  ;;  %v4391_v31 = vmul.f32 0.6931472, %v2244_v60  ;;  %v6901_v60 = vld [vmem:[#allocation80_spill] sm:$0xff] }
  0xfd   :  { %6863 = vst [vmem:[#allocation175_spill] sm:$0xff] %v4345_v18 }
  0xfe   :  { %6864 = vst [vmem:[#allocation176_spill] sm:$0xff] %v4347_v33 }
  0xff   :  { %6865 = vst [vmem:[#allocation177_spill] sm:$0xff] %v4353_v57  ;;  %v789_v57 = vsub.f32 0.0, %v6893_v58 }
 0x100   :  { %6867 = vst [vmem:[#allocation82_spill] sm:$0xff] %v4356_v42  ;;  %v6885_v42 = vld [vmem:[#allocation94_spill] sm:$0xff] }
 0x101   :  { %6870 = vst [vmem:[#allocation83_spill] sm:$0xff] %v4361_v8  ;;  %v2246_v8 = vpop.eup %2245  ;;  %v785_v33 = vsub.f32 0.0, %v6885_v42 }
 0x102   :  { %6874 = vst [vmem:[#allocation84_spill] sm:$0xff] %v4366_v22  ;;  %v6884_v22 = vld [vmem:[#allocation91_spill] sm:$0xff]  ;;  %v2248_v48 = vpop.eup %2247  ;;  %v4429_v44 = vmul.f32 0.6931472, %v2246_v8 }
 0x103   :  { %6878 = vst [vmem:[#allocation144_spill] sm:$0xff] %v4371_v17  ;;  %v784_v26 = vsub.f32 0.0, %v6884_v22  ;;  %v6888_v17 = vld [vmem:[#allocation95_spill] sm:$0xff]  ;;  %v2250_v63 = vpop.eup %2249  ;;  %v4517_v52 = vsel %vm241_vm11, %v785_v33, %v6885_v42 }
 0x104   :  { %6882 = vst [vmem:[#allocation85_spill] sm:$0xff] %v4376_v12  ;;  %v786_v46 = vsub.f32 0.0, %v6888_v17  ;;  %v6892_v12 = vld [vmem:[#allocation98_spill] sm:$0xff]  ;;  %v2252_v18 = vpop.eup %2251 }
 0x105   :  { %6886 = vst [vmem:[#allocation86_spill] sm:$0xff] %v4381_v5  ;;  %v788_v4 = vsub.f32 0.0, %v6892_v12  ;;  %v6897_v5 = vsub.f32 0.0, %v6896_v50  ;;  %v4420_v50 = vld [vmem:[%s6206_s1 + $0x80] sm:$0xff]  ;;  %v2254_v20 = vpop.eup %2253  ;;  %v4512_v40 = vsel %vm240_vm10, %v784_v26, %v6884_v22  ;;  %v825_v22 = vmax.f32 %v6926_v6, 0.0 }
 0x106   :  { %6890 = vst [vmem:[#allocation50_spill] sm:$0xff] %v4386_v49  ;;  %v6903_v49 = vld [vmem:[#allocation48_spill] sm:$0xff]  ;;  %v4502_v43 = vmul.f32 0.6931472, %v2254_v20  ;;  %v6937_v6 = vld [vmem:[#allocation142_spill] sm:$0xff] }
 0x107   :  { %6894 = vst [vmem:[#allocation87_spill] sm:$0xff] %v4391_v31  ;;  %v4403_v38 = vsel %vm228_vm14, %v6897_v5, %v4396_v23  ;;  %v6902_v31 = vsub.f32 0.0, %v6901_v60  ;;  %vm6904_vm15 = vcmp.eq.s32.totalorder %v6903_v49, 1  ;;  %v6906_v5 = vld [vmem:[#allocation81_spill] sm:$0xff]  ;;  %v4434_v49 = vld [vmem:[%s6206_s1 + $0x88] sm:$0xff]  ;;  %v4444_v60 = vld [vmem:[%s6206_s1 + $0x90] sm:$0xff]  ;;  %v4534_v36 = vsel %vm244_vm0, %v788_v4, %v6892_v12 }
 0x108   :  { %6895 = vst [vmem:[#allocation88_spill] sm:$0xff] %v4396_v23  ;;  %v6907_v35 = vsub.f32 0.0, %v6906_v5  ;;  %v6908_v23 = vld [vmem:[#allocation49_spill] sm:$0xff]  ;;  %v4449_v8 = vsel %vm232_vm2, %v776_v25, %v4444_v60  ;;  %v4461_v5 = vmul.f32 0.6931472, %v2248_v48  ;;  %v4473_v25 = vsel %vm234_vm4, %v778_v2, %v4468_v16  ;;  %v6923_v20 = vld [vmem:[#allocation40_spill] sm:$0xff] }
 0x109   :  { %6899 = vst [vmem:[#allocation52_spill] sm:$0xff] %v4403_v38  ;;  %v4415_v61 = vsel %vm6904_vm15, %v6902_v31, %v4408_v39  ;;  %vm6909_vm14 = vcmp.eq.s32.totalorder %v6908_v23, 1  ;;  %v4439_v31 = vsel %vm231_vm1, %v775_v34, %v4434_v49  ;;  %v4454_v23 = vld [vmem:[%s6206_s1 + $0x98] sm:$0xff]  ;;  %v2256_v34 = vpop.eup %2255  ;;  %v4485_v48 = vmul.f32 0.6931472, %v2252_v18  ;;  %v6932_v12 = vld [vmem:[#allocation132_spill] sm:$0xff] }
 0x10a   :  { %6900 = vst [vmem:[#allocation89_spill] sm:$0xff] %v4408_v39  ;;  %v4427_v38 = vsel %vm6909_vm14, %v6907_v35, %v4420_v50  ;;  %v4459_v41 = vsel %vm233_vm3, %v777_v14, %v4454_v23  ;;  %v4463_v35 = vmul.f32 0.6931472, %v2250_v63  ;;  %v4483_v63 = vsel %vm235_vm5, %v779_v51, %v4478_v62  ;;  %v2258_v14 = vpop.eup %2257  ;;  %v6945_v39 = vld [vmem:[#allocation174_spill] sm:$0xff] }
 0x10b   :  { %6905 = vst [vmem:[#allocation90_spill] sm:$0xff] %v4420_v50  ;;  %v4500_v2 = vsel %vm238_vm8, %v782_v10, %v6880_v59  ;;  %v2260_v51 = vpop.eup %2259  ;;  %v4507_v18 = vsel %vm239_vm9, %v783_v28, %v6881_v53  ;;  %v4519_v15 = vmul.f32 0.6931472, %v2256_v34  ;;  %v4524_v59 = vsel %vm242_vm12, %v786_v46, %v6888_v17  ;;  %v6929_v17 = vld [vmem:[#allocation129_spill] sm:$0xff]  ;;  %v6930_v28 = vld [vmem:[#allocation130_spill] sm:$0xff]  ;;  %v6934_v34 = vld [vmem:[#allocation136_spill] sm:$0xff] }
 0x10c   :  { %6910 = vst [vmem:[#allocation53_spill] sm:$0xff] %v4434_v49  ;;  %v2262_v30 = vpop.eup %2261  ;;  %v4536_v47 = vmul.f32 0.6931472, %v2258_v14  ;;  %vm6921_vm15 = vcmp.eq.s32.totalorder %v6838_v27, 1  ;;  %v823_v33 = vmax.f32 %v6923_v20, 0.0  ;;  %v827_v10 = vmax.f32 %v6929_v17, 0.0 }
 0x10d   :  { %6911 = vst [vmem:[#allocation91_spill] sm:$0xff] %v4444_v60  ;;  %v4541_v53 = vsel %vm6921_vm15, %v789_v57, %v6893_v58  ;;  %v4545_v42 = vmul.f32 0.6931472, %v2260_v51  ;;  %v4550_v11 = vmul.f32 0.6931472, %v2262_v30  ;;  %v828_v27 = vmax.f32 %v6930_v28, 0.0 }
 0x10e   :  { %6912 = vst [vmem:[#allocation94_spill] sm:$0xff] %v4454_v23  ;;  %v4490_v23 = vsel %vm236_vm6, %v780_v24, %v6876_v37  ;;  %v822_v37 = vmax.f32 %v6922_v1, 0.0  ;;  %v826_v24 = vmax.f32 %v6927_v55, 0.0  ;;  %v6931_v58 = vld [vmem:[#allocation131_spill] sm:$0xff]  ;;  %v830_v26 = vmax.f32 %v6932_v12, 0.0  ;;  %v6933_v46 = vld [vmem:[#allocation134_spill] sm:$0xff] }
 0x10f   :  { %6913 = vst [vmem:[#allocation54_spill] sm:$0xff] %v4461_v5  ;;  %v829_v57 = vmax.f32 %v6931_v58, 0.0  ;;  %v831_v4 = vmax.f32 %v6933_v46, 0.0  ;;  %v832_v14 = vmax.f32 %v6934_v34, 0.0  ;;  %v6935_v51 = vld [vmem:[#allocation138_spill] sm:$0xff]  ;;  %v6936_v20 = vld [vmem:[#allocation140_spill] sm:$0xff] }
 0x110   :  { %6914 = vst [vmem:[#allocation95_spill] sm:$0xff] %v4463_v35  ;;  %v833_v1 = vmax.f32 %v6935_v51, 0.0  ;;  %v834_v13 = vmax.f32 %v6936_v20, 0.0  ;;  %v835_v55 = vmax.f32 %v6937_v6, 0.0  ;;  %v6938_v30 = vld [vmem:[#allocation146_spill] sm:$0xff]  ;;  %v839_v58 = vmax.f32 %v4262_v45, 0.0 }
 0x111   :  { %6915 = vst [vmem:[#allocation97_spill] sm:$0xff] %v4468_v16  ;;  %v840_v12 = vmax.f32 %v4267_v3, 0.0  ;;  %v841_v46 = vmax.f32 %v4275_v19, 0.0  ;;  %v842_v34 = vmax.f32 %v4280_v7, 0.0  ;;  %v843_v51 = vmax.f32 %v4288_v54, 0.0  ;;  %v6941_v16 = vld [vmem:[#allocation168_spill] sm:$0xff] }
 0x112   :  { %6916 = vst [vmem:[#allocation56_spill] sm:$0xff] %v4478_v62  ;;  %v6940_v62 = vld [vmem:[#allocation148_spill] sm:$0xff]  ;;  %v844_v20 = vmax.f32 %v4293_v9, 0.0  ;;  %v845_v6 = vmax.f32 %v4301_v0, 0.0  ;;  %v6942_v60 = vld [vmem:[#allocation169_spill] sm:$0xff]  ;;  %v6943_v49 = vld [vmem:[#allocation171_spill] sm:$0xff] }
 0x113   :  { %6917 = vst [vmem:[#allocation98_spill] sm:$0xff] %v4485_v48  ;;  %v838_v28 = vmax.f32 %v6940_v62, 0.0  ;;  %v848_v62 = vmax.f32 %v6942_v60, 0.0  ;;  %v849_v45 = vmax.f32 %v6943_v49, 0.0  ;;  %v6944_v50 = vld [vmem:[#allocation172_spill] sm:$0xff]  ;;  %v851_v19 = vmax.f32 %v6945_v39, 0.0 }
 0x114   :  { %6918 = vst [vmem:[#allocation100_spill] sm:$0xff] %v4502_v43  ;;  %v850_v3 = vmax.f32 %v6944_v50, 0.0  ;;  %v6948_v43 = vld [vmem:[#allocation101_spill] sm:$0xff]  ;;  %v6949_v0 = vld [vmem:[#allocation102_spill] sm:$0xff]  ;;  %v6951_v60 = vld [vmem:[#allocation104_spill] sm:$0xff] }
 0x115   :  { %6919 = vst [vmem:[#allocation79_spill] sm:$0xff] %v4519_v15  ;;  %v4580_v9 = vadd.f32 %v822_v37, %v6948_v43  ;;  %v4583_v48 = vadd.f32 %v823_v33, %v6949_v0  ;;  %v4589_v35 = vadd.f32 %v825_v22, %v6951_v60  ;;  %v6952_v49 = vld [vmem:[#allocation105_spill] sm:$0xff]  ;;  %v6953_v39 = vld [vmem:[#allocation106_spill] sm:$0xff]  ;;  %v6954_v7 = vld [vmem:[#allocation107_spill] sm:$0xff] }
 0x116   :  { %6920 = vst [vmem:[#allocation47_spill] sm:$0xff] %v4536_v47  ;;  %v4592_v50 = vadd.f32 %v826_v24, %v6952_v49  ;;  %v4595_v5 = vadd.f32 %v827_v10, %v6953_v39  ;;  %v4598_v54 = vadd.f32 %v828_v27, %v6954_v7  ;;  %v6955_v43 = vld [vmem:[#allocation108_spill] sm:$0xff]  ;;  %v6956_v33 = vld [vmem:[#allocation109_spill] sm:$0xff]  ;;  %v6958_v22 = vld [vmem:[#allocation111_spill] sm:$0xff] }
 0x117   :  { %6924 = vst [vmem:[#allocation80_spill] sm:$0xff] %v4545_v42  ;;  %v6939_v42 = vld [vmem:[#allocation147_spill] sm:$0xff]  ;;  %v4601_v37 = vadd.f32 %v829_v57, %v6955_v43  ;;  %v4604_v0 = vadd.f32 %v830_v26, %v6956_v33  ;;  %v4610_v60 = vadd.f32 %v832_v14, %v6958_v22  ;;  %v6959_v24 = vld [vmem:[#allocation112_spill] sm:$0xff]  ;;  %v6960_v10 = vld [vmem:[#allocation113_spill] sm:$0xff] }
 0x118   :  { %6928 = vst [vmem:[#allocation48_spill] sm:$0xff] %v4550_v11  ;;  %v836_v11 = vmax.f32 %v6938_v30, 0.0  ;;  %v837_v17 = vmax.f32 %v6939_v42, 0.0  ;;  %v846_v30 = vmax.f32 %v4306_v56, 0.0  ;;  %v847_v42 = vmax.f32 %v6941_v16, 0.0  ;;  %v6950_v56 = vld [vmem:[#allocation103_spill] sm:$0xff] }
 0x119   :  { %v4586_v16 = vadd.f32 %v824_v21, %v6950_v56  ;;  %v6957_v21 = vld [vmem:[#allocation110_spill] sm:$0xff]  ;;  %v4613_v49 = vadd.f32 %v833_v1, %v6959_v24  ;;  %v4616_v39 = vadd.f32 %v834_v13, %v6960_v10  ;;  %v6962_v57 = vld [vmem:[#allocation115_spill] sm:$0xff]  ;;  %v6963_v26 = vld [vmem:[#allocation116_spill] sm:$0xff] }
 0x11a   :  { %v4607_v56 = vadd.f32 %v831_v4, %v6957_v21  ;;  %v6961_v27 = vld [vmem:[#allocation114_spill] sm:$0xff]  ;;  %v4622_v43 = vadd.f32 %v836_v11, %v6962_v57  ;;  %v4625_v33 = vadd.f32 %v837_v17, %v6963_v26  ;;  %v6965_v4 = vld [vmem:[#allocation92_spill] sm:$0xff]  ;;  %v6969_v1 = vld [vmem:[#allocation93_spill] sm:$0xff] }
 0x11b   :  { %v4619_v7 = vadd.f32 %v835_v55, %v6961_v27  ;;  %v4628_v21 = vadd.f32 %v838_v28, %v6965_v4  ;;  %v6967_v14 = vld [vmem:[#allocation34_spill] sm:$0xff]  ;;  %v4634_v24 = vadd.f32 %v840_v12, %v6969_v1  ;;  %v6971_v13 = vld [vmem:[#allocation96_spill] sm:$0xff]  ;;  %v6973_v55 = vld [vmem:[#allocation35_spill] sm:$0xff] }
 0x11c   :  { %6964 = vst [vmem:[#allocation81_spill] sm:$0xff] %v4625_v33  ;;  %v4631_v22 = vadd.f32 %v839_v58, %v6967_v14  ;;  %v4637_v10 = vadd.f32 %v841_v46, %v6971_v13  ;;  %v4640_v27 = vadd.f32 %v842_v34, %v6973_v55  ;;  %v6975_v11 = vld [vmem:[#allocation99_spill] sm:$0xff]  ;;  %v6977_v17 = vld [vmem:[#allocation36_spill] sm:$0xff]  ;;  %v6979_v28 = vld [vmem:[#allocation37_spill] sm:$0xff] }
 0x11d   :  { %6966 = vst [vmem:[#allocation49_spill] sm:$0xff] %v4628_v21  ;;  %v4643_v57 = vadd.f32 %v843_v51, %v6975_v11  ;;  %v4646_v26 = vadd.f32 %v844_v20, %v6977_v17  ;;  %v4649_v4 = vadd.f32 %v845_v6, %v6979_v28  ;;  %v6981_v58 = vld [vmem:[#allocation117_spill] sm:$0xff]  ;;  %v6983_v12 = vld [vmem:[#allocation118_spill] sm:$0xff]  ;;  %v6985_v46 = vld [vmem:[#allocation119_spill] sm:$0xff] }
 0x11e   :  { %6968 = vst [vmem:[#allocation66_spill] sm:$0xff] %v4631_v22  ;;  %v4652_v14 = vadd.f32 %v846_v30, %v6981_v58  ;;  %v4655_v1 = vadd.f32 %v847_v42, %v6983_v12  ;;  %v4658_v13 = vadd.f32 %v848_v62, %v6985_v46  ;;  %v6987_v34 = vld [vmem:[#allocation38_spill] sm:$0xff]  ;;  %v6989_v51 = vld [vmem:[#allocation121_spill] sm:$0xff]  ;;  %v6991_v20 = vld [vmem:[#allocation123_spill] sm:$0xff] }
 0x11f   :  { %6970 = vst [vmem:[#allocation40_spill] sm:$0xff] %v4634_v24  ;;  %v4661_v55 = vadd.f32 %v849_v45, %v6987_v34  ;;  %v4664_v11 = vadd.f32 %v850_v3, %v6989_v51  ;;  %v4667_v17 = vadd.f32 %v851_v19, %v6991_v20  ;;  %v6993_v6 = vld [vmem:[#allocation41_spill] sm:$0xff]  ;;  %v6994_v15 = vld [vmem:[#allocation42_spill] sm:$0xff]  ;;  %v6995_v58 = vld [vmem:[#allocation43_spill] sm:$0xff] }
 0x120   :  { %6972 = vst [vmem:[#allocation126_spill] sm:$0xff] %v4637_v10  ;;  %v886_v28 = vmax.f32 %v6993_v6, 0.0  ;;  %v887_v30 = vmax.f32 %v6994_v15, 0.0  ;;  %v888_v47 = vmax.f32 %v6995_v58, 0.0  ;;  %v6996_v42 = vld [vmem:[#allocation44_spill] sm:$0xff]  ;;  %v6998_v46 = vld [vmem:[#allocation46_spill] sm:$0xff] }
 0x121   :  { %6974 = vst [vmem:[#allocation127_spill] sm:$0xff] %v4640_v27  ;;  %v889_v12 = vmax.f32 %v6996_v42, 0.0  ;;  %v6999_v45 = vld [vmem:[#allocation74_spill] sm:$0xff]  ;;  %v7001_v51 = vld [vmem:[#allocation76_spill] sm:$0xff]  ;;  %v7002_v19 = vld [vmem:[#allocation77_spill] sm:$0xff] }
 0x122   :  { %6976 = vst [vmem:[#allocation128_spill] sm:$0xff] %v4643_v57  ;;  %v892_v34 = vmax.f32 %v6999_v45, 0.0  ;;  %v895_v20 = vmax.f32 %v7002_v19, 0.0  ;;  %v7007_v57 = vld [vmem:[#allocation52_spill] sm:$0xff]  ;;  %v902_v45 = vmax.f32 %v4427_v38, 0.0  ;;  %v905_v19 = vmax.f32 %v4459_v41, 0.0 }
 0x123   :  { %6978 = vst [vmem:[#allocation129_spill] sm:$0xff] %v4646_v26  ;;  %v7006_v26 = vld [vmem:[#allocation55_spill] sm:$0xff]  ;;  %v912_v38 = vmax.f32 %v4512_v40, 0.0  ;;  %v915_v41 = vmax.f32 %v4529_v32, 0.0  ;;  %v7008_v27 = vld [vmem:[#allocation58_spill] sm:$0xff]  ;;  %v7009_v10 = vld [vmem:[#allocation60_spill] sm:$0xff] }
 0x124   :  { %6980 = vst [vmem:[#allocation130_spill] sm:$0xff] %v4649_v4  ;;  %v7005_v4 = vld [vmem:[#allocation51_spill] sm:$0xff]  ;;  %v899_v42 = vmax.f32 %v7006_v26, 0.0  ;;  %v909_v26 = vmax.f32 %v4495_v29, 0.0  ;;  %v919_v29 = vadd.f32 %v887_v30, %v7009_v10  ;;  %v7010_v24 = vld [vmem:[#allocation62_spill] sm:$0xff]  ;;  %v7011_v22 = vld [vmem:[#allocation64_spill] sm:$0xff] }
 0x125   :  { %6982 = vst [vmem:[#allocation131_spill] sm:$0xff] %v4652_v14  ;;  %v7004_v14 = vld [vmem:[#allocation143_spill] sm:$0xff]  ;;  %v898_v58 = vmax.f32 %v7005_v4, 0.0  ;;  %v908_v4 = vmax.f32 %v4490_v23, 0.0  ;;  %v918_v23 = vadd.f32 %v886_v28, %v7008_v27  ;;  %v7012_v40 = vld [vmem:[#allocation154_spill] sm:$0xff]  ;;  %v7014_v32 = vld [vmem:[#allocation160_spill] sm:$0xff] }
 0x126   :  { %6984 = vst [vmem:[#allocation132_spill] sm:$0xff] %v4655_v1  ;;  %v6997_v1 = vld [vmem:[#allocation45_spill] sm:$0xff]  ;;  %v897_v15 = vmax.f32 %v7004_v14, 0.0  ;;  %v907_v14 = vmax.f32 %v4483_v63, 0.0  ;;  %v4714_v33 = vadd.f32 %v892_v34, %v7014_v32  ;;  %v7016_v27 = vld [vmem:[#allocation164_spill] sm:$0xff]  ;;  %v7019_v30 = vld [vmem:[#allocation167_spill] sm:$0xff] }
 0x127   :  { %6986 = vst [vmem:[#allocation134_spill] sm:$0xff] %v4658_v13  ;;  %v890_v62 = vmax.f32 %v6997_v1, 0.0  ;;  %v891_v13 = vmax.f32 %v6998_v46, 0.0  ;;  %v900_v1 = vmax.f32 %v7007_v57, 0.0  ;;  %v901_v46 = vmax.f32 %v4415_v61, 0.0  ;;  %v7017_v10 = vld [vmem:[#allocation165_spill] sm:$0xff] }
 0x128   :  { %6988 = vst [vmem:[#allocation136_spill] sm:$0xff] %v4661_v55  ;;  %v7000_v55 = vld [vmem:[#allocation75_spill] sm:$0xff]  ;;  %v910_v57 = vmax.f32 %v4500_v2, 0.0  ;;  %v911_v61 = vmax.f32 %v4507_v18, 0.0  ;;  %v920_v2 = vadd.f32 %v888_v47, %v7010_v24  ;;  %v4705_v18 = vadd.f32 %v889_v12, %v7011_v22  ;;  %v7018_v22 = vld [vmem:[#allocation166_spill] sm:$0xff]  ;;  %v7021_v34 = vld [vmem:[#allocation173_spill] sm:$0xff] }
 0x129   :  { %6990 = vst [vmem:[#allocation138_spill] sm:$0xff] %v4664_v11  ;;  %v893_v3 = vmax.f32 %v7000_v55, 0.0  ;;  %v894_v11 = vmax.f32 %v7001_v51, 0.0  ;;  %v903_v55 = vmax.f32 %v4439_v31, 0.0  ;;  %v904_v51 = vmax.f32 %v4449_v8, 0.0 }
 0x12a   :  { %6992 = vst [vmem:[#allocation140_spill] sm:$0xff] %v4667_v17  ;;  %v7003_v17 = vld [vmem:[#allocation78_spill] sm:$0xff]  ;;  %v913_v31 = vmax.f32 %v4517_v52, 0.0  ;;  %v914_v8 = vmax.f32 %v4524_v59, 0.0  ;;  %v4708_v21 = vadd.f32 %v890_v62, %v7012_v40  ;;  %v7013_v52 = vld [vmem:[#allocation157_spill] sm:$0xff]  ;;  %v4723_v47 = vadd.f32 %v895_v20, %v7017_v10  ;;  %v7024_v20 = vld [vmem:[#allocation83_spill] sm:$0xff] }
 0x12b   :  { %v896_v6 = vmax.f32 %v7003_v17, 0.0  ;;  %v906_v17 = vmax.f32 %v4473_v25, 0.0  ;;  %v4711_v59 = vadd.f32 %v891_v13, %v7013_v52  ;;  %v7015_v25 = vld [vmem:[#allocation163_spill] sm:$0xff]  ;;  %v4720_v28 = vadd.f32 %v894_v11, %v7016_v27  ;;  %v7020_v13 = vld [vmem:[#allocation170_spill] sm:$0xff] }
 0x12c   :  { %v4717_v63 = vadd.f32 %v893_v3, %v7015_v25  ;;  %v4729_v12 = vadd.f32 %v897_v15, %v7019_v30  ;;  %v4732_v62 = vadd.f32 %v898_v58, %v7020_v13  ;;  %v4735_v40 = vadd.f32 %v899_v42, %v7021_v34  ;;  %v7022_v3 = vld [vmem:[#allocation176_spill] sm:$0xff]  ;;  %v7023_v11 = vld [vmem:[#allocation82_spill] sm:$0xff]  ;;  %v7027_v58 = vld [vmem:[#allocation85_spill] sm:$0xff] }
 0x12d   :  { %v4726_v24 = vadd.f32 %v896_v6, %v7018_v22  ;;  %v4738_v25 = vadd.f32 %v900_v1, %v7022_v3  ;;  %v4741_v52 = vadd.f32 %v901_v46, %v7023_v11  ;;  %v4744_v32 = vadd.f32 %v902_v45, %v7024_v20  ;;  %v7025_v6 = vld [vmem:[#allocation84_spill] sm:$0xff]  ;;  %v7028_v42 = vld [vmem:[#allocation86_spill] sm:$0xff]  ;;  %v7030_v46 = vld [vmem:[#allocation87_spill] sm:$0xff] }
 0x12e   :  { %v4747_v27 = vadd.f32 %v903_v55, %v7025_v6  ;;  %v7026_v15 = vld [vmem:[#allocation144_spill] sm:$0xff]  ;;  %v4753_v22 = vadd.f32 %v905_v19, %v7027_v58  ;;  %v4756_v30 = vadd.f32 %v906_v17, %v7028_v42  ;;  %v7029_v1 = vld [vmem:[#allocation50_spill] sm:$0xff]  ;;  %v4762_v34 = vadd.f32 %v908_v4, %v7030_v46  ;;  %v7036_v4 = vld [vmem:[#allocation47_spill] sm:$0xff] }
 0x12f   :  { %v4750_v10 = vadd.f32 %v904_v51, %v7026_v15  ;;  %v4759_v13 = vadd.f32 %v907_v14, %v7029_v1  ;;  %v4765_v45 = vadd.f32 %v909_v26, %v4429_v44  ;;  %v7031_v55 = vld [vmem:[#allocation54_spill] sm:$0xff]  ;;  %v7032_v51 = vld [vmem:[#allocation95_spill] sm:$0xff]  ;;  %v7034_v17 = vld [vmem:[#allocation100_spill] sm:$0xff]  ;;  %v4783_v58 = vadd.f32 %v915_v41, %v7036_v4 }
 0x130   :  { %v4768_v3 = vadd.f32 %v910_v57, %v7031_v55  ;;  %v4771_v11 = vadd.f32 %v911_v61, %v7032_v51  ;;  %v7033_v19 = vld [vmem:[#allocation98_spill] sm:$0xff]  ;;  %v4777_v6 = vadd.f32 %v913_v31, %v7034_v17  ;;  %v7035_v14 = vld [vmem:[#allocation79_spill] sm:$0xff]  ;;  %v950_v44 = vsub.f32 %v918_v23, %v4580_v9  ;;  %v7057_v51 = vld [vmem:[#allocation125_spill] sm:$0xff] }
 0x131   :  { %v4774_v20 = vadd.f32 %v912_v38, %v7033_v19  ;;  %v4780_v15 = vadd.f32 %v914_v8, %v7035_v14  ;;  %v951_v26 = vsub.f32 %v919_v29, %v4583_v48  ;;  %v952_v57 = vsub.f32 %v920_v2, %v4586_v16  ;;  %v7041_v23 = vld [vmem:[#allocation126_spill] sm:$0xff]  ;;  %v7042_v29 = vld [vmem:[#allocation127_spill] sm:$0xff]  ;;  %v7043_v2 = vld [vmem:[#allocation128_spill] sm:$0xff] }
 0x132   :  { %v953_v61 = vsub.f32 %v4705_v18, %v4589_v35  ;;  %v954_v38 = vsub.f32 %v4708_v21, %v4592_v50  ;;  %v955_v31 = vsub.f32 %v4711_v59, %v4595_v5  ;;  %v956_v8 = vsub.f32 %v4714_v33, %v4598_v54  ;;  %v7038_v33 = vld [vmem:[#allocation49_spill] sm:$0xff]  ;;  %v7039_v21 = vld [vmem:[#allocation66_spill] sm:$0xff]  ;;  %v7052_v1 = vld [vmem:[#allocation140_spill] sm:$0xff] }
 0x133   :  { %v957_v41 = vsub.f32 %v4717_v63, %v4601_v37  ;;  %v958_v48 = vsub.f32 %v4720_v28, %v4604_v0  ;;  %v959_v9 = vsub.f32 %v4723_v47, %v4607_v56  ;;  %v960_v35 = vsub.f32 %v4726_v24, %v4610_v60  ;;  %v7037_v37 = vld [vmem:[#allocation81_spill] sm:$0xff]  ;;  %v7040_v63 = vld [vmem:[#allocation40_spill] sm:$0xff]  ;;  %v7045_v28 = vld [vmem:[#allocation130_spill] sm:$0xff] }
 0x134   :  { %v961_v16 = vsub.f32 %v4729_v12, %v4613_v49  ;;  %v962_v5 = vsub.f32 %v4732_v62, %v4616_v39  ;;  %v963_v54 = vsub.f32 %v4735_v40, %v4619_v7  ;;  %v964_v50 = vsub.f32 %v4738_v25, %v4622_v43  ;;  %v7044_v18 = vld [vmem:[#allocation129_spill] sm:$0xff]  ;;  %v7046_v24 = vld [vmem:[#allocation131_spill] sm:$0xff]  ;;  %v7047_v62 = vld [vmem:[#allocation132_spill] sm:$0xff] }
 0x135   :  { %v965_v0 = vsub.f32 %v4741_v52, %v7037_v37  ;;  %v966_v56 = vsub.f32 %v4744_v32, %v7038_v33  ;;  %v967_v60 = vsub.f32 %v4747_v27, %v7039_v21  ;;  %v968_v49 = vsub.f32 %v4750_v10, %v7040_v63  ;;  %v7048_v25 = vld [vmem:[#allocation134_spill] sm:$0xff]  ;;  %v7049_v32 = vld [vmem:[#allocation120_spill] sm:$0xff]  ;;  %v7070_v33 = vld [vmem:[#allocation69_spill] sm:$0xff] }
 0x136   :  { %v969_v39 = vsub.f32 %v4753_v22, %v7041_v23  ;;  %v970_v7 = vsub.f32 %v4756_v30, %v7042_v29  ;;  %v971_v43 = vsub.f32 %v4759_v13, %v7043_v2  ;;  %v972_v59 = vsub.f32 %v4762_v34, %v7044_v18  ;;  %v7050_v10 = vld [vmem:[#allocation136_spill] sm:$0xff]  ;;  %v7051_v42 = vld [vmem:[#allocation138_spill] sm:$0xff]  ;;  %v7076_v29 = vld [vmem:[#allocation71_spill] sm:$0xff] }
 0x137   :  { %v973_v47 = vsub.f32 %v4765_v45, %v7045_v28  ;;  %v974_v12 = vsub.f32 %v4768_v3, %v7046_v24  ;;  %v975_v40 = vsub.f32 %v4771_v11, %v7047_v62  ;;  %v976_v52 = vsub.f32 %v4774_v20, %v7048_v25  ;;  %v7053_v46 = vld [vmem:[#allocation122_spill] sm:$0xff]  ;;  %v7067_v37 = vld [vmem:[#allocation68_spill] sm:$0xff]  ;;  %v7082_v62 = vld [vmem:[#allocation73_spill] sm:$0xff] }
 0x138   :  { %v1014_v27 = vmul.f32 0.1, %v7049_v32  ;;  %v977_v22 = vsub.f32 %v4777_v6, %v7050_v10  ;;  %v978_v30 = vsub.f32 %v4780_v15, %v7051_v42  ;;  %v979_v13 = vsub.f32 %v4783_v58, %v7052_v1  ;;  %v7061_v6 = vld [vmem:[#allocation65_spill] sm:$0xff]  ;;  %v7064_v58 = vld [vmem:[#allocation67_spill] sm:$0xff]  ;;  %v7073_v63 = vld [vmem:[#allocation70_spill] sm:$0xff] }
 0x139   :  { %v1015_v34 = vmul.f32 0.1, %v7053_v46  ;;  %v4844_v45 = vmax.f32 %v950_v44, 0.0  ;;  %v4846_v55 = vmax.f32 %v951_v26, 0.0  ;;  %v4848_v3 = vmax.f32 %v952_v57, 0.0  ;;  %v7079_v18 = vld [vmem:[#allocation72_spill] sm:$0xff] }
 0x13a   :  { %v1016_v11 = vmul.f32 0.1, %v7057_v51  ;;  %v4851_v19 = vmax.f32 %v953_v61, 0.0  ;;  %v4853_v20 = vmax.f32 %v954_v38, 0.0  ;;  %v4855_v17 = vmax.f32 %v955_v31, 0.0 }
 0x13b   :  { %7054 = vst [vmem:[#allocation142_spill] sm:$0xff] %v4844_v45  ;;  %v1017_v14 = vmul.f32 0.1, %v7061_v6  ;;  %v4858_v15 = vmax.f32 %v956_v8, 0.0  ;;  %v4860_v4 = vmax.f32 %v957_v41, 0.0  ;;  %2263 = vtanh.f32 %v1014_v27  ;;  %v2515_v45 = vld [vmem:[%s6206_s1 + $0xe0] sm:$0xff] }
 0x13c   :  { %7055 = vst [vmem:[#allocation146_spill] sm:$0xff] %v4846_v55  ;;  %v1018_v44 = vmul.f32 0.1, %v7064_v58  ;;  %v4863_v26 = vmax.f32 %v958_v48, 0.0  ;;  %v4865_v57 = vmax.f32 %v959_v9, 0.0  ;;  %2265 = vtanh.f32 %v1015_v34 }
 0x13d   :  { %7056 = vst [vmem:[#allocation147_spill] sm:$0xff] %v4848_v3  ;;  %v1019_v61 = vmul.f32 0.1, %v7067_v37  ;;  %v4868_v38 = vmax.f32 %v960_v35, 0.0  ;;  %v4870_v31 = vmax.f32 %v961_v16, 0.0  ;;  %2267 = vtanh.f32 %v1016_v11 }
 0x13e   :  { %7058 = vst [vmem:[#allocation148_spill] sm:$0xff] %v4851_v19  ;;  %v1020_v21 = vmul.f32 0.1, %v7070_v33  ;;  %v4873_v8 = vmax.f32 %v962_v5, 0.0  ;;  %v4875_v41 = vmax.f32 %v963_v54, 0.0  ;;  %2269 = vtanh.f32 %v1017_v14 }
 0x13f   :  { %7059 = vst [vmem:[#allocation168_spill] sm:$0xff] %v4853_v20  ;;  %v1021_v23 = vmul.f32 0.1, %v7073_v63  ;;  %v4878_v48 = vmax.f32 %v964_v50, 0.0  ;;  %v4880_v9 = vmax.f32 %v965_v0, 0.0  ;;  %2271 = vtanh.f32 %v1018_v44  ;;  %v7169_v20 = vld [vmem:[#allocation91_spill] sm:$0xff] }
 0x140   :  { %7060 = vst [vmem:[#allocation169_spill] sm:$0xff] %v4855_v17  ;;  %v1022_v2 = vmul.f32 0.1, %v7076_v29  ;;  %v4883_v35 = vmax.f32 %v966_v56, 0.0  ;;  %v4885_v16 = vmax.f32 %v967_v60, 0.0  ;;  %2273 = vtanh.f32 %v1019_v61  ;;  %v7085_v56 = vld [vmem:[#allocation133_spill] sm:$0xff] }
 0x141   :  { %7062 = vst [vmem:[#allocation171_spill] sm:$0xff] %v4858_v15  ;;  %v1023_v28 = vmul.f32 0.1, %v7079_v18  ;;  %v2264_v5 = vpop.eup %2263  ;;  %v4888_v54 = vmax.f32 %v968_v49, 0.0  ;;  %v4890_v24 = vmax.f32 %v969_v39, 0.0  ;;  %2275 = vtanh.f32 %v1020_v21  ;;  %v7088_v49 = vld [vmem:[#allocation135_spill] sm:$0xff] }
 0x142   :  { %7063 = vst [vmem:[#allocation172_spill] sm:$0xff] %v4860_v4  ;;  %v1024_v50 = vmul.f32 0.1, %v7082_v62  ;;  %v2266_v0 = vpop.eup %2265  ;;  %v4893_v25 = vmax.f32 %v970_v7, 0.0  ;;  %v4895_v32 = vmax.f32 %v971_v43, 0.0  ;;  %2277 = vtanh.f32 %v1021_v23  ;;  %v7091_v7 = vld [vmem:[#allocation137_spill] sm:$0xff] }
 0x143   :  { %7065 = vst [vmem:[#allocation174_spill] sm:$0xff] %v4863_v26  ;;  %v1025_v27 = vmul.f32 0.1, %v7085_v56  ;;  %v2268_v60 = vpop.eup %2267  ;;  %v4898_v10 = vmax.f32 %v972_v59, 0.0  ;;  %v4900_v42 = vmax.f32 %v973_v47, 0.0  ;;  %2279 = vtanh.f32 %v1022_v2  ;;  %v7094_v59 = vld [vmem:[#allocation139_spill] sm:$0xff] }
 0x144   :  { %7066 = vst [vmem:[#allocation101_spill] sm:$0xff] %v4865_v57  ;;  %v1026_v1 = vmul.f32 0.1, %v7088_v49  ;;  %v2270_v39 = vpop.eup %2269  ;;  %v4903_v46 = vmax.f32 %v974_v12, 0.0  ;;  %v4905_v34 = vmax.f32 %v975_v40, 0.0  ;;  %2281 = vtanh.f32 %v1023_v28  ;;  %v7097_v12 = vld [vmem:[#allocation141_spill] sm:$0xff] }
 0x145   :  { %7068 = vst [vmem:[#allocation102_spill] sm:$0xff] %v4868_v38  ;;  %v1027_v51 = vmul.f32 0.1, %v7091_v7  ;;  %v2272_v43 = vpop.eup %2271  ;;  %v4908_v11 = vmax.f32 %v976_v52, 0.0  ;;  %v4910_v6 = vmax.f32 %v977_v22, 0.0  ;;  %2283 = vtanh.f32 %v1024_v50  ;;  %v7098_v61 = vld [vmem:[#allocation145_spill] sm:$0xff] }
 0x146   :  { %7069 = vst [vmem:[#allocation103_spill] sm:$0xff] %v4870_v31  ;;  %v1028_v14 = vmul.f32 0.1, %v7094_v59  ;;  %v2274_v47 = vpop.eup %2273  ;;  %v4913_v58 = vmax.f32 %v978_v30, 0.0  ;;  %v4915_v44 = vmax.f32 %v979_v13, 0.0  ;;  %2285 = vtanh.f32 %v1025_v27  ;;  %v7099_v21 = vld [vmem:[#allocation57_spill] sm:$0xff] }
 0x147   :  { %7071 = vst [vmem:[#allocation104_spill] sm:$0xff] %v4873_v8  ;;  %v1029_v37 = vmul.f32 0.1, %v7097_v12  ;;  %v2276_v40 = vpop.eup %2275  ;;  %v1030_v33 = vmul.f32 0.1, %v7098_v61  ;;  %v7100_v52 = vld [vmem:[#allocation59_spill] sm:$0xff]  ;;  %2287 = vtanh.f32 %v1026_v1 }
 0x148   :  { %7072 = vst [vmem:[#allocation105_spill] sm:$0xff] %v4875_v41  ;;  %v1031_v63 = vmul.f32 0.1, %v7099_v21  ;;  %v1032_v23 = vmul.f32 0.1, %v7100_v52  ;;  %v2278_v22 = vpop.eup %2277  ;;  %v7101_v29 = vld [vmem:[#allocation149_spill] sm:$0xff]  ;;  %2289 = vtanh.f32 %v1027_v51 }
 0x149   :  { %7074 = vst [vmem:[#allocation106_spill] sm:$0xff] %v4878_v48  ;;  %v1033_v2 = vmul.f32 0.1, %v7101_v29  ;;  %v7102_v18 = vld [vmem:[#allocation61_spill] sm:$0xff]  ;;  %v7103_v30 = vld [vmem:[#allocation150_spill] sm:$0xff]  ;;  %v2280_v13 = vpop.eup %2279  ;;  %v7104_v50 = vld [vmem:[#allocation63_spill] sm:$0xff]  ;;  %2291 = vtanh.f32 %v1028_v14 }
 0x14a   :  { %7075 = vst [vmem:[#allocation107_spill] sm:$0xff] %v4880_v9  ;;  %v1034_v28 = vmul.f32 0.1, %v7102_v18  ;;  %v1035_v62 = vmul.f32 0.1, %v7103_v30  ;;  %v7105_v27 = vld [vmem:[#allocation151_spill] sm:$0xff]  ;;  %v2282_v12 = vpop.eup %2281  ;;  %2293 = vtanh.f32 %v1029_v37 }
 0x14b   :  { %7077 = vst [vmem:[#allocation108_spill] sm:$0xff] %v4883_v35  ;;  %v1036_v56 = vmul.f32 0.1, %v7104_v50  ;;  %v1037_v49 = vmul.f32 0.1, %v7105_v27  ;;  %v7106_v7 = vld [vmem:[#allocation152_spill] sm:$0xff]  ;;  %2295 = vtanh.f32 %v1030_v33 }
 0x14c   :  { %7078 = vst [vmem:[#allocation109_spill] sm:$0xff] %v4885_v16  ;;  %v1038_v59 = vmul.f32 0.1, %v7106_v7  ;;  %v7107_v61 = vld [vmem:[#allocation153_spill] sm:$0xff]  ;;  %v7108_v1 = vld [vmem:[#allocation155_spill] sm:$0xff]  ;;  %v1078_v29 = vadd.f32 1.0, %v2264_v5  ;;  %2297 = vtanh.f32 %v1031_v63 }
 0x14d   :  { %7080 = vst [vmem:[#allocation110_spill] sm:$0xff] %v4888_v54  ;;  %v1039_v21 = vmul.f32 0.1, %v7107_v61  ;;  %v1040_v52 = vmul.f32 0.1, %v7108_v1  ;;  %v7109_v18 = vld [vmem:[#allocation156_spill] sm:$0xff]  ;;  %2299 = vtanh.f32 %v1032_v23 }
 0x14e   :  { %7081 = vst [vmem:[#allocation111_spill] sm:$0xff] %v4890_v24  ;;  %v7110_v51 = vld [vmem:[#allocation158_spill] sm:$0xff]  ;;  %v7111_v50 = vld [vmem:[#allocation159_spill] sm:$0xff]  ;;  %v7112_v14 = vld [vmem:[#allocation161_spill] sm:$0xff]  ;;  %v1079_v61 = vadd.f32 1.0, %v2266_v0  ;;  %v1080_v1 = vadd.f32 1.0, %v2268_v60  ;;  %2301 = vtanh.f32 %v1033_v2 }
 0x14f   :  { %7083 = vst [vmem:[#allocation112_spill] sm:$0xff] %v4893_v25  ;;  %v4933_v30 = vmul.f32 0.1, %v7110_v51  ;;  %v4939_v7 = vmul.f32 0.1, %v7112_v14  ;;  %v7113_v5 = vld [vmem:[#allocation162_spill] sm:$0xff]  ;;  %2303 = vtanh.f32 %v1034_v28 }
 0x150   :  { %7084 = vst [vmem:[#allocation113_spill] sm:$0xff] %v4895_v32  ;;  %v2495_v33 = vld [vmem:[%s6206_s1] sm:$0xff]  ;;  %v1084_v60 = vadd.f32 1.0, %v2276_v40  ;;  %v1085_v63 = vadd.f32 1.0, %v2278_v22  ;;  %2305 = vtanh.f32 %v1035_v62  ;;  %v4956_v2 = vmul.f32 0.5, %v1079_v61  ;;  %v2501_v35 = vld [vmem:[%s6206_s1 + $0x30] sm:$0xff] }
 0x151   :  { %7086 = vst [vmem:[#allocation114_spill] sm:$0xff] %v4898_v10  ;;  %v4949_v14 = vmul.f32 0.2, %v2495_v33  ;;  %2307 = vtanh.f32 %v1036_v56  ;;  %v1087_v33 = vadd.f32 1.0, %v2282_v12  ;;  %v2505_v48 = vld [vmem:[%s6206_s1 + $0x50] sm:$0xff]  ;;  %v2506_v41 = vld [vmem:[%s6206_s1 + $0x58] sm:$0xff] }
 0x152   :  { %7087 = vst [vmem:[#allocation115_spill] sm:$0xff] %v4900_v42  ;;  %2309 = vtanh.f32 %v1037_v49  ;;  %v4967_v61 = vmul.f32 0.5, %v1084_v60  ;;  %v2507_v9 = vld [vmem:[%s6206_s1 + $0x60] sm:$0xff]  ;;  %v2508_v31 = vld [vmem:[%s6206_s1 + $0x68] sm:$0xff]  ;;  %v7160_v38 = vld [vmem:[#allocation88_spill] sm:$0xff] }
 0x153   :  { %7089 = vst [vmem:[#allocation116_spill] sm:$0xff] %v4903_v46  ;;  %v1083_v46 = vadd.f32 1.0, %v2274_v47  ;;  %v1086_v47 = vadd.f32 1.0, %v2280_v13  ;;  %2311 = vtanh.f32 %v1038_v59  ;;  %v5111_v57 = vmul.f32 0.2, %v7160_v38  ;;  %v7166_v4 = vld [vmem:[#allocation53_spill] sm:$0xff] }
 0x154   :  { %7090 = vst [vmem:[#allocation92_spill] sm:$0xff] %v4905_v34  ;;  %v1082_v34 = vadd.f32 1.0, %v2272_v43  ;;  %2313 = vtanh.f32 %v1039_v21  ;;  %v5125_v19 = vmul.f32 0.2, %v7169_v20  ;;  %v7173_v38 = vld [vmem:[#allocation97_spill] sm:$0xff]  ;;  %v2513_v15 = vld [vmem:[%s6206_s1 + $0xd0] sm:$0xff] }
 0x155   :  { %7092 = vst [vmem:[#allocation34_spill] sm:$0xff] %v4908_v11  ;;  %v4942_v11 = vmul.f32 0.1, %v7113_v5  ;;  %v4964_v10 = vmul.f32 0.5, %v1083_v46  ;;  %v2510_v20 = vld [vmem:[%s6206_s1 + $0xb8] sm:$0xff] }
 0x156   :  { %7093 = vst [vmem:[#allocation93_spill] sm:$0xff] %v4910_v6  ;;  %v4936_v6 = vmul.f32 0.1, %v7111_v50  ;;  %v4944_v50 = vmul.f32 0.5, %v1078_v29  ;;  %v4958_v29 = vmul.f32 0.5, %v1080_v1  ;;  %v4962_v40 = vmul.f32 0.5, %v1082_v34 }
 0x157   :  { %7095 = vst [vmem:[#allocation96_spill] sm:$0xff] %v4913_v58  ;;  %v4930_v58 = vmul.f32 0.1, %v7109_v18  ;;  %v1081_v18 = vadd.f32 1.0, %v2270_v39  ;;  %v2496_v39 = vld [vmem:[%s6206_s1 + $0x8] sm:$0xff]  ;;  %v4969_v1 = vmul.f32 0.5, %v1085_v63 }
 0x158   :  { %7096 = vst [vmem:[#allocation35_spill] sm:$0xff] %v4915_v44  ;;  %v2284_v44 = vpop.eup %2283  ;;  %v4954_v43 = vmul.f32 0.2, %v2496_v39  ;;  %2315 = vtanh.f32 %v1040_v52  ;;  %v2514_v17 = vld [vmem:[%s6206_s1 + $0xd8] sm:$0xff] }
 0x159   :  { %v2286_v27 = vpop.eup %2285  ;;  %7114 = vst [vmem:[#allocation99_spill] sm:$0xff] %v4944_v50  ;;  %v4960_v42 = vmul.f32 0.5, %v1081_v18  ;;  %v1088_v28 = vadd.f32 1.0, %v2284_v44  ;;  %v4971_v18 = vmul.f32 0.5, %v1086_v47  ;;  %v4974_v44 = vmul.f32 0.5, %v1087_v33 }
 0x15a   :  { %v2288_v37 = vpop.eup %2287  ;;  %7115 = vst [vmem:[#allocation36_spill] sm:$0xff] %v4949_v14  ;;  %v1089_v13 = vadd.f32 1.0, %v2286_v27  ;;  %2317 = vtanh.f32 %v4930_v58 }
 0x15b   :  { %v2290_v51 = vpop.eup %2289  ;;  %7116 = vst [vmem:[#allocation37_spill] sm:$0xff] %v4954_v43  ;;  %v1090_v12 = vadd.f32 1.0, %v2288_v37  ;;  %v4977_v60 = vmul.f32 0.5, %v1088_v28  ;;  %2319 = vtanh.f32 %v4933_v30 }
 0x15c   :  { %v2292_v0 = vpop.eup %2291  ;;  %7117 = vst [vmem:[#allocation117_spill] sm:$0xff] %v4956_v2  ;;  %v1091_v46 = vadd.f32 1.0, %v2290_v51  ;;  %v4981_v47 = vmul.f32 0.5, %v1089_v13  ;;  %2321 = vtanh.f32 %v4936_v6 }
 0x15d   :  { %v2294_v23 = vpop.eup %2293  ;;  %7118 = vst [vmem:[#allocation118_spill] sm:$0xff] %v4958_v29  ;;  %v1092_v27 = vadd.f32 1.0, %v2292_v0  ;;  %v4987_v0 = vmul.f32 0.5, %v1090_v12  ;;  %2323 = vtanh.f32 %v4939_v7 }
 0x15e   :  { %v2296_v5 = vpop.eup %2295  ;;  %7119 = vst [vmem:[#allocation119_spill] sm:$0xff] %v4960_v42  ;;  %v1093_v39 = vadd.f32 1.0, %v2294_v23  ;;  %v4991_v13 = vmul.f32 0.5, %v1091_v46  ;;  %2325 = vtanh.f32 %v4942_v11  ;;  %v2512_v11 = vld [vmem:[%s6206_s1 + $0xc8] sm:$0xff]  ;;  %v1220_v42 = vand.u32 2147483647, %v5111_v57 }
 0x15f   :  { %7120 = vst [vmem:[#allocation38_spill] sm:$0xff] %v4962_v40  ;;  %v2298_v22 = vpop.eup %2297  ;;  %v1094_v21 = vadd.f32 1.0, %v2296_v5  ;;  %v4994_v51 = vmul.f32 0.5, %v1092_v27 }
 0x160   :  { %7121 = vst [vmem:[#allocation121_spill] sm:$0xff] %v4964_v10  ;;  %v2300_v62 = vpop.eup %2299  ;;  %v1095_v52 = vadd.f32 1.0, %v2298_v22  ;;  %v4998_v46 = vmul.f32 0.5, %v1093_v39 }
 0x161   :  { %7122 = vst [vmem:[#allocation123_spill] sm:$0xff] %v4967_v61  ;;  %v2302_v56 = vpop.eup %2301  ;;  %v1096_v25 = vadd.f32 1.0, %v2300_v62  ;;  %v5001_v22 = vmul.f32 0.5, %v1094_v21  ;;  %v2503_v62 = vld [vmem:[%s6206_s1 + $0x40] sm:$0xff] }
 0x162   :  { %7123 = vst [vmem:[#allocation41_spill] sm:$0xff] %v4969_v1  ;;  %v2304_v49 = vpop.eup %2303  ;;  %v1097_v12 = vadd.f32 1.0, %v2302_v56  ;;  %v5004_v16 = vmul.f32 0.5, %v1095_v52 }
 0x163   :  { %7124 = vst [vmem:[#allocation42_spill] sm:$0xff] %v4971_v18  ;;  %v2306_v59 = vpop.eup %2305  ;;  %v1098_v24 = vadd.f32 1.0, %v2304_v49  ;;  %v5006_v56 = vmul.f32 0.5, %v1096_v25 }
 0x164   :  { %7125 = vst [vmem:[#allocation43_spill] sm:$0xff] %v4974_v44  ;;  %v2308_v37 = vpop.eup %2307  ;;  %v1099_v54 = vadd.f32 1.0, %v2306_v59  ;;  %v5009_v59 = vmul.f32 0.5, %v1097_v12 }
 0x165   :  { %7126 = vst [vmem:[#allocation44_spill] sm:$0xff] %v4977_v60  ;;  %v2310_v33 = vpop.eup %2309  ;;  %v1100_v28 = vadd.f32 1.0, %v2308_v37  ;;  %v5011_v39 = vmul.f32 0.5, %v1098_v24  ;;  %v2498_v37 = vld [vmem:[%s6206_s1 + $0x18] sm:$0xff]  ;;  %v2499_v24 = vld [vmem:[%s6206_s1 + $0x20] sm:$0xff] }
 0x166   :  { %7127 = vst [vmem:[#allocation45_spill] sm:$0xff] %v4981_v47  ;;  %v2312_v63 = vpop.eup %2311  ;;  %v1101_v30 = vadd.f32 1.0, %v2310_v33 }
 0x167   :  { %7128 = vst [vmem:[#allocation46_spill] sm:$0xff] %v4987_v0  ;;  %v2314_v32 = vpop.eup %2313  ;;  %v1102_v5 = vadd.f32 1.0, %v2312_v63  ;;  %v5013_v63 = vmul.f32 0.5, %v1099_v54 }
 0x168   :  { %7129 = vst [vmem:[#allocation74_spill] sm:$0xff] %v4991_v13  ;;  %v2316_v23 = vpop.eup %2315  ;;  %v1103_v34 = vadd.f32 1.0, %v2314_v32  ;;  %v5015_v32 = vmul.f32 0.5, %v1100_v28  ;;  %v5017_v7 = vmul.f32 0.5, %v1101_v30  ;;  %v5045_v30 = vmul.f32 0.2, %v2498_v37 }
 0x169   :  { %7130 = vst [vmem:[#allocation75_spill] sm:$0xff] %v4994_v51  ;;  %v2318_v27 = vpop.eup %2317  ;;  %v1104_v58 = vadd.f32 1.0, %v2316_v23  ;;  %v5019_v21 = vmul.f32 0.5, %v1102_v5  ;;  %v2500_v37 = vld [vmem:[%s6206_s1 + $0x28] sm:$0xff]  ;;  %v7164_v23 = vld [vmem:[#allocation90_spill] sm:$0xff]  ;;  %v7198_v51 = vld [vmem:[#allocation80_spill] sm:$0xff] }
 0x16a   :  { %7131 = vst [vmem:[#allocation76_spill] sm:$0xff] %v4998_v46  ;;  %v2320_v6 = vpop.eup %2319  ;;  %v1105_v52 = vadd.f32 1.0, %v2318_v27  ;;  %v5023_v33 = vmul.f32 0.5, %v1103_v34  ;;  %v5055_v27 = vmul.f32 0.2, %v2499_v24  ;;  %v7199_v13 = vmax.f32 %v4534_v36, 0.0 }
 0x16b   :  { %7132 = vst [vmem:[#allocation77_spill] sm:$0xff] %v5001_v22  ;;  %v2322_v12 = vpop.eup %2321  ;;  %v1106_v54 = vadd.f32 1.0, %v2320_v6  ;;  %v5027_v49 = vmul.f32 0.5, %v1104_v58  ;;  %v2497_v58 = vld [vmem:[%s6206_s1 + $0x10] sm:$0xff]  ;;  %v5071_v24 = vmul.f32 0.2, %v2501_v35 }
 0x16c   :  { %7133 = vst [vmem:[#allocation78_spill] sm:$0xff] %v5004_v16  ;;  %v2324_v5 = vpop.eup %2323  ;;  %v5040_v6 = vmul.f32 0.2, %v2497_v58  ;;  %v5047_v25 = vadd.f32 1.0, %v2322_v12  ;;  %v5049_v34 = vmul.f32 0.5, %v1105_v52  ;;  %v2504_v12 = vld [vmem:[%s6206_s1 + $0x48] sm:$0xff]  ;;  %v5206_v0 = vadd.f32 %v7199_v13, %v7198_v51 }
 0x16d   :  { %7134 = vst [vmem:[#allocation143_spill] sm:$0xff] %v5006_v56  ;;  %v5057_v58 = vadd.f32 1.0, %v2324_v5  ;;  %v5059_v28 = vmul.f32 0.5, %v1106_v54  ;;  %v5065_v52 = vmul.f32 0.2, %v2500_v37  ;;  %v2502_v54 = vld [vmem:[%s6206_s1 + $0x38] sm:$0xff]  ;;  %v2326_v56 = vpop.eup %2325 }
 0x16e   :  { %7135 = vst [vmem:[#allocation51_spill] sm:$0xff] %v5009_v59  ;;  %v5076_v5 = vmul.f32 0.2, %v2502_v54  ;;  %v5081_v37 = vmul.f32 0.2, %v2503_v62  ;;  %v7194_v16 = vld [vmem:[#allocation39_spill] sm:$0xff] }
 0x16f   :  { %7136 = vst [vmem:[#allocation55_spill] sm:$0xff] %v5011_v39  ;;  %v5087_v35 = vmul.f32 0.2, %v2504_v12  ;;  %v5092_v54 = vmul.f32 0.2, %v2505_v48  ;;  %v7195_v22 = vld [vmem:[#allocation177_spill] sm:$0xff] }
 0x170   :  { %7137 = vst [vmem:[#allocation52_spill] sm:$0xff] %v5013_v63  ;;  %v5097_v62 = vmul.f32 0.2, %v2506_v41  ;;  %v5103_v12 = vmul.f32 0.2, %v2507_v9  ;;  %v7162_v41 = vld [vmem:[#allocation89_spill] sm:$0xff] }
 0x171   :  { %7138 = vst [vmem:[#allocation58_spill] sm:$0xff] %v5015_v32  ;;  %v5108_v48 = vmul.f32 0.2, %v2508_v31  ;;  %v5115_v26 = vmul.f32 0.2, %v7162_v41  ;;  %v7171_v31 = vld [vmem:[#allocation94_spill] sm:$0xff] }
 0x172   :  { %7139 = vst [vmem:[#allocation60_spill] sm:$0xff] %v5017_v7  ;;  %v5118_v8 = vmul.f32 0.2, %v7164_v23  ;;  %v5121_v9 = vmul.f32 0.2, %v7166_v4  ;;  %v2509_v4 = vld [vmem:[%s6206_s1 + $0xb0] sm:$0xff] }
 0x173   :  { %7140 = vst [vmem:[#allocation62_spill] sm:$0xff] %v5019_v21  ;;  %v5128_v3 = vmul.f32 0.2, %v7171_v31  ;;  %v5140_v23 = vmul.f32 0.2, %v2509_v4  ;;  %v2511_v41 = vld [vmem:[%s6206_s1 + $0xc0] sm:$0xff] }
 0x174   :  { %7141 = vst [vmem:[#allocation64_spill] sm:$0xff] %v5023_v33  ;;  %v7176_v33 = vld [vmem:[#allocation56_spill] sm:$0xff]  ;;  %v5145_v31 = vmul.f32 0.2, %v2510_v20  ;;  %v5156_v4 = vmul.f32 0.2, %v2512_v11 }
 0x175   :  { %7142 = vst [vmem:[#allocation154_spill] sm:$0xff] %v5027_v49  ;;  %v5131_v49 = vmul.f32 0.2, %v7173_v38  ;;  %v5135_v21 = vmul.f32 0.2, %v7176_v33  ;;  %v2516_v7 = vld [vmem:[%s6206_s1 + $0xe8] sm:$0xff] }
 0x176   :  { %7143 = vst [vmem:[#allocation157_spill] sm:$0xff] %v5040_v6  ;;  %v5151_v33 = vmul.f32 0.2, %v2511_v41  ;;  %v5161_v20 = vmul.f32 0.2, %v2513_v15  ;;  %v7188_v32 = vld [vmem:[#allocation124_spill] sm:$0xff] }
 0x177   :  { %7144 = vst [vmem:[#allocation160_spill] sm:$0xff] %v5045_v30  ;;  %v5167_v41 = vmul.f32 0.2, %v2514_v17  ;;  %v5172_v11 = vmul.f32 0.2, %v2515_v45  ;;  %v7189_v38 = vld [vmem:[#allocation175_spill] sm:$0xff] }
 0x178   :  { %7145 = vst [vmem:[#allocation163_spill] sm:$0xff] %v5049_v34  ;;  %v5177_v15 = vmul.f32 0.2, %v2516_v7  ;;  %v7190_v55 = vmax.f32 %v7189_v38, 0.0  ;;  %v2517_v17 = vld [vmem:[%s6206_s1 + $0xf0] sm:$0xff]  ;;  %v2518_v45 = vld [vmem:[%s6206_s1 + $0xf8] sm:$0xff] }
 0x179   :  { %7146 = vst [vmem:[#allocation164_spill] sm:$0xff] %v5055_v27  ;;  %v5187_v39 = vmul.f32 0.2, %v2517_v17  ;;  %v5192_v59 = vmul.f32 0.2, %v2518_v45  ;;  %v7196_v38 = vmax.f32 %v7195_v22, 0.0 }
 0x17a   :  { %7147 = vst [vmem:[#allocation165_spill] sm:$0xff] %v5059_v28  ;;  %v5182_v63 = vadd.f32 %v7190_v55, %v7188_v32  ;;  %v1206_v7 = vand.u32 2147483647, %v4949_v14  ;;  %v1207_v32 = vand.u32 2147483647, %v4954_v43  ;;  %v7201_v22 = vld [vmem:[#allocation48_spill] sm:$0xff] }
 0x17b   :  { %7148 = vst [vmem:[#allocation166_spill] sm:$0xff] %v5065_v52  ;;  %v5198_v55 = vadd.f32 %v7196_v38, %v7194_v16  ;;  %v1208_v46 = vand.u32 2147483647, %v5040_v6  ;;  %v1209_v17 = vand.u32 2147483647, %v5045_v30  ;;  %v7202_v16 = vmax.f32 %v4541_v53, 0.0 }
 0x17c   :  { %7150 = vst [vmem:[#allocation167_spill] sm:$0xff] %v5071_v24  ;;  %v1210_v45 = vand.u32 2147483647, %v5055_v27  ;;  %v1211_v47 = vand.u32 2147483647, %v5065_v52  ;;  %v1109_v36 = vadd.f32 1.0, %v2326_v56 }
 0x17d   :  { %7151 = vst [vmem:[#allocation170_spill] sm:$0xff] %v5076_v5  ;;  %v1212_v60 = vand.u32 2147483647, %v5071_v24  ;;  %v5214_v38 = vadd.f32 %v7202_v16, %v7201_v22  ;;  %v1213_v44 = vand.u32 2147483647, %v5076_v5  ;;  %v1238_v61 = vsub.f32 0.0, %v1206_v7 }
 0x17e   :  { %7152 = vst [vmem:[#allocation173_spill] sm:$0xff] %v5081_v37  ;;  %v1214_v18 = vand.u32 2147483647, %v5081_v37  ;;  %v1215_v1 = vand.u32 2147483647, %v5087_v35  ;;  %v5222_v10 = vmul.f32 0.5, %v5047_v25 }
 0x17f   :  { %7154 = vst [vmem:[#allocation176_spill] sm:$0xff] %v5087_v35  ;;  %v1216_v51 = vand.u32 2147483647, %v5092_v54  ;;  %v1217_v13 = vand.u32 2147483647, %v5097_v62  ;;  %v1239_v22 = vsub.f32 0.0, %v1207_v32 }
 0x180   :  { %7155 = vst [vmem:[#allocation82_spill] sm:$0xff] %v5092_v54  ;;  %v1218_v40 = vand.u32 2147483647, %v5103_v12  ;;  %v1219_v53 = vand.u32 2147483647, %v5108_v48  ;;  %v1240_v56 = vsub.f32 0.0, %v1208_v46 }
 0x181   :  { %7156 = vst [vmem:[#allocation83_spill] sm:$0xff] %v5097_v62  ;;  %v1221_v29 = vand.u32 2147483647, %v5115_v26  ;;  %v5230_v2 = vmul.f32 0.5, %v5057_v58  ;;  %v1222_v7 = vand.u32 2147483647, %v5118_v8 }
 0x182   :  { %7158 = vst [vmem:[#allocation84_spill] sm:$0xff] %v5103_v12  ;;  %v1223_v25 = vand.u32 2147483647, %v5121_v9  ;;  %v1241_v50 = vsub.f32 0.0, %v1209_v17  ;;  %v1242_v32 = vsub.f32 0.0, %v1210_v45  ;;  %v5236_v16 = vmul.f32 0.5, %v1109_v36 }
 0x183   :  { %7159 = vst [vmem:[#allocation144_spill] sm:$0xff] %v5108_v48  ;;  %v1225_v34 = vand.u32 2147483647, %v5128_v3  ;;  %v1272_v46 = vmul.f32 1.442695, %v1239_v22  ;;  %v1245_v28 = vsub.f32 0.0, %v1213_v44 }
 0x184   :  { %7161 = vst [vmem:[#allocation85_spill] sm:$0xff] %v5111_v57  ;;  %v1274_v57 = vmul.f32 1.442695, %v1240_v56  ;;  %v1246_v45 = vsub.f32 0.0, %v1214_v18  ;;  %v1278_v36 = vmul.f32 1.442695, %v1242_v32 }
 0x185   :  { %7163 = vst [vmem:[#allocation86_spill] sm:$0xff] %v5115_v26  ;;  %v1226_v26 = vand.u32 2147483647, %v5131_v49  ;;  %v1247_v22 = vsub.f32 0.0, %v1215_v1  ;;  %v1231_v17 = vand.u32 2147483647, %v5156_v4 }
 0x186   :  { %7165 = vst [vmem:[#allocation50_spill] sm:$0xff] %v5118_v8  ;;  %v1244_v8 = vsub.f32 0.0, %v1212_v60  ;;  %v1248_v60 = vsub.f32 0.0, %v1216_v51  ;;  %v1232_v44 = vand.u32 2147483647, %v5161_v20  ;;  %v1250_v18 = vsub.f32 0.0, %v1218_v40 }
 0x187   :  { %7167 = vst [vmem:[#allocation87_spill] sm:$0xff] %v5121_v9  ;;  %v1233_v32 = vand.u32 2147483647, %v5167_v41  ;;  %v1251_v1 = vsub.f32 0.0, %v1219_v53  ;;  %v1236_v53 = vand.u32 2147483647, %v5187_v39 }
 0x188   :  { %7170 = vst [vmem:[#allocation54_spill] sm:$0xff] %v5125_v19  ;;  %v1282_v56 = vmul.f32 1.442695, %v1244_v8  ;;  %v1252_v8 = vsub.f32 0.0, %v1220_v42  ;;  %v1290_v51 = vmul.f32 1.442695, %v1248_v60 }
 0x189   :  { %7172 = vst [vmem:[#allocation95_spill] sm:$0xff] %v5128_v3  ;;  %v1237_v42 = vand.u32 2147483647, %v5192_v59  ;;  %v1296_v60 = vmul.f32 1.442695, %v1251_v1 }
 0x18a   :  { %7174 = vst [vmem:[#allocation98_spill] sm:$0xff] %v5131_v49 }
 0x18b   :  { %7177 = vst [vmem:[#allocation100_spill] sm:$0xff] %v5135_v21 }
 0x18c   :  { %7178 = vst [vmem:[#allocation79_spill] sm:$0xff] %v5140_v23 }
 0x18d   :  { %7179 = vst [vmem:[#allocation47_spill] sm:$0xff] %v5145_v31 }
 0x18e   :  { %7181 = vst [vmem:[#allocation81_spill] sm:$0xff] %v5151_v33 }
 0x18f   :  { %7182 = vst [vmem:[#allocation49_spill] sm:$0xff] %v5156_v4 }
 0x190   :  { %7183 = vst [vmem:[#allocation66_spill] sm:$0xff] %v5161_v20 }
 0x191   :  { %7185 = vst [vmem:[#allocation40_spill] sm:$0xff] %v5167_v41  ;;  %v1258_v41 = vsub.f32 0.0, %v1226_v26 }
 0x192   :  { %7186 = vst [vmem:[#allocation126_spill] sm:$0xff] %v5172_v11 }
 0x193   :  { %7187 = vst [vmem:[#allocation127_spill] sm:$0xff] %v5177_v15 }
 0x194   :  { %7191 = vst [vmem:[#allocation128_spill] sm:$0xff] %v5182_v63  ;;  %v1243_v63 = vsub.f32 0.0, %v1211_v47  ;;  %v1229_v47 = vand.u32 2147483647, %v5145_v31 }
 0x195   :  { %7192 = vst [vmem:[#allocation129_spill] sm:$0xff] %v5187_v39 }
 0x196   :  { %7193 = vst [vmem:[#allocation130_spill] sm:$0xff] %v5192_v59  ;;  %v1280_v58 = vmul.f32 1.442695, %v1243_v63  ;;  %v1288_v63 = vmul.f32 1.442695, %v1247_v22  ;;  %v1261_v20 = vsub.f32 0.0, %v1229_v47 }
 0x197   :  { %7197 = vst [vmem:[#allocation131_spill] sm:$0xff] %v5198_v55  ;;  %v1224_v55 = vand.u32 2147483647, %v5125_v19  ;;  %v1276_v19 = vmul.f32 1.442695, %v1241_v50  ;;  %v1263_v59 = vsub.f32 0.0, %v1231_v17 }
 0x198   :  { %7200 = vst [vmem:[#allocation132_spill] sm:$0xff] %v5206_v0  ;;  %v1270_v0 = vmul.f32 1.442695, %v1238_v61  ;;  %v1228_v61 = vand.u32 2147483647, %v5140_v23 }
 0x199   :  { %7203 = vst [vmem:[#allocation134_spill] sm:$0xff] %v5214_v38  ;;  %v1227_v38 = vand.u32 2147483647, %v5135_v21  ;;  %v1284_v50 = vmul.f32 1.442695, %v1245_v28  ;;  %v1253_v28 = vsub.f32 0.0, %v1221_v29 }
 0x19a   :  { %7204 = vst [vmem:[#allocation120_spill] sm:$0xff] %v5222_v10  ;;  %2327 = vpow2.f32 %v1270_v0  ;;  %v1230_v10 = vand.u32 2147483647, %v5151_v33  ;;  %v1286_v0 = vmul.f32 1.442695, %v1246_v45  ;;  %v1257_v29 = vsub.f32 0.0, %v1225_v34 }
 0x19b   :  { %7205 = vst [vmem:[#allocation136_spill] sm:$0xff] %v5230_v2  ;;  %2329 = vpow2.f32 %v1272_v46  ;;  %v1249_v2 = vsub.f32 0.0, %v1217_v13  ;;  %v1259_v39 = vsub.f32 0.0, %v1227_v38 }
 0x19c   :  { %7206 = vst [vmem:[#allocation138_spill] sm:$0xff] %v5236_v16  ;;  %2331 = vpow2.f32 %v1274_v57  ;;  %v1234_v57 = vand.u32 2147483647, %v5172_v11  ;;  %v1262_v1 = vsub.f32 0.0, %v1230_v10  ;;  %v1310_v10 = vmul.f32 1.442695, %v1258_v41 }
 0x19d   :  { %2333 = vpow2.f32 %v1276_v19  ;;  %v1235_v19 = vand.u32 2147483647, %v5177_v15  ;;  %v1292_v40 = vmul.f32 1.442695, %v1249_v2  ;;  %v1256_v15 = vsub.f32 0.0, %v1224_v55 }
 0x19e   :  { %2335 = vpow2.f32 %v1278_v36  ;;  %v1294_v36 = vmul.f32 1.442695, %v1250_v18  ;;  %v1298_v2 = vmul.f32 1.442695, %v1252_v8  ;;  %v1264_v8 = vsub.f32 0.0, %v1232_v44 }
 0x19f   :  { %2337 = vpow2.f32 %v1280_v58  ;;  %v1254_v58 = vsub.f32 0.0, %v1222_v7  ;;  %v1300_v7 = vmul.f32 1.442695, %v1253_v28  ;;  %v1306_v26 = vmul.f32 1.442695, %v1256_v15 }
 0x1a0   :  { %v5249_v46 = vpop.eup %2327  ;;  %2339 = vpow2.f32 %v1282_v56  ;;  %v1255_v56 = vsub.f32 0.0, %v1223_v25  ;;  %v1266_v28 = vsub.f32 0.0, %v1234_v57  ;;  %v1312_v44 = vmul.f32 1.442695, %v1259_v39 }
 0x1a1   :  { %v5252_v13 = vpop.eup %2329  ;;  %2341 = vpow2.f32 %v1284_v50  ;;  %v1302_v25 = vmul.f32 1.442695, %v1254_v58  ;;  %v1268_v58 = vsub.f32 0.0, %v1236_v53  ;;  %v1316_v15 = vmul.f32 1.442695, %v1261_v20 }
 0x1a2   :  { %v5255_v45 = vpop.eup %2331  ;;  %2343 = vpow2.f32 %v1286_v0  ;;  %v1260_v0 = vsub.f32 0.0, %v1228_v61  ;;  %v1304_v34 = vmul.f32 1.442695, %v1255_v56  ;;  %v1308_v61 = vmul.f32 1.442695, %v1257_v29 }
 0x1a3   :  { %v5258_v22 = vpop.eup %2333  ;;  %2345 = vpow2.f32 %v1288_v63  ;;  %v1320_v57 = vmul.f32 1.442695, %v1263_v59  ;;  %v1322_v29 = vmul.f32 1.442695, %v1264_v8  ;;  %v1326_v4 = vmul.f32 1.442695, %v1266_v28 }
 0x1a4   :  { %v5261_v11 = vpop.eup %2335  ;;  %2347 = vpow2.f32 %v1290_v51  ;;  %v1265_v51 = vsub.f32 0.0, %v1233_v32  ;;  %v1314_v32 = vmul.f32 1.442695, %v1260_v0  ;;  %v1330_v41 = vmul.f32 1.442695, %v1268_v58 }
 0x1a5   :  { %v5263_v50 = vpop.eup %2337  ;;  %2349 = vpow2.f32 %v1292_v40  ;;  %v1267_v40 = vsub.f32 0.0, %v1235_v19  ;;  %v1334_v39 = vadd.f32 1.0, %v5249_v46  ;;  %v1430_v0 = vsub.f32 0.0, %v4949_v14 }
 0x1a6   :  { %v5265_v18 = vpop.eup %2339  ;;  %2351 = vpow2.f32 %v1294_v36  ;;  %v1269_v36 = vsub.f32 0.0, %v1237_v42  ;;  %v1431_v20 = vsub.f32 0.0, %v4954_v43  ;;  %v1335_v59 = vadd.f32 1.0, %v5252_v13 }
 0x1a7   :  { %v5267_v63 = vpop.eup %2341  ;;  %2353 = vpow2.f32 %v1296_v60  ;;  %v1328_v42 = vmul.f32 1.442695, %v1267_v40  ;;  %v1432_v8 = vsub.f32 0.0, %v5040_v6  ;;  %v5284_v28 = vadd.f32 1.0, %v5261_v11 }
 0x1a8   :  { %v5269_v55 = vpop.eup %2343  ;;  %2355 = vpow2.f32 %v1298_v2  ;;  %v1318_v2 = vmul.f32 1.442695, %v1262_v1  ;;  %v1433_v46 = vsub.f32 0.0, %v5045_v30  ;;  %v1434_v13 = vsub.f32 0.0, %v5055_v27 }
 0x1a9   :  { %v5271_v38 = vpop.eup %2345  ;;  %2357 = vpow2.f32 %v1300_v7  ;;  %v1324_v7 = vmul.f32 1.442695, %v1265_v51  ;;  %v5297_v11 = vmax.f32 %v1431_v20, 0.0  ;;  %v1438_v56 = vsub.f32 0.0, %v5081_v37 }
 0x1aa   :  { %v5273_v47 = vpop.eup %2347  ;;  %2359 = vpow2.f32 %v1302_v25  ;;  %v1332_v25 = vmul.f32 1.442695, %v1269_v36  ;;  %v5293_v36 = vadd.f32 1.0, %v5265_v18  ;;  %v1437_v18 = vsub.f32 0.0, %v5076_v5 }
 0x1ab   :  { %v2350_v17 = vpop.eup %2349  ;;  %2361 = vpow2.f32 %v1304_v34  ;;  %v1336_v34 = vadd.f32 1.0, %v5255_v45  ;;  %v1435_v45 = vsub.f32 0.0, %v5065_v52  ;;  %v1449_v27 = vsub.f32 0.0, %v5128_v3 }
 0x1ac   :  { %v2352_v60 = vpop.eup %2351  ;;  %2363 = vpow2.f32 %v1306_v26  ;;  %v1337_v26 = vadd.f32 1.0, %v5258_v22  ;;  %v5295_v22 = vmax.f32 %v1430_v0, 0.0 }
 0x1ad   :  { %v2354_v19 = vpop.eup %2353  ;;  %2365 = vpow2.f32 %v1308_v61  ;;  %v5288_v61 = vadd.f32 1.0, %v5263_v50  ;;  %v1436_v50 = vsub.f32 0.0, %v5071_v24  ;;  %v5316_v20 = vmax.f32 %v1435_v45, 0.0 }
 0x1ae   :  { %v2356_v53 = vpop.eup %2355  ;;  %2367 = vpow2.f32 %v1310_v10  ;;  %v5324_v16 = vadd.f32 1.0, %v2352_v60  ;;  %v5329_v45 = vadd.f32 1.0, %v2354_v19  ;;  %v1441_v60 = vsub.f32 0.0, %v5097_v62 }
 0x1af   :  { %v2358_v33 = vpop.eup %2357  ;;  %2369 = vpow2.f32 %v1312_v44  ;;  %v5300_v44 = vadd.f32 1.0, %v5267_v63  ;;  %v5314_v63 = vmax.f32 %v1434_v13, 0.0  ;;  %v5334_v5 = vadd.f32 1.0, %v2356_v53 }
 0x1b0   :  { %v2360_v1 = vpop.eup %2359  ;;  %2371 = vpow2.f32 %v1314_v32  ;;  %v5303_v32 = vmax.f32 %v1432_v8, 0.0  ;;  %v5336_v37 = vadd.f32 1.0, %v2358_v33  ;;  %v5343_v19 = vmax.f32 %v1438_v56, 0.0 }
 0x1b1   :  { %v2362_v51 = vpop.eup %2361  ;;  %2373 = vpow2.f32 %v1316_v15  ;;  %v1442_v53 = vsub.f32 0.0, %v5103_v12  ;;  %v1443_v56 = vsub.f32 0.0, %v5108_v48 }
 0x1b2   :  { %v2364_v40 = vpop.eup %2363  ;;  %2375 = vpow2.f32 %v1318_v2  ;;  %v5306_v2 = vadd.f32 1.0, %v5269_v55  ;;  %v5321_v55 = vadd.f32 1.0, %v2350_v17 }
 0x1b3   :  { %v2366_v58 = vpop.eup %2365  ;;  %2377 = vpow2.f32 %v1320_v57  ;;  %v5309_v57 = vmax.f32 %v1433_v46, 0.0 }
 0x1b4   :  { %v2368_v10 = vpop.eup %2367  ;;  %2379 = vpow2.f32 %v1322_v29  ;;  %v5312_v29 = vadd.f32 1.0, %v5271_v38  ;;  %v5327_v38 = vmax.f32 %v1436_v50, 0.0  ;;  %v5341_v50 = vadd.f32 1.0, %v2362_v51 }
 0x1b5   :  { %v2370_v15 = vpop.eup %2369  ;;  %2381 = vpow2.f32 %v1324_v7  ;;  %v5319_v7 = vadd.f32 1.0, %v5273_v47  ;;  %v5332_v47 = vmax.f32 %v1437_v18, 0.0  ;;  %v5352_v62 = vadd.f32 1.0, %v2368_v10 }
 0x1b6   :  { %v2372_v0 = vpop.eup %2371  ;;  %2383 = vpow2.f32 %v1326_v4  ;;  %v1439_v4 = vsub.f32 0.0, %v5087_v35  ;;  %v5339_v35 = vadd.f32 1.0, %v2360_v1 }
 0x1b7   :  { %v2374_v8 = vpop.eup %2373  ;;  %2385 = vpow2.f32 %v1328_v42  ;;  %v1440_v42 = vsub.f32 0.0, %v5092_v54  ;;  %v5345_v54 = vadd.f32 1.0, %v2364_v40 }
 0x1b8   :  { %v2376_v46 = vpop.eup %2375  ;;  %2387 = vpow2.f32 %v1330_v41  ;;  %v5348_v18 = vmax.f32 %v1439_v4, 0.0  ;;  %v5362_v4 = vadd.f32 1.0, %v2372_v0  ;;  %v5367_v12 = vadd.f32 1.0, %v2374_v8  ;;  %v7209_v0 = vld [vmem:[#allocation86_spill] sm:$0xff] }
 0x1b9   :  { %v2378_v13 = vpop.eup %2377  ;;  %2389 = vpow2.f32 %v1332_v25  ;;  %v5354_v1 = vmax.f32 %v1440_v42, 0.0  ;;  %v5373_v48 = vadd.f32 1.0, %v2376_v46 }
 0x1ba   :  { %v2380_v17 = vpop.eup %2379  ;;  %2391 = vlog2.f32 %v1334_v39  ;;  %v5350_v39 = vadd.f32 1.0, %v2366_v58  ;;  %v7207_v58 = vld [vmem:[#allocation85_spill] sm:$0xff] }
 0x1bb   :  { %v2382_v41 = vpop.eup %2381  ;;  %2393 = vlog2.f32 %v1335_v59  ;;  %v5356_v59 = vadd.f32 1.0, %v2370_v15  ;;  %v1444_v10 = vsub.f32 0.0, %v7207_v58  ;;  %v5370_v15 = vmax.f32 %v1442_v53, 0.0 }
 0x1bc   :  { %v2384_v25 = vpop.eup %2383  ;;  %2395 = vlog2.f32 %v1336_v34  ;;  %v5360_v34 = vmax.f32 %v1441_v60, 0.0  ;;  %v5380_v8 = vadd.f32 1.0, %v2380_v17 }
 0x1bd   :  { %v2386_v33 = vpop.eup %2385  ;;  %2397 = vlog2.f32 %v1337_v26  ;;  %7208 = vst [vmem:[#allocation140_spill] sm:$0xff] %v5370_v15  ;;  %v5378_v26 = vadd.f32 1.0, %v2378_v13  ;;  %v5388_v46 = vmax.f32 %v1444_v10, 0.0  ;;  %v5391_v58 = vadd.f32 1.0, %v2384_v25 }
 0x1be   :  { %v2388_v51 = vpop.eup %2387  ;;  %2399 = vlog2.f32 %v5284_v28  ;;  %v5385_v28 = vadd.f32 1.0, %v2382_v41  ;;  %v5393_v13 = vadd.f32 1.0, %v2386_v33  ;;  %v7212_v41 = vld [vmem:[#allocation50_spill] sm:$0xff]  ;;  %v1447_v25 = vsub.f32 0.0, %v5121_v9 }
 0x1bf   :  { %v2390_v40 = vpop.eup %2389  ;;  %2401 = vlog2.f32 %v5288_v61  ;;  %v1445_v61 = vsub.f32 0.0, %v7209_v0  ;;  %7211 = vst [vmem:[#allocation125_spill] sm:$0xff] %v5388_v46 }
 0x1c0   :  { %v2392_v42 = vpop.eup %2391  ;;  %2403 = vlog2.f32 %v5293_v36  ;;  %v5383_v36 = vmax.f32 %v1443_v56, 0.0  ;;  %v5397_v56 = vadd.f32 1.0, %v2388_v51  ;;  %v7214_v51 = vld [vmem:[#allocation54_spill] sm:$0xff] }
 0x1c1   :  { %v2394_v60 = vpop.eup %2393  ;;  %2405 = vlog2.f32 %v5300_v44  ;;  %v5401_v10 = vmax.f32 %v1445_v61, 0.0  ;;  %v5403_v44 = vadd.f32 1.0, %v2390_v40  ;;  %v1451_v40 = vsub.f32 0.0, %v5135_v21 }
 0x1c2   :  { %v2396_v24 = vpop.eup %2395  ;;  %2407 = vlog2.f32 %v5306_v2  ;;  %7210 = vst [vmem:[#allocation122_spill] sm:$0xff] %v5383_v36  ;;  %v5408_v2 = vmul.f32 0.6931472, %v2392_v42  ;;  %v5413_v30 = vmul.f32 0.6931472, %v2394_v60  ;;  %v1453_v42 = vsub.f32 0.0, %v5145_v31 }
 0x1c3   :  { %v2398_v53 = vpop.eup %2397  ;;  %2409 = vlog2.f32 %v5312_v29  ;;  %v1446_v29 = vsub.f32 0.0, %v7212_v41  ;;  %7213 = vst [vmem:[#allocation65_spill] sm:$0xff] %v5401_v10  ;;  %v7215_v60 = vld [vmem:[#allocation81_spill] sm:$0xff]  ;;  %v7218_v41 = vld [vmem:[#allocation40_spill] sm:$0xff]  ;;  %v7220_v10 = vld [vmem:[#allocation127_spill] sm:$0xff] }
 0x1c4   :  { %v2400_v43 = vpop.eup %2399  ;;  %2411 = vlog2.f32 %v5319_v7  ;;  %v5418_v7 = vmul.f32 0.6931472, %v2396_v24  ;;  %v5423_v3 = vmul.f32 0.6931472, %v2398_v53  ;;  %v7217_v24 = vld [vmem:[#allocation66_spill] sm:$0xff] }
 0x1c5   :  { %v2402_v17 = vpop.eup %2401  ;;  %2413 = vlog2.f32 %v5321_v55  ;;  %v1448_v55 = vsub.f32 0.0, %v7214_v51  ;;  %v7216_v51 = vld [vmem:[#allocation49_spill] sm:$0xff]  ;;  %v5428_v21 = vmul.f32 0.6931472, %v2400_v43  ;;  %v7219_v53 = vld [vmem:[#allocation126_spill] sm:$0xff] }
 0x1c6   :  { %v2404_v6 = vpop.eup %2403  ;;  %2415 = vlog2.f32 %v5324_v16  ;;  %v1450_v16 = vsub.f32 0.0, %v5131_v49  ;;  %v1455_v49 = vsub.f32 0.0, %v7216_v51  ;;  %v5433_v31 = vmul.f32 0.6931472, %v2402_v17  ;;  %v7221_v43 = vld [vmem:[#allocation129_spill] sm:$0xff]  ;;  %v7222_v36 = vld [vmem:[#allocation130_spill] sm:$0xff] }
 0x1c7   :  { %v2406_v33 = vpop.eup %2405  ;;  %2417 = vlog2.f32 %v5329_v45  ;;  %v1452_v45 = vsub.f32 0.0, %v5140_v23  ;;  %v1457_v23 = vsub.f32 0.0, %v7218_v41  ;;  %v5438_v51 = vmul.f32 0.6931472, %v2404_v6 }
 0x1c8   :  { %v2408_v61 = vpop.eup %2407  ;;  %2419 = vlog2.f32 %v5334_v5  ;;  %v1454_v5 = vsub.f32 0.0, %v7215_v60  ;;  %v1459_v60 = vsub.f32 0.0, %v7220_v10  ;;  %v5443_v41 = vmul.f32 0.6931472, %v2406_v33 }
 0x1c9   :  { %v2410_v14 = vpop.eup %2409  ;;  %2421 = vlog2.f32 %v5336_v37  ;;  %v1456_v37 = vsub.f32 0.0, %v7217_v24  ;;  %v1461_v24 = vsub.f32 0.0, %v7222_v36  ;;  %v5446_v17 = vmax.f32 %v1446_v29, 0.0 }
 0x1ca   :  { %v2412_v52 = vpop.eup %2411  ;;  %2423 = vlog2.f32 %v5339_v35  ;;  %v1458_v35 = vsub.f32 0.0, %v7219_v53  ;;  %v5450_v10 = vmul.f32 0.6931472, %v2408_v61  ;;  %v5453_v6 = vmax.f32 %v1448_v55, 0.0 }
 0x1cb   :  { %v2414_v9 = vpop.eup %2413  ;;  %2425 = vlog2.f32 %v5341_v50  ;;  %v1460_v50 = vsub.f32 0.0, %v7221_v43  ;;  %v5457_v36 = vmul.f32 0.6931472, %v2410_v14  ;;  %v5460_v33 = vmax.f32 %v1450_v16, 0.0 }
 0x1cc   :  { %v2416_v0 = vpop.eup %2415  ;;  %2427 = vlog2.f32 %v5345_v54  ;;  %v5448_v54 = vmax.f32 %v1447_v25, 0.0  ;;  %7223 = vst [vmem:[#allocation67_spill] sm:$0xff] %v5450_v10  ;;  %v5464_v25 = vmul.f32 0.6931472, %v2412_v52  ;;  %v5467_v61 = vmax.f32 %v1452_v45, 0.0 }
 0x1cd   :  { %v2418_v46 = vpop.eup %2417  ;;  %2429 = vlog2.f32 %v5350_v39  ;;  %v5455_v39 = vmax.f32 %v1449_v27, 0.0  ;;  %7224 = vst [vmem:[#allocation68_spill] sm:$0xff] %v5457_v36  ;;  %v5471_v55 = vmul.f32 0.6931472, %v2414_v9  ;;  %v5474_v14 = vmax.f32 %v1454_v5, 0.0 }
 0x1ce   :  { %v2420_v15 = vpop.eup %2419  ;;  %2431 = vlog2.f32 %v5352_v62  ;;  %v5462_v62 = vmax.f32 %v1451_v40, 0.0  ;;  %7225 = vst [vmem:[#allocation69_spill] sm:$0xff] %v5464_v25  ;;  %v5478_v40 = vmul.f32 0.6931472, %v2416_v0  ;;  %v5481_v52 = vmax.f32 %v1456_v37, 0.0 }
 0x1cf   :  { %v2422_v53 = vpop.eup %2421  ;;  %2433 = vlog2.f32 %v5356_v59  ;;  %v5469_v59 = vmax.f32 %v1453_v42, 0.0  ;;  %7226 = vst [vmem:[#allocation70_spill] sm:$0xff] %v5471_v55  ;;  %v5485_v42 = vmul.f32 0.6931472, %v2418_v46  ;;  %v5488_v9 = vmax.f32 %v1458_v35, 0.0 }
 0x1d0   :  { %v2424_v43 = vpop.eup %2423  ;;  %2435 = vlog2.f32 %v5362_v4  ;;  %v5476_v4 = vmax.f32 %v1455_v49, 0.0  ;;  %7227 = vst [vmem:[#allocation71_spill] sm:$0xff] %v5478_v40  ;;  %v5492_v5 = vmul.f32 0.6931472, %v2420_v15  ;;  %v5495_v0 = vmax.f32 %v1460_v50, 0.0 }
 0x1d1   :  { %v2426_v29 = vpop.eup %2425  ;;  %2437 = vlog2.f32 %v5367_v12  ;;  %v5483_v12 = vmax.f32 %v1457_v23, 0.0  ;;  %v5499_v37 = vmul.f32 0.6931472, %v2422_v53  ;;  %v5508_v46 = vadd.f32 %v5297_v11, %v5413_v30 }
 0x1d2   :  { %v2428_v27 = vpop.eup %2427  ;;  %2439 = vlog2.f32 %v5373_v48  ;;  %v5490_v48 = vmax.f32 %v1459_v60, 0.0  ;;  %v5510_v60 = vmul.f32 0.6931472, %v2424_v43  ;;  %v5526_v11 = vadd.f32 %v5314_v63, %v5428_v21 }
 0x1d3   :  { %v2430_v16 = vpop.eup %2429  ;;  %2441 = vlog2.f32 %v5378_v26  ;;  %v5497_v26 = vmax.f32 %v1461_v24, 0.0  ;;  %7228 = vst [vmem:[#allocation72_spill] sm:$0xff] %v5499_v37  ;;  %v5551_v43 = vadd.f32 %v5348_v18, %v5457_v36  ;;  %v7242_v36 = vld [vmem:[#allocation140_spill] sm:$0xff] }
 0x1d4   :  { %v2432_v45 = vpop.eup %2431  ;;  %2443 = vlog2.f32 %v5380_v8  ;;  %v5504_v8 = vadd.f32 %v5295_v22, %v5408_v2  ;;  %7229 = vst [vmem:[#allocation73_spill] sm:$0xff] %v5508_v46  ;;  %v5521_v22 = vmul.f32 0.6931472, %v2426_v29  ;;  %v5543_v63 = vmul.f32 0.6931472, %v2430_v16 }
 0x1d5   :  { %v2434_v49 = vpop.eup %2433  ;;  %2445 = vlog2.f32 %v5385_v28  ;;  %v5515_v28 = vadd.f32 %v5303_v32, %v5418_v7  ;;  %7232 = vst [vmem:[#allocation137_spill] sm:$0xff] %v5526_v11  ;;  %v5532_v32 = vmul.f32 0.6931472, %v2428_v27  ;;  %v5557_v50 = vmul.f32 0.6931472, %v2432_v45  ;;  %v7244_v45 = vld [vmem:[#allocation122_spill] sm:$0xff] }
 0x1d6   :  { %v2436_v23 = vpop.eup %2435  ;;  %2447 = vlog2.f32 %v5391_v58  ;;  %v5519_v58 = vadd.f32 %v5309_v57, %v5423_v3  ;;  %v5537_v57 = vadd.f32 %v5327_v38, %v5438_v51  ;;  %7237 = vst [vmem:[#allocation59_spill] sm:$0xff] %v5551_v43  ;;  %v5565_v27 = vadd.f32 %v5360_v34, %v5471_v55  ;;  %v7291_v11 = vld [vmem:[#allocation130_spill] sm:$0xff] }
 0x1d7   :  { %v2438_v15 = vpop.eup %2437  ;;  %2449 = vlog2.f32 %v5393_v13  ;;  %7230 = vst [vmem:[#allocation133_spill] sm:$0xff] %v5515_v28  ;;  %v5530_v13 = vadd.f32 %v5316_v20, %v5433_v31  ;;  %v5547_v20 = vadd.f32 %v5343_v19, %v5450_v10  ;;  %v5561_v29 = vmul.f32 0.6931472, %v2436_v23  ;;  %v7246_v10 = vld [vmem:[#allocation125_spill] sm:$0xff] }
 0x1d8   :  { %7231 = vst [vmem:[#allocation135_spill] sm:$0xff] %v5519_v58  ;;  %v2440_v24 = vpop.eup %2439  ;;  %2451 = vlog2.f32 %v5397_v56  ;;  %v5541_v56 = vadd.f32 %v5332_v47, %v5443_v41  ;;  %v5559_v47 = vmul.f32 0.6931472, %v2434_v49  ;;  %v5567_v16 = vmul.f32 0.6931472, %v2438_v15  ;;  %v7248_v15 = vld [vmem:[#allocation65_spill] sm:$0xff] }
 0x1d9   :  { %7233 = vst [vmem:[#allocation139_spill] sm:$0xff] %v5530_v13  ;;  %v2442_v53 = vpop.eup %2441  ;;  %2453 = vlog2.f32 %v5403_v44  ;;  %v5555_v44 = vadd.f32 %v5354_v1, %v5464_v25  ;;  %v5569_v18 = vmul.f32 0.6931472, %v2440_v24  ;;  %v5573_v1 = vadd.f32 %v7242_v36, %v5478_v40  ;;  %v7290_v13 = vld [vmem:[#allocation129_spill] sm:$0xff] }
 0x1da   :  { %7234 = vst [vmem:[#allocation141_spill] sm:$0xff] %v5537_v57  ;;  %v2444_v35 = vpop.eup %2443  ;;  %v5577_v25 = vadd.f32 %v7244_v45, %v5485_v42  ;;  %v5579_v23 = vmul.f32 0.6931472, %v2442_v53  ;;  %v5583_v34 = vadd.f32 %v7246_v10, %v5492_v5  ;;  %v5587_v55 = vadd.f32 %v7248_v15, %v5499_v37  ;;  %v7289_v57 = vld [vmem:[#allocation127_spill] sm:$0xff] }
 0x1db   :  { %7235 = vst [vmem:[#allocation145_spill] sm:$0xff] %v5541_v56  ;;  %v2446_v38 = vpop.eup %2445  ;;  %v5591_v24 = vadd.f32 %v5446_v17, %v5510_v60  ;;  %v5593_v40 = vmul.f32 0.6931472, %v2444_v35  ;;  %v5597_v45 = vadd.f32 %v5448_v54, %v5521_v22  ;;  %v5601_v53 = vadd.f32 %v5453_v6, %v5532_v32  ;;  %v7288_v56 = vld [vmem:[#allocation126_spill] sm:$0xff] }
 0x1dc   :  { %7236 = vst [vmem:[#allocation57_spill] sm:$0xff] %v5547_v20  ;;  %v2448_v19 = vpop.eup %2447  ;;  %v5605_v10 = vadd.f32 %v5455_v39, %v5543_v63  ;;  %v5607_v37 = vmul.f32 0.6931472, %v2446_v38  ;;  %v5611_v17 = vadd.f32 %v5460_v33, %v5557_v50  ;;  %v5615_v35 = vadd.f32 %v5462_v62, %v5559_v47  ;;  %v7287_v20 = vld [vmem:[#allocation40_spill] sm:$0xff] }
 0x1dd   :  { %7238 = vst [vmem:[#allocation149_spill] sm:$0xff] %v5555_v44  ;;  %v2450_v49 = vpop.eup %2449  ;;  %v5619_v54 = vadd.f32 %v5467_v61, %v5561_v29  ;;  %v5621_v6 = vmul.f32 0.6931472, %v2448_v19  ;;  %v5625_v39 = vadd.f32 %v5469_v59, %v5567_v16  ;;  %v5629_v38 = vadd.f32 %v5474_v14, %v5569_v18  ;;  %v7286_v44 = vld [vmem:[#allocation66_spill] sm:$0xff] }
 0x1de   :  { %7239 = vst [vmem:[#allocation61_spill] sm:$0xff] %v5557_v50  ;;  %v2452_v36 = vpop.eup %2451  ;;  %v5632_v50 = vmul.f32 0.6931472, %v2450_v49  ;;  %v5638_v61 = vadd.f32 %v5476_v4, %v5579_v23  ;;  %v5645_v59 = vadd.f32 %v5481_v52, %v5593_v40  ;;  %v5651_v49 = vadd.f32 %v5483_v12, %v5607_v37 }
 0x1df   :  { %7240 = vst [vmem:[#allocation150_spill] sm:$0xff] %v5561_v29  ;;  %v2454_v15 = vpop.eup %2453  ;;  %v5634_v62 = vmul.f32 0.6931472, %v2452_v36 }
 0x1e0   :  { %7241 = vst [vmem:[#allocation63_spill] sm:$0xff] %v5565_v27  ;;  %v5641_v29 = vmul.f32 0.6931472, %v2454_v15  ;;  %v5658_v15 = vadd.f32 %v5488_v9, %v5621_v6  ;;  %v5665_v12 = vadd.f32 %v5490_v48, %v5632_v50 }
 0x1e1   :  { %7243 = vst [vmem:[#allocation151_spill] sm:$0xff] %v5573_v1  ;;  %v5669_v36 = vadd.f32 %v5495_v0, %v5634_v62  ;;  %v7285_v1 = vld [vmem:[#allocation49_spill] sm:$0xff] }
 0x1e2   :  { %7245 = vst [vmem:[#allocation152_spill] sm:$0xff] %v5577_v25  ;;  %v5675_v9 = vadd.f32 %v5497_v26, %v5641_v29  ;;  %v7284_v25 = vld [vmem:[#allocation81_spill] sm:$0xff] }
 0x1e3   :  { %7247 = vst [vmem:[#allocation153_spill] sm:$0xff] %v5583_v34  ;;  %v7283_v34 = vld [vmem:[#allocation47_spill] sm:$0xff] }
 0x1e4   :  { %7249 = vst [vmem:[#allocation155_spill] sm:$0xff] %v5587_v55  ;;  %v7282_v55 = vld [vmem:[#allocation79_spill] sm:$0xff] }
 0x1e5   :  { %7250 = vst [vmem:[#allocation156_spill] sm:$0xff] %v5591_v24  ;;  %v7281_v24 = vld [vmem:[#allocation100_spill] sm:$0xff] }
 0x1e6   :  { %7251 = vst [vmem:[#allocation158_spill] sm:$0xff] %v5597_v45  ;;  %v7280_v45 = vld [vmem:[#allocation98_spill] sm:$0xff] }
 0x1e7   :  { %7252 = vst [vmem:[#allocation159_spill] sm:$0xff] %v5601_v53  ;;  %v7279_v53 = vld [vmem:[#allocation95_spill] sm:$0xff] }
 0x1e8   :  { %7253 = vst [vmem:[#allocation161_spill] sm:$0xff] %v5605_v10  ;;  %v7278_v10 = vld [vmem:[#allocation54_spill] sm:$0xff] }
 0x1e9   :  { %7254 = vst [vmem:[#allocation162_spill] sm:$0xff] %v5611_v17  ;;  %v7277_v17 = vld [vmem:[#allocation87_spill] sm:$0xff] }
 0x1ea   :  { %7255 = vst [vmem:[#allocation88_spill] sm:$0xff] %v5615_v35  ;;  %v7266_v35 = vld [vmem:[#allocation167_spill] sm:$0xff] }
 0x1eb   :  { %7256 = vst [vmem:[#allocation89_spill] sm:$0xff] %v5619_v54  ;;  %v1564_v14 = vmax.f32 %v7266_v35, 0.0  ;;  %v7267_v54 = vld [vmem:[#allocation170_spill] sm:$0xff] }
 0x1ec   :  { %7257 = vst [vmem:[#allocation90_spill] sm:$0xff] %v5625_v39  ;;  %v1565_v33 = vmax.f32 %v7267_v54, 0.0  ;;  %v7268_v39 = vld [vmem:[#allocation173_spill] sm:$0xff]  ;;  %v1575_v54 = vmax.f32 %v7277_v17, 0.0  ;;  %v1585_v17 = vmax.f32 %v7287_v20, 0.0 }
 0x1ed   :  { %7258 = vst [vmem:[#allocation53_spill] sm:$0xff] %v5629_v38  ;;  %v1566_v52 = vmax.f32 %v7268_v39, 0.0  ;;  %v7269_v38 = vld [vmem:[#allocation176_spill] sm:$0xff]  ;;  %v1576_v39 = vmax.f32 %v7278_v10, 0.0  ;;  %v1586_v10 = vmax.f32 %v7288_v56, 0.0  ;;  %v7296_v20 = vld [vmem:[#allocation157_spill] sm:$0xff] }
 0x1ee   :  { %7259 = vst [vmem:[#allocation91_spill] sm:$0xff] %v5638_v61  ;;  %v1567_v48 = vmax.f32 %v7269_v38, 0.0  ;;  %v7270_v61 = vld [vmem:[#allocation82_spill] sm:$0xff]  ;;  %v1577_v38 = vmax.f32 %v7279_v53, 0.0  ;;  %v1587_v53 = vmax.f32 %v7289_v57, 0.0  ;;  %v7298_v57 = vld [vmem:[#allocation160_spill] sm:$0xff] }
 0x1ef   :  { %7260 = vst [vmem:[#allocation94_spill] sm:$0xff] %v5645_v59  ;;  %v1568_v43 = vmax.f32 %v7270_v61, 0.0  ;;  %v7271_v59 = vld [vmem:[#allocation83_spill] sm:$0xff]  ;;  %v1578_v61 = vmax.f32 %v7280_v45, 0.0  ;;  %v1588_v45 = vmax.f32 %v7290_v13, 0.0  ;;  %v7299_v13 = vmax.f32 %v7298_v57, 0.0 }
 0x1f0   :  { %7261 = vst [vmem:[#allocation97_spill] sm:$0xff] %v5651_v49  ;;  %v1569_v0 = vmax.f32 %v7271_v59, 0.0  ;;  %v7272_v49 = vld [vmem:[#allocation84_spill] sm:$0xff]  ;;  %v1579_v59 = vmax.f32 %v7281_v24, 0.0  ;;  %v1589_v24 = vmax.f32 %v7291_v11, 0.0 }
 0x1f1   :  { %7262 = vst [vmem:[#allocation56_spill] sm:$0xff] %v5658_v15  ;;  %v1570_v19 = vmax.f32 %v7272_v49, 0.0  ;;  %v7273_v15 = vld [vmem:[#allocation144_spill] sm:$0xff]  ;;  %v1580_v49 = vmax.f32 %v7282_v55, 0.0  ;;  %v5741_v46 = vadd.f32 %v7299_v13, %v5423_v3  ;;  %v7306_v13 = vld [vmem:[#allocation69_spill] sm:$0xff] }
 0x1f2   :  { %7263 = vst [vmem:[#allocation124_spill] sm:$0xff] %v5665_v12  ;;  %v1571_v4 = vmax.f32 %v7273_v15, 0.0  ;;  %v7274_v12 = vld [vmem:[#allocation85_spill] sm:$0xff]  ;;  %v1581_v15 = vmax.f32 %v7283_v34, 0.0  ;;  %v7292_v55 = vld [vmem:[#allocation36_spill] sm:$0xff] }
 0x1f3   :  { %7264 = vst [vmem:[#allocation175_spill] sm:$0xff] %v5669_v36  ;;  %v1572_v27 = vmax.f32 %v7274_v12, 0.0  ;;  %v7275_v36 = vld [vmem:[#allocation86_spill] sm:$0xff]  ;;  %v1582_v12 = vmax.f32 %v7284_v25, 0.0  ;;  %v7293_v58 = vmax.f32 %v7292_v55, 0.0  ;;  %v7294_v25 = vld [vmem:[#allocation37_spill] sm:$0xff] }
 0x1f4   :  { %7265 = vst [vmem:[#allocation39_spill] sm:$0xff] %v5675_v9  ;;  %v1573_v26 = vmax.f32 %v7275_v36, 0.0  ;;  %v7276_v9 = vld [vmem:[#allocation50_spill] sm:$0xff]  ;;  %v1583_v36 = vmax.f32 %v7285_v1, 0.0  ;;  %v7295_v1 = vmax.f32 %v7294_v25, 0.0  ;;  %v7300_v11 = vld [vmem:[#allocation164_spill] sm:$0xff] }
 0x1f5   :  { %v1574_v35 = vmax.f32 %v7276_v9, 0.0  ;;  %v1584_v9 = vmax.f32 %v7286_v44, 0.0  ;;  %v5726_v34 = vadd.f32 %v7293_v58, %v5408_v2  ;;  %v7297_v44 = vmax.f32 %v7296_v20, 0.0  ;;  %v7302_v58 = vld [vmem:[#allocation166_spill] sm:$0xff]  ;;  %v7304_v20 = vld [vmem:[#allocation67_spill] sm:$0xff]  ;;  %v7305_v3 = vld [vmem:[#allocation68_spill] sm:$0xff] }
 0x1f6   :  { %v5731_v28 = vadd.f32 %v7295_v1, %v5413_v30  ;;  %v7301_v55 = vmax.f32 %v7300_v11, 0.0  ;;  %v7303_v25 = vmax.f32 %v7302_v58, 0.0  ;;  %v5754_v1 = vadd.f32 %v1564_v14, %v5438_v51  ;;  %v7307_v11 = vld [vmem:[#allocation70_spill] sm:$0xff] }
 0x1f7   :  { %v5736_v56 = vadd.f32 %v7297_v44, %v5418_v7  ;;  %v5757_v7 = vadd.f32 %v1565_v33, %v5443_v41  ;;  %v5760_v44 = vadd.f32 %v1566_v52, %v7304_v20  ;;  %v5763_v57 = vadd.f32 %v1567_v48, %v7305_v3  ;;  %v7309_v33 = vld [vmem:[#allocation72_spill] sm:$0xff] }
 0x1f8   :  { %v5746_v2 = vadd.f32 %v7301_v55, %v5428_v21  ;;  %v5751_v30 = vadd.f32 %v7303_v25, %v5433_v31  ;;  %v5766_v21 = vadd.f32 %v1568_v43, %v7306_v13  ;;  %v5769_v55 = vadd.f32 %v1569_v0, %v7307_v11  ;;  %v7308_v31 = vld [vmem:[#allocation71_spill] sm:$0xff] }
 0x1f9   :  { %v5772_v58 = vadd.f32 %v1570_v19, %v7308_v31  ;;  %v5775_v51 = vadd.f32 %v1571_v4, %v5485_v42  ;;  %v5778_v41 = vadd.f32 %v1572_v27, %v5492_v5  ;;  %v5781_v14 = vadd.f32 %v1573_v26, %v7309_v33  ;;  %v7310_v42 = vld [vmem:[#allocation61_spill] sm:$0xff]  ;;  %v7311_v27 = vld [vmem:[#allocation150_spill] sm:$0xff]  ;;  %v7365_v31 = vld [vmem:[#allocation139_spill] sm:$0xff] }
 0x1fa   :  { %v5784_v52 = vadd.f32 %v1574_v35, %v5510_v60  ;;  %v5787_v43 = vadd.f32 %v1575_v54, %v5521_v22  ;;  %v5790_v48 = vadd.f32 %v1576_v39, %v5532_v32  ;;  %v5793_v19 = vadd.f32 %v1577_v38, %v5543_v63 }
 0x1fb   :  { %v5796_v4 = vadd.f32 %v1578_v61, %v7310_v42  ;;  %v5799_v5 = vadd.f32 %v1579_v59, %v5559_v47  ;;  %v5802_v0 = vadd.f32 %v1580_v49, %v7311_v27  ;;  %v5805_v60 = vadd.f32 %v1581_v15, %v5567_v16 }
 0x1fc   :  { %v5808_v22 = vadd.f32 %v1582_v12, %v5569_v18  ;;  %v5811_v32 = vadd.f32 %v1583_v36, %v5579_v23  ;;  %v5814_v63 = vadd.f32 %v1584_v9, %v5593_v40  ;;  %v5817_v26 = vadd.f32 %v1585_v17, %v5607_v37 }
 0x1fd   :  { %v5820_v47 = vadd.f32 %v1586_v10, %v5621_v6  ;;  %v5823_v35 = vadd.f32 %v1587_v53, %v5632_v50  ;;  %v5826_v16 = vadd.f32 %v1588_v45, %v5634_v62  ;;  %v5829_v18 = vadd.f32 %v1589_v24, %v5641_v29 }
 0x1fe   :  { %v1622_v23 = vsub.f32 0.0, %v5726_v34  ;;  %v1623_v40 = vsub.f32 0.0, %v5731_v28  ;;  %v1624_v54 = vsub.f32 0.0, %v5736_v56  ;;  %v1625_v37 = vsub.f32 0.0, %v5741_v46 }
 0x1ff   :  { %v1626_v6 = vsub.f32 0.0, %v5746_v2  ;;  %v1627_v39 = vsub.f32 0.0, %v5751_v30  ;;  %v1628_v50 = vsub.f32 0.0, %v5754_v1  ;;  %v1629_v62 = vsub.f32 0.0, %v5757_v7 }
 0x200   :  { %v1630_v38 = vsub.f32 0.0, %v5760_v44  ;;  %v1631_v29 = vsub.f32 0.0, %v5763_v57  ;;  %v1632_v61 = vsub.f32 0.0, %v5766_v21  ;;  %v1633_v28 = vsub.f32 0.0, %v5769_v55  ;;  %v7332_v57 = vld [vmem:[#allocation123_spill] sm:$0xff]  ;;  %v7362_v55 = vld [vmem:[#allocation77_spill] sm:$0xff] }
 0x201   :  { %v1634_v59 = vsub.f32 0.0, %v5772_v58  ;;  %v1635_v46 = vsub.f32 0.0, %v5775_v51  ;;  %v1636_v49 = vsub.f32 0.0, %v5778_v41  ;;  %v1637_v15 = vsub.f32 0.0, %v5781_v14  ;;  %v7356_v14 = vld [vmem:[#allocation75_spill] sm:$0xff] }
 0x202   :  { %v1638_v12 = vsub.f32 0.0, %v5784_v52  ;;  %v1639_v36 = vsub.f32 0.0, %v5787_v43  ;;  %v1640_v9 = vsub.f32 0.0, %v5790_v48  ;;  %v1641_v17 = vsub.f32 0.0, %v5793_v19  ;;  %v7359_v52 = vld [vmem:[#allocation76_spill] sm:$0xff] }
 0x203   :  { %v1642_v10 = vsub.f32 0.0, %v5796_v4  ;;  %v1643_v53 = vsub.f32 0.0, %v5799_v5  ;;  %v1644_v45 = vsub.f32 0.0, %v5802_v0  ;;  %v1645_v24 = vsub.f32 0.0, %v5805_v60  ;;  %v7317_v0 = vld [vmem:[#allocation99_spill] sm:$0xff] }
 0x204   :  { %v1646_v34 = vsub.f32 0.0, %v5808_v22  ;;  %v1647_v56 = vsub.f32 0.0, %v5811_v32  ;;  %v1648_v2 = vsub.f32 0.0, %v5814_v63  ;;  %v1649_v25 = vsub.f32 0.0, %v5817_v26 }
 0x205   :  { %v1650_v30 = vsub.f32 0.0, %v5820_v47  ;;  %v1651_v1 = vsub.f32 0.0, %v5823_v35  ;;  %v1652_v7 = vsub.f32 0.0, %v5826_v16  ;;  %v1653_v20 = vsub.f32 0.0, %v5829_v18  ;;  %v7319_v47 = vld [vmem:[#allocation117_spill] sm:$0xff] }
 0x206   :  { %v1654_v44 = vmax.f32 %v1622_v23, -5.2983174  ;;  %v1655_v13 = vmax.f32 %v1623_v40, -5.2983174  ;;  %v1656_v21 = vmax.f32 %v1624_v54, -5.2983174 }
 0x207   :  { %v1657_v11 = vmax.f32 %v1625_v37, -5.2983174  ;;  %v1658_v51 = vmax.f32 %v1626_v6, -5.2983174  ;;  %v1659_v41 = vmax.f32 %v1627_v39, -5.2983174 }
 0x208   :  { %v1660_v33 = vmax.f32 %v1628_v50, -5.2983174  ;;  %v1661_v48 = vmax.f32 %v1629_v62, -5.2983174  ;;  %v1662_v19 = vmax.f32 %v1630_v38, -5.2983174 }
 0x209   :  { %v1663_v42 = vmax.f32 %v1631_v29, -5.2983174  ;;  %v1664_v4 = vmax.f32 %v1632_v61, -5.2983174  ;;  %v1665_v5 = vmax.f32 %v1633_v28, -5.2983174 }
 0x20a   :  { %v1666_v27 = vmax.f32 %v1634_v59, -5.2983174  ;;  %v7318_v60 = vsub.f32 1.0, %v7317_v0  ;;  %v1667_v32 = vmax.f32 %v1635_v46, -5.2983174  ;;  %v7320_v35 = vsub.f32 1.0, %v7319_v47 }
 0x20b   :  { %v1668_v63 = vmax.f32 %v1636_v49, -5.2983174  ;;  %v1669_v26 = vmax.f32 %v1637_v15, -5.2983174  ;;  %v1670_v18 = vmax.f32 %v1638_v12, -5.2983174 }
 0x20c   :  { %v1686_v22 = vmul.f32 %v1654_v44, %v7318_v60  ;;  %v1687_v16 = vmul.f32 %v1655_v13, %v7320_v35  ;;  %v1671_v23 = vmax.f32 %v1639_v36, -5.2983174  ;;  %v1672_v40 = vmax.f32 %v1640_v9, -5.2983174  ;;  %v7321_v54 = vld [vmem:[#allocation118_spill] sm:$0xff]  ;;  %v7323_v38 = vld [vmem:[#allocation119_spill] sm:$0xff] }
 0x20d   :  { %v7322_v37 = vsub.f32 1.0, %v7321_v54  ;;  %v1673_v39 = vmax.f32 %v1641_v17, -5.2983174  ;;  %v1674_v50 = vmax.f32 %v1642_v10, -5.2983174  ;;  %v7324_v29 = vsub.f32 1.0, %v7323_v38 }
 0x20e   :  { %v1675_v62 = vmax.f32 %v1643_v53, -5.2983174  ;;  %v1676_v28 = vmax.f32 %v1644_v45, -5.2983174  ;;  %v7325_v59 = vld [vmem:[#allocation38_spill] sm:$0xff]  ;;  %v7327_v15 = vsub.f32 0.0, %v5504_v8 }
 0x20f   :  { %v1688_v6 = vmul.f32 %v1656_v21, %v7322_v37  ;;  %v1689_v61 = vmul.f32 %v1657_v11, %v7324_v29  ;;  %v7326_v46 = vsub.f32 1.0, %v7325_v59  ;;  %v7328_v13 = vld [vmem:[#allocation73_spill] sm:$0xff]  ;;  %v1677_v9 = vmax.f32 %v1645_v24, -5.2983174 }
 0x210   :  { %v1718_v44 = vmax.f32 %v7327_v15, -5.2983174  ;;  %v7329_v12 = vsub.f32 0.0, %v7328_v13  ;;  %v1678_v60 = vmax.f32 %v1646_v34, -5.2983174  ;;  %v7330_v21 = vld [vmem:[#allocation121_spill] sm:$0xff] }
 0x211   :  { %v1690_v49 = vmul.f32 %v1658_v51, %v7326_v46  ;;  %v1679_v35 = vmax.f32 %v1647_v56, -5.2983174  ;;  %v7331_v17 = vsub.f32 1.0, %v7330_v21  ;;  %v1680_v53 = vmax.f32 %v1648_v2, -5.2983174  ;;  %v7334_v29 = vld [vmem:[#allocation133_spill] sm:$0xff] }
 0x212   :  { %v1719_v36 = vmax.f32 %v7329_v12, -5.2983174  ;;  %v1681_v37 = vmax.f32 %v1649_v25, -5.2983174  ;;  %v7333_v11 = vsub.f32 1.0, %v7332_v57  ;;  %v7335_v43 = vsub.f32 0.0, %v7334_v29 }
 0x213   :  { %v1691_v10 = vmul.f32 %v1659_v41, %v7331_v17  ;;  %v1682_v46 = vmax.f32 %v1650_v30, -5.2983174  ;;  %v1683_v8 = vmax.f32 %v1651_v1, -5.2983174  ;;  %v5888_v15 = vmax.f32 %v1652_v7, -5.2983174 }
 0x214   :  { %v1692_v45 = vmul.f32 %v1660_v33, %v7333_v11  ;;  %v1720_v51 = vmax.f32 %v7335_v43, -5.2983174  ;;  %v7337_v13 = vld [vmem:[#allocation41_spill] sm:$0xff]  ;;  %v5894_v34 = vmax.f32 %v1653_v20, -5.2983174  ;;  %v7340_v56 = vld [vmem:[#allocation135_spill] sm:$0xff]  ;;  %v1750_v25 = vmul.f32 %v1718_v44, %v7317_v0 }
 0x215   :  { %7336 = vst [vmem:[#allocation177_spill] sm:$0xff] %v5888_v15  ;;  %v7338_v12 = vsub.f32 1.0, %v7337_v13  ;;  %v7341_v41 = vsub.f32 0.0, %v7340_v56  ;;  %v1751_v33 = vmul.f32 %v1719_v36, %v7319_v47  ;;  %v7342_v17 = vld [vmem:[#allocation42_spill] sm:$0xff]  ;;  %v7344_v30 = vld [vmem:[#allocation43_spill] sm:$0xff]  ;;  %v7346_v29 = vld [vmem:[#allocation44_spill] sm:$0xff] }
 0x216   :  { %7339 = vst [vmem:[#allocation80_spill] sm:$0xff] %v5894_v34  ;;  %v7343_v11 = vsub.f32 1.0, %v7342_v17  ;;  %v7345_v1 = vsub.f32 1.0, %v7344_v30  ;;  %v7348_v20 = vld [vmem:[#allocation45_spill] sm:$0xff]  ;;  %v7352_v47 = vld [vmem:[#allocation74_spill] sm:$0xff] }
 0x217   :  { %v5892_v24 = vmul.f32 %v1661_v48, %v7338_v12  ;;  %v1721_v2 = vmax.f32 %v7341_v41, -5.2983174  ;;  %v7347_v48 = vsub.f32 1.0, %v7346_v29  ;;  %v7349_v58 = vsub.f32 1.0, %v7348_v20  ;;  %v7350_v41 = vld [vmem:[#allocation46_spill] sm:$0xff] }
 0x218   :  { %v5902_v43 = vmul.f32 %v1662_v19, %v7343_v11  ;;  %v5906_v7 = vmul.f32 %v1663_v42, %v7345_v1  ;;  %v7351_v0 = vsub.f32 1.0, %v7350_v41  ;;  %v7353_v36 = vsub.f32 1.0, %v7352_v47  ;;  %v7354_v11 = vld [vmem:[#allocation137_spill] sm:$0xff]  ;;  %v7367_v34 = vld [vmem:[#allocation78_spill] sm:$0xff] }
 0x219   :  { %v5910_v12 = vmul.f32 %v1664_v4, %v7347_v48  ;;  %v5914_v56 = vmul.f32 %v1665_v5, %v7349_v58  ;;  %v7355_v3 = vsub.f32 0.0, %v7354_v11  ;;  %v1752_v1 = vmul.f32 %v1720_v51, %v7321_v54 }
 0x21a   :  { %v5918_v44 = vmul.f32 %v1666_v27, %v7351_v0  ;;  %v5922_v19 = vmul.f32 %v1667_v32, %v7353_v36  ;;  %v7357_v4 = vsub.f32 1.0, %v7356_v14  ;;  %v7360_v58 = vsub.f32 1.0, %v7359_v52 }
 0x21b   :  { %v1722_v42 = vmax.f32 %v7355_v3, -5.2983174  ;;  %v7363_v27 = vsub.f32 1.0, %v7362_v55  ;;  %v7366_v32 = vsub.f32 0.0, %v7365_v31  ;;  %v7368_v11 = vsub.f32 1.0, %v7367_v34 }
 0x21c   :  { %v5929_v48 = vmul.f32 %v1668_v63, %v7357_v4  ;;  %v5933_v5 = vmul.f32 %v1669_v26, %v7360_v58  ;;  %v1753_v54 = vmul.f32 %v1721_v2, %v7323_v38  ;;  %v1782_v51 = vadd.f32 %v1750_v25, %v1686_v22  ;;  %v7370_v4 = vld [vmem:[#allocation143_spill] sm:$0xff]  ;;  %v7382_v22 = vld [vmem:[#allocation58_spill] sm:$0xff] }
 0x21d   :  { %v5937_v0 = vmul.f32 %v1670_v18, %v7363_v27  ;;  %v1723_v36 = vmax.f32 %v7366_v32, -5.2983174  ;;  %v5943_v3 = vmul.f32 %v1671_v23, %v7368_v11  ;;  %v1783_v63 = vadd.f32 %v1751_v33, %v1687_v16  ;;  %v7372_v26 = vld [vmem:[#allocation51_spill] sm:$0xff]  ;;  %v7377_v32 = vld [vmem:[#allocation141_spill] sm:$0xff]  ;;  %v7379_v11 = vld [vmem:[#allocation52_spill] sm:$0xff] }
 0x21e   :  { %7358 = vst [vmem:[#allocation48_spill] sm:$0xff] %v5929_v48  ;;  %v7371_v15 = vsub.f32 1.0, %v7370_v4  ;;  %v7373_v58 = vsub.f32 1.0, %v7372_v26  ;;  %v7374_v18 = vld [vmem:[#allocation55_spill] sm:$0xff]  ;;  %v7383_v16 = vsub.f32 1.0, %v7382_v22  ;;  %v1814_v22 = vsub.f32 0.0, %v1782_v51 }
 0x21f   :  { %7361 = vst [vmem:[#allocation140_spill] sm:$0xff] %v5933_v5  ;;  %v7375_v27 = vsub.f32 1.0, %v7374_v18 }
 0x220   :  { %7364 = vst [vmem:[#allocation122_spill] sm:$0xff] %v5937_v0  ;;  %v5948_v48 = vmul.f32 %v1672_v40, %v7371_v15  ;;  %v5952_v5 = vmul.f32 %v1673_v39, %v7373_v58  ;;  %v7378_v0 = vsub.f32 0.0, %v7377_v32  ;;  %v5966_v2 = vmul.f32 %v1676_v28, %v7383_v16  ;;  %v7385_v39 = vld [vmem:[#allocation60_spill] sm:$0xff]  ;;  %v7390_v32 = vld [vmem:[#allocation2_spill] sm:$0xff]  ;;  %v7393_v16 = vld [vmem:[#allocation3_spill] sm:$0xff] }
 0x221   :  { %7369 = vst [vmem:[#allocation125_spill] sm:$0xff] %v5943_v3  ;;  %v5956_v31 = vmul.f32 %v1674_v50, %v7375_v27  ;;  %v7380_v3 = vsub.f32 1.0, %v7379_v11  ;;  %v1754_v40 = vmul.f32 %v1722_v42, %v7325_v59  ;;  %v1784_v15 = vadd.f32 %v1752_v1, %v1688_v6  ;;  %v7388_v50 = vld [vmem:[#allocation145_spill] sm:$0xff]  ;;  %v7395_v59 = vld [vmem:[#allocation146_spill] sm:$0xff] }
 0x222   :  { %v1724_v23 = vmax.f32 %v7378_v0, -5.2983174  ;;  %7384 = vst [vmem:[#allocation170_spill] sm:$0xff] %v5966_v2  ;;  %v7386_v25 = vsub.f32 1.0, %v7385_v39  ;;  %v7389_v58 = vsub.f32 0.0, %v7388_v50  ;;  %v1755_v0 = vmul.f32 %v1723_v36, %v7330_v21  ;;  %v7396_v42 = vld [vmem:[#allocation62_spill] sm:$0xff] }
 0x223   :  { %7376 = vst [vmem:[#allocation65_spill] sm:$0xff] %v5956_v31  ;;  %v5962_v38 = vmul.f32 %v1675_v62, %v7380_v3  ;;  %v7391_v31 = vcvt.s32.f32 %v7390_v32  ;;  %v7392_v62 = vld [vmem:[#allocation142_spill] sm:$0xff]  ;;  %v1815_v28 = vsub.f32 0.0, %v1783_v63  ;;  %v7394_v2 = vcvt.s32.f32 %v7393_v16  ;;  %v7402_v21 = vld [vmem:[#allocation57_spill] sm:$0xff] }
 0x224   :  { %v5971_v33 = vmul.f32 %v1677_v9, %v7386_v25  ;;  %v1725_v27 = vmax.f32 %v7389_v58, -5.2983174  ;;  %v7397_v1 = vsub.f32 1.0, %v7396_v42  ;;  %v7399_v25 = vld [vmem:[#allocation64_spill] sm:$0xff]  ;;  %v7403_v36 = vsub.f32 0.0, %v7402_v21 }
 0x225   :  { %7381 = vst [vmem:[#allocation167_spill] sm:$0xff] %v5962_v38  ;;  %v1846_v3 = vmul.f32 %v7392_v62, %v7391_v31  ;;  %v1785_v38 = vadd.f32 %v1753_v54, %v1689_v61  ;;  %v1847_v6 = vmul.f32 %v7395_v59, %v7394_v2  ;;  %v7400_v50 = vsub.f32 1.0, %v7399_v25  ;;  %v7404_v61 = vld [vmem:[#allocation154_spill] sm:$0xff]  ;;  %v7407_v2 = vld [vmem:[#allocation4_spill] sm:$0xff]  ;;  %v7409_v59 = vld [vmem:[#allocation147_spill] sm:$0xff] }
 0x226   :  { %7387 = vst [vmem:[#allocation173_spill] sm:$0xff] %v5971_v33  ;;  %v5984_v9 = vmul.f32 %v1678_v60, %v7397_v1  ;;  %v1726_v32 = vmax.f32 %v7403_v36, -5.2983174  ;;  %v1756_v31 = vmul.f32 %v1724_v23, %v7332_v57  ;;  %v7405_v54 = vsub.f32 1.0, %v7404_v61  ;;  %v7410_v1 = vld [vmem:[#allocation163_spill] sm:$0xff] }
 0x227   :  { %v5988_v58 = vmul.f32 %v1679_v35, %v7400_v50  ;;  %v1786_v63 = vadd.f32 %v1754_v40, %v1690_v49  ;;  %v1816_v62 = vsub.f32 0.0, %v1784_v15  ;;  %v7408_v16 = vcvt.s32.f32 %v7407_v2  ;;  %v7413_v35 = vld [vmem:[#allocation59_spill] sm:$0xff]  ;;  %v7418_v2 = vld [vmem:[#allocation165_spill] sm:$0xff] }
 0x228   :  { %7398 = vst [vmem:[#allocation176_spill] sm:$0xff] %v5984_v9  ;;  %v5995_v51 = vmul.f32 %v1680_v53, %v7405_v54  ;;  %v7411_v9 = vsub.f32 1.0, %v7410_v1  ;;  %v7414_v50 = vsub.f32 0.0, %v7413_v35  ;;  %v1757_v36 = vmul.f32 %v1725_v27, %v7337_v13  ;;  %v7417_v54 = vld [vmem:[#allocation148_spill] sm:$0xff]  ;;  %v7426_v27 = vld [vmem:[#allocation6_spill] sm:$0xff] }
 0x229   :  { %7401 = vst [vmem:[#allocation82_spill] sm:$0xff] %v5988_v58  ;;  %v1848_v60 = vmul.f32 %v7409_v59, %v7408_v16  ;;  %v1787_v57 = vadd.f32 %v1755_v0, %v1691_v10  ;;  %v1817_v23 = vsub.f32 0.0, %v1785_v38  ;;  %v7415_v58 = vld [vmem:[#allocation5_spill] sm:$0xff]  ;;  %v1878_v40 = vmul.f32 %v1846_v3, %v1814_v22 }
 0x22a   :  { %7406 = vst [vmem:[#allocation83_spill] sm:$0xff] %v5995_v51  ;;  %v6002_v33 = vmul.f32 %v1681_v37, %v7411_v9  ;;  %v1727_v21 = vmax.f32 %v7414_v50, -5.2983174  ;;  %v7416_v53 = vcvt.s32.f32 %v7415_v58  ;;  %v1879_v15 = vmul.f32 %v1847_v6, %v1815_v28  ;;  %v7421_v59 = vld [vmem:[#allocation149_spill] sm:$0xff]  ;;  %v7428_v58 = vld [vmem:[#allocation168_spill] sm:$0xff] }
 0x22b   :  { %v7419_v51 = vsub.f32 1.0, %v7418_v2  ;;  %v7422_v37 = vsub.f32 0.0, %v7421_v59  ;;  %v1758_v35 = vmul.f32 %v1726_v32, %v7342_v17  ;;  %v1788_v50 = vadd.f32 %v1756_v31, %v1692_v45  ;;  %v7431_v17 = vld [vmem:[#allocation7_spill] sm:$0xff]  ;;  %v7433_v32 = vld [vmem:[#allocation169_spill] sm:$0xff] }
 0x22c   :  { %7412 = vst [vmem:[#allocation84_spill] sm:$0xff] %v6002_v33  ;;  %v1849_v49 = vmul.f32 %v7417_v54, %v7416_v53  ;;  %v7423_v33 = vld [vmem:[#allocation120_spill] sm:$0xff]  ;;  %v1818_v38 = vsub.f32 0.0, %v1786_v63  ;;  %v7427_v0 = vcvt.s32.f32 %v7426_v27  ;;  %v1880_v28 = vmul.f32 %v1848_v60, %v1816_v62  ;;  %v7429_v53 = vld [vmem:[#allocation63_spill] sm:$0xff] }
 0x22d   :  { %v6012_v16 = vmul.f32 %v1682_v46, %v7419_v51  ;;  %v1728_v9 = vmax.f32 %v7422_v37, -5.2983174  ;;  %v7424_v13 = vsub.f32 1.0, %v7423_v33  ;;  %v7430_v54 = vsub.f32 0.0, %v7429_v53  ;;  %v7436_v53 = vld [vmem:[#allocation8_spill] sm:$0xff] }
 0x22e   :  { %v1850_v22 = vmul.f32 %v7428_v58, %v7427_v0  ;;  %v1759_v51 = vmul.f32 %v1727_v21, %v7344_v30  ;;  %v1789_v59 = vadd.f32 %v1757_v36, %v5892_v24  ;;  %v1819_v37 = vsub.f32 0.0, %v1787_v57  ;;  %v7438_v21 = vld [vmem:[#allocation171_spill] sm:$0xff] }
 0x22f   :  { %7420 = vst [vmem:[#allocation144_spill] sm:$0xff] %v6012_v16  ;;  %v6019_v10 = vmul.f32 %v1683_v8, %v7424_v13  ;;  %v1729_v46 = vmax.f32 %v7430_v54, -5.2983174  ;;  %v7432_v45 = vcvt.s32.f32 %v7431_v17  ;;  %v1881_v8 = vmul.f32 %v1849_v49, %v1817_v23  ;;  %v7439_v17 = vld [vmem:[#allocation152_spill] sm:$0xff] }
 0x230   :  { %v1910_v13 = vadd.f32 %v1879_v15, %v1878_v40  ;;  %v1950_v63 = vadd.f32 %v1847_v6, %v1846_v3  ;;  %v1760_v62 = vmul.f32 %v1728_v9, %v7346_v29  ;;  %v1790_v0 = vadd.f32 %v1758_v35, %v5902_v43  ;;  %v7441_v15 = vld [vmem:[#allocation9_spill] sm:$0xff]  ;;  %v7443_v9 = vld [vmem:[#allocation172_spill] sm:$0xff] }
 0x231   :  { %7425 = vst [vmem:[#allocation85_spill] sm:$0xff] %v6019_v10  ;;  %v1851_v31 = vmul.f32 %v7433_v32, %v7432_v45  ;;  %v7434_v10 = vld [vmem:[#allocation151_spill] sm:$0xff]  ;;  %v1820_v58 = vsub.f32 0.0, %v1788_v50  ;;  %v7437_v30 = vcvt.s32.f32 %v7436_v53  ;;  %v1882_v36 = vmul.f32 %v1850_v22, %v1818_v38  ;;  %v7444_v32 = vld [vmem:[#allocation153_spill] sm:$0xff] }
 0x232   :  { %v7435_v27 = vsub.f32 0.0, %v7434_v10  ;;  %v1911_v57 = vadd.f32 %v1910_v13, %v1880_v28  ;;  %v1951_v54 = vadd.f32 %v1950_v63, %v1848_v60  ;;  %v7440_v45 = vsub.f32 0.0, %v7439_v17  ;;  %v7446_v63 = vld [vmem:[#allocation10_spill] sm:$0xff] }
 0x233   :  { %v1852_v24 = vmul.f32 %v7438_v21, %v7437_v30  ;;  %v1761_v3 = vmul.f32 %v1729_v46, %v7348_v20  ;;  %v1791_v6 = vadd.f32 %v1759_v51, %v5906_v7  ;;  %v1821_v40 = vsub.f32 0.0, %v1789_v59  ;;  %v7448_v46 = vld [vmem:[#allocation174_spill] sm:$0xff]  ;;  %v7449_v30 = vld [vmem:[#allocation155_spill] sm:$0xff] }
 0x234   :  { %v1730_v16 = vmax.f32 %v7435_v27, -5.2983174  ;;  %v1731_v23 = vmax.f32 %v7440_v45, -5.2983174  ;;  %v7442_v29 = vcvt.s32.f32 %v7441_v15  ;;  %v1883_v35 = vmul.f32 %v1851_v31, %v1819_v37  ;;  %v7454_v45 = vld [vmem:[#allocation156_spill] sm:$0xff] }
 0x235   :  { %v1912_v50 = vadd.f32 %v1911_v57, %v1881_v8  ;;  %v1952_v10 = vadd.f32 %v1951_v54, %v1849_v49  ;;  %v7445_v27 = vsub.f32 0.0, %v7444_v32  ;;  %v1792_v28 = vadd.f32 %v1760_v62, %v5910_v12  ;;  %v7451_v54 = vld [vmem:[#allocation11_spill] sm:$0xff] }
 0x236   :  { %v1853_v43 = vmul.f32 %v7443_v9, %v7442_v29  ;;  %v1762_v60 = vmul.f32 %v1730_v16, %v7350_v41  ;;  %v1822_v13 = vsub.f32 0.0, %v1790_v0  ;;  %v7447_v20 = vcvt.s32.f32 %v7446_v63  ;;  %v7453_v16 = vld [vmem:[#allocation101_spill] sm:$0xff]  ;;  %v7456_v9 = vld [vmem:[#allocation12_spill] sm:$0xff] }
 0x237   :  { %v1732_v38 = vmax.f32 %v7445_v27, -5.2983174  ;;  %v1884_v51 = vmul.f32 %v1852_v24, %v1820_v58  ;;  %v1913_v59 = vadd.f32 %v1912_v50, %v1882_v36  ;;  %v1953_v53 = vadd.f32 %v1952_v10, %v1850_v22  ;;  %v7459_v10 = vld [vmem:[#allocation158_spill] sm:$0xff]  ;;  %v7461_v63 = vld [vmem:[#allocation13_spill] sm:$0xff] }
 0x238   :  { %v1854_v7 = vmul.f32 %v7448_v46, %v7447_v20  ;;  %v7450_v21 = vsub.f32 0.0, %v7449_v30  ;;  %v1763_v49 = vmul.f32 %v1731_v23, %v7352_v47  ;;  %v1793_v8 = vadd.f32 %v1761_v3, %v5914_v56  ;;  %v7458_v23 = vld [vmem:[#allocation102_spill] sm:$0xff]  ;;  %v7464_v46 = vld [vmem:[#allocation159_spill] sm:$0xff] }
 0x239   :  { %v1823_v57 = vsub.f32 0.0, %v1791_v6  ;;  %v7452_v41 = vcvt.s32.f32 %v7451_v54  ;;  %v1885_v62 = vmul.f32 %v1853_v43, %v1821_v40  ;;  %v1914_v0 = vadd.f32 %v1913_v59, %v1883_v35 }
 0x23a   :  { %v1733_v37 = vmax.f32 %v7450_v21, -5.2983174  ;;  %v1954_v17 = vadd.f32 %v1953_v53, %v1851_v31  ;;  %v7455_v15 = vsub.f32 0.0, %v7454_v45  ;;  %v1764_v22 = vmul.f32 %v1732_v38, %v7356_v14  ;;  %v7463_v38 = vld [vmem:[#allocation103_spill] sm:$0xff]  ;;  %v7467_v21 = vld [vmem:[#allocation14_spill] sm:$0xff] }
 0x23b   :  { %v1855_v12 = vmul.f32 %v7453_v16, %v7452_v41  ;;  %v1794_v36 = vadd.f32 %v1762_v60, %v5918_v44  ;;  %v1824_v29 = vsub.f32 0.0, %v1792_v28  ;;  %v7457_v47 = vcvt.s32.f32 %v7456_v9  ;;  %v7470_v41 = vld [vmem:[#allocation161_spill] sm:$0xff]  ;;  %v7473_v45 = vld [vmem:[#allocation15_spill] sm:$0xff] }
 0x23c   :  { %v1734_v58 = vmax.f32 %v7455_v15, -5.2983174  ;;  %v1886_v3 = vmul.f32 %v1854_v7, %v1822_v13  ;;  %v1915_v6 = vadd.f32 %v1914_v0, %v1884_v51  ;;  %v1955_v50 = vadd.f32 %v1954_v17, %v1852_v24  ;;  %v7466_v51 = vld [vmem:[#allocation48_spill] sm:$0xff]  ;;  %v7475_v15 = vld [vmem:[#allocation105_spill] sm:$0xff] }
 0x23d   :  { %v1856_v56 = vmul.f32 %v7458_v23, %v7457_v47  ;;  %v7460_v32 = vsub.f32 0.0, %v7459_v10  ;;  %v1765_v31 = vmul.f32 %v1733_v37, %v7359_v52  ;;  %v1795_v35 = vadd.f32 %v1763_v49, %v5922_v19  ;;  %v7469_v37 = vld [vmem:[#allocation104_spill] sm:$0xff]  ;;  %v7476_v47 = vld [vmem:[#allocation162_spill] sm:$0xff] }
 0x23e   :  { %v1825_v27 = vsub.f32 0.0, %v1793_v8  ;;  %v7462_v14 = vcvt.s32.f32 %v7461_v63  ;;  %v1887_v60 = vmul.f32 %v1855_v12, %v1823_v57  ;;  %v1916_v28 = vadd.f32 %v1915_v6, %v1885_v62  ;;  %v7472_v62 = vld [vmem:[#allocation140_spill] sm:$0xff] }
 0x23f   :  { %v1735_v40 = vmax.f32 %v7460_v32, -5.2983174  ;;  %v1956_v20 = vadd.f32 %v1955_v50, %v1853_v43  ;;  %v7465_v59 = vsub.f32 0.0, %v7464_v46  ;;  %v1766_v24 = vmul.f32 %v1734_v58, %v7362_v55  ;;  %v7479_v10 = vld [vmem:[#allocation16_spill] sm:$0xff]  ;;  %v7481_v32 = vld [vmem:[#allocation106_spill] sm:$0xff]  ;;  %v7485_v46 = vld [vmem:[#allocation17_spill] sm:$0xff] }
 0x240   :  { %v1857_v44 = vmul.f32 %v7463_v38, %v7462_v14  ;;  %v1796_v53 = vadd.f32 %v1764_v22, %v7466_v51  ;;  %v1826_v30 = vsub.f32 0.0, %v1794_v36  ;;  %v7468_v52 = vcvt.s32.f32 %v7467_v21  ;;  %v7482_v14 = vld [vmem:[#allocation88_spill] sm:$0xff]  ;;  %v7488_v21 = vld [vmem:[#allocation89_spill] sm:$0xff] }
 0x241   :  { %v1736_v13 = vmax.f32 %v7465_v59, -5.2983174  ;;  %v1888_v49 = vmul.f32 %v1856_v56, %v1824_v29  ;;  %v1917_v8 = vadd.f32 %v1916_v28, %v1886_v3  ;;  %v1957_v54 = vadd.f32 %v1956_v20, %v1854_v7  ;;  %v7478_v3 = vld [vmem:[#allocation122_spill] sm:$0xff]  ;;  %v7487_v59 = vld [vmem:[#allocation107_spill] sm:$0xff] }
 0x242   :  { %v1858_v19 = vmul.f32 %v7469_v37, %v7468_v52  ;;  %v7471_v16 = vsub.f32 0.0, %v7470_v41  ;;  %v1767_v43 = vmul.f32 %v1735_v40, %v7367_v34  ;;  %v1797_v0 = vadd.f32 %v1765_v31, %v7472_v62  ;;  %v7493_v62 = vld [vmem:[#allocation90_spill] sm:$0xff] }
 0x243   :  { %v1827_v17 = vsub.f32 0.0, %v1795_v35  ;;  %v7474_v55 = vcvt.s32.f32 %v7473_v45  ;;  %v1889_v22 = vmul.f32 %v1857_v44, %v1825_v27  ;;  %v1918_v36 = vadd.f32 %v1917_v8, %v1887_v60  ;;  %v7484_v60 = vld [vmem:[#allocation125_spill] sm:$0xff]  ;;  %v7490_v8 = vld [vmem:[#allocation18_spill] sm:$0xff] }
 0x244   :  { %v1737_v57 = vmax.f32 %v7471_v16, -5.2983174  ;;  %v1958_v9 = vadd.f32 %v1957_v54, %v1855_v12  ;;  %v7477_v23 = vsub.f32 0.0, %v7476_v47  ;;  %v1768_v7 = vmul.f32 %v1736_v13, %v7370_v4  ;;  %v7492_v54 = vld [vmem:[#allocation108_spill] sm:$0xff] }
 0x245   :  { %v1859_v58 = vmul.f32 %v7475_v15, %v7474_v55  ;;  %v1798_v6 = vadd.f32 %v1766_v24, %v7478_v3  ;;  %v1828_v50 = vsub.f32 0.0, %v1796_v53  ;;  %v7480_v34 = vcvt.s32.f32 %v7479_v10  ;;  %v7495_v15 = vld [vmem:[#allocation19_spill] sm:$0xff]  ;;  %v7500_v3 = vld [vmem:[#allocation58_spill] sm:$0xff] }
 0x246   :  { %v1738_v29 = vmax.f32 %v7477_v23, -5.2983174  ;;  %v1890_v31 = vmul.f32 %v1858_v19, %v1826_v30  ;;  %v1919_v35 = vadd.f32 %v1918_v36, %v1888_v49  ;;  %v1959_v63 = vadd.f32 %v1958_v9, %v1856_v56  ;;  %v7498_v23 = vld [vmem:[#allocation53_spill] sm:$0xff] }
 0x247   :  { %v1860_v40 = vmul.f32 %v7481_v32, %v7480_v34  ;;  %v7483_v38 = vsub.f32 0.0, %v7482_v14  ;;  %v1769_v12 = vmul.f32 %v1737_v57, %v7372_v26  ;;  %v1799_v28 = vadd.f32 %v1767_v43, %v7484_v60  ;;  %v7502_v34 = vld [vmem:[#allocation20_spill] sm:$0xff]  ;;  %v7504_v32 = vld [vmem:[#allocation110_spill] sm:$0xff]  ;;  %v7505_v14 = vld [vmem:[#allocation91_spill] sm:$0xff] }
 0x248   :  { %v1829_v20 = vsub.f32 0.0, %v1797_v0  ;;  %v7486_v4 = vcvt.s32.f32 %v7485_v46  ;;  %v1891_v24 = vmul.f32 %v1859_v58, %v1827_v17  ;;  %v1920_v51 = vadd.f32 %v1919_v35, %v1889_v22  ;;  %v7497_v22 = vld [vmem:[#allocation109_spill] sm:$0xff] }
 0x249   :  { %v1739_v27 = vmax.f32 %v7483_v38, -5.2983174  ;;  %v1960_v53 = vadd.f32 %v1959_v63, %v1857_v44  ;;  %v7489_v52 = vsub.f32 0.0, %v7488_v21  ;;  %v1770_v56 = vmul.f32 %v1738_v29, %v7374_v18  ;;  %v7511_v21 = vld [vmem:[#allocation94_spill] sm:$0xff] }
 0x24a   :  { %v1861_v13 = vmul.f32 %v7487_v59, %v7486_v4  ;;  %v1800_v37 = vadd.f32 %v1768_v7, %v5948_v48  ;;  %v1830_v49 = vsub.f32 0.0, %v1798_v6  ;;  %v7491_v26 = vcvt.s32.f32 %v7490_v8  ;;  %v7501_v6 = vld [vmem:[#allocation65_spill] sm:$0xff]  ;;  %v7510_v4 = vld [vmem:[#allocation111_spill] sm:$0xff]  ;;  %v7514_v8 = vld [vmem:[#allocation22_spill] sm:$0xff] }
 0x24b   :  { %v1740_v30 = vmax.f32 %v7489_v52, -5.2983174  ;;  %v1892_v16 = vmul.f32 %v1860_v40, %v1828_v50  ;;  %v1921_v57 = vadd.f32 %v1920_v51, %v1890_v31  ;;  %v1961_v43 = vadd.f32 %v1960_v53, %v1858_v19 }
 0x24c   :  { %v1862_v41 = vmul.f32 %v7492_v54, %v7491_v26  ;;  %v7494_v0 = vsub.f32 0.0, %v7493_v62  ;;  %v1771_v44 = vmul.f32 %v1739_v27, %v7379_v11  ;;  %v1801_v45 = vadd.f32 %v1769_v12, %v5952_v5  ;;  %v7507_v12 = vld [vmem:[#allocation167_spill] sm:$0xff]  ;;  %v7516_v26 = vld [vmem:[#allocation112_spill] sm:$0xff]  ;;  %v7517_v62 = vld [vmem:[#allocation97_spill] sm:$0xff] }
 0x24d   :  { %v1831_v55 = vsub.f32 0.0, %v1799_v28  ;;  %v7496_v18 = vcvt.s32.f32 %v7495_v15  ;;  %v1893_v36 = vmul.f32 %v1861_v13, %v1829_v20  ;;  %v1922_v9 = vadd.f32 %v1921_v57, %v1891_v24  ;;  %v7508_v20 = vld [vmem:[#allocation21_spill] sm:$0xff]  ;;  %v7520_v15 = vld [vmem:[#allocation23_spill] sm:$0xff] }
 0x24e   :  { %v1741_v17 = vmax.f32 %v7494_v0, -5.2983174  ;;  %v1962_v47 = vadd.f32 %v1961_v43, %v1859_v58  ;;  %v7499_v29 = vsub.f32 0.0, %v7498_v23  ;;  %v1772_v19 = vmul.f32 %v1740_v30, %v7500_v3  ;;  %v7523_v23 = vld [vmem:[#allocation56_spill] sm:$0xff] }
 0x24f   :  { %v1863_v48 = vmul.f32 %v7497_v22, %v7496_v18  ;;  %v1802_v50 = vadd.f32 %v1770_v56, %v7501_v6  ;;  %v1832_v10 = vsub.f32 0.0, %v1800_v37  ;;  %v7503_v11 = vcvt.s32.f32 %v7502_v34  ;;  %v7513_v56 = vld [vmem:[#allocation170_spill] sm:$0xff]  ;;  %v7522_v18 = vld [vmem:[#allocation113_spill] sm:$0xff]  ;;  %v7525_v3 = vld [vmem:[#allocation176_spill] sm:$0xff] }
 0x250   :  { %v1742_v7 = vmax.f32 %v7499_v29, -5.2983174  ;;  %v1894_v31 = vmul.f32 %v1862_v41, %v1830_v49  ;;  %v1923_v35 = vadd.f32 %v1922_v9, %v1892_v16  ;;  %v1963_v63 = vadd.f32 %v1962_v47, %v1860_v40 }
 0x251   :  { %v1864_v5 = vmul.f32 %v7504_v32, %v7503_v11  ;;  %v7506_v38 = vsub.f32 0.0, %v7505_v14  ;;  %v1773_v58 = vmul.f32 %v1741_v17, %v7385_v39  ;;  %v1803_v60 = vadd.f32 %v1771_v44, %v7507_v12  ;;  %v7519_v44 = vld [vmem:[#allocation173_spill] sm:$0xff] }
 0x252   :  { %v1833_v28 = vsub.f32 0.0, %v1801_v45  ;;  %v7509_v46 = vcvt.s32.f32 %v7508_v20  ;;  %v1895_v24 = vmul.f32 %v1863_v48, %v1831_v55  ;;  %v1924_v51 = vadd.f32 %v1923_v35, %v1893_v36  ;;  %v7529_v35 = vld [vmem:[#allocation124_spill] sm:$0xff]  ;;  %v7532_v12 = vld [vmem:[#allocation25_spill] sm:$0xff] }
 0x253   :  { %v1743_v27 = vmax.f32 %v7506_v38, -5.2983174  ;;  %v1964_v53 = vadd.f32 %v1963_v63, %v1861_v13  ;;  %v7512_v52 = vsub.f32 0.0, %v7511_v21  ;;  %v1774_v40 = vmul.f32 %v1742_v7, %v7396_v42  ;;  %v7531_v38 = vld [vmem:[#allocation82_spill] sm:$0xff]  ;;  %v7537_v21 = vld [vmem:[#allocation83_spill] sm:$0xff] }
 0x254   :  { %v1865_v59 = vmul.f32 %v7510_v4, %v7509_v46  ;;  %v1804_v37 = vadd.f32 %v1772_v19, %v7513_v56  ;;  %v1834_v49 = vsub.f32 0.0, %v1802_v50  ;;  %v7515_v39 = vcvt.s32.f32 %v7514_v8  ;;  %v7526_v50 = vld [vmem:[#allocation24_spill] sm:$0xff] }
 0x255   :  { %v1744_v30 = vmax.f32 %v7512_v52, -5.2983174  ;;  %v1896_v16 = vmul.f32 %v1864_v5, %v1832_v10  ;;  %v1925_v57 = vadd.f32 %v1924_v51, %v1894_v31  ;;  %v1965_v43 = vadd.f32 %v1964_v53, %v1862_v41  ;;  %v7528_v10 = vld [vmem:[#allocation114_spill] sm:$0xff]  ;;  %v7540_v56 = vld [vmem:[#allocation116_spill] sm:$0xff] }
 0x256   :  { %v1866_v54 = vmul.f32 %v7516_v26, %v7515_v39  ;;  %v7518_v0 = vsub.f32 0.0, %v7517_v62  ;;  %v1775_v13 = vmul.f32 %v1743_v27, %v7399_v25  ;;  %v1805_v45 = vadd.f32 %v1773_v58, %v7519_v44  ;;  %v7541_v26 = vld [vmem:[#allocation39_spill] sm:$0xff] }
 0x257   :  { %v1835_v55 = vsub.f32 0.0, %v1803_v60  ;;  %v7521_v42 = vcvt.s32.f32 %v7520_v15  ;;  %v1897_v36 = vmul.f32 %v1865_v59, %v1833_v28  ;;  %v1926_v9 = vadd.f32 %v1925_v57, %v1895_v24  ;;  %v7534_v60 = vld [vmem:[#allocation115_spill] sm:$0xff] }
 0x258   :  { %v1745_v17 = vmax.f32 %v7518_v0, -5.2983174  ;;  %v1966_v47 = vadd.f32 %v1965_v43, %v1863_v48  ;;  %v7524_v29 = vsub.f32 0.0, %v7523_v23  ;;  %v1776_v41 = vmul.f32 %v1744_v30, %v7404_v61  ;;  %v7535_v24 = vld [vmem:[#allocation175_spill] sm:$0xff]  ;;  %v7543_v43 = vld [vmem:[#allocation84_spill] sm:$0xff] }
 0x259   :  { %v1867_v22 = vmul.f32 %v7522_v18, %v7521_v42  ;;  %v1806_v19 = vadd.f32 %v1774_v40, %v7525_v3  ;;  %v1836_v6 = vsub.f32 0.0, %v1804_v37  ;;  %v7527_v25 = vcvt.s32.f32 %v7526_v50  ;;  %v7538_v40 = vld [vmem:[#allocation26_spill] sm:$0xff]  ;;  %v7547_v42 = vld [vmem:[#allocation136_spill] sm:$0xff] }
 0x25a   :  { %v1746_v7 = vmax.f32 %v7524_v29, -5.2983174  ;;  %v1898_v11 = vmul.f32 %v1866_v54, %v1834_v49  ;;  %v1927_v32 = vadd.f32 %v1926_v9, %v1896_v16  ;;  %v1967_v31 = vadd.f32 %v1966_v47, %v1864_v5  ;;  %v7550_v47 = vld [vmem:[#allocation144_spill] sm:$0xff] }
 0x25b   :  { %v1868_v34 = vmul.f32 %v7528_v10, %v7527_v25  ;;  %v7530_v63 = vsub.f32 0.0, %v7529_v35  ;;  %v1777_v48 = vmul.f32 %v1745_v17, %v7410_v1  ;;  %v1807_v27 = vadd.f32 %v1775_v13, %v7531_v38  ;;  %v7544_v17 = vld [vmem:[#allocation27_spill] sm:$0xff]  ;;  %v7546_v13 = vld [vmem:[#allocation92_spill] sm:$0xff]  ;;  %v7554_v25 = vld [vmem:[#allocation138_spill] sm:$0xff] }
 0x25c   :  { %v1837_v58 = vsub.f32 0.0, %v1805_v45  ;;  %v7533_v61 = vcvt.s32.f32 %v7532_v12  ;;  %v1899_v20 = vmul.f32 %v1867_v22, %v1835_v55  ;;  %v1928_v46 = vadd.f32 %v1927_v32, %v1897_v36  ;;  %v7549_v36 = vld [vmem:[#allocation177_spill] sm:$0xff] }
 0x25d   :  { %v1747_v14 = vmax.f32 %v7530_v63, -5.2983174  ;;  %v1968_v4 = vadd.f32 %v1967_v31, %v1865_v59  ;;  %v7536_v51 = vsub.f32 0.0, %v7535_v24  ;;  %v1778_v5 = vmul.f32 %v1746_v7, %v7418_v2  ;;  %v7557_v31 = vld [vmem:[#allocation85_spill] sm:$0xff] }
 0x25e   :  { %v1869_v28 = vmul.f32 %v7534_v60, %v7533_v61  ;;  %v1808_v52 = vadd.f32 %v1776_v41, %v7537_v21  ;;  %v1838_v30 = vsub.f32 0.0, %v1806_v19  ;;  %v7539_v1 = vcvt.s32.f32 %v7538_v40  ;;  %v7553_v41 = vld [vmem:[#allocation34_spill] sm:$0xff]  ;;  %v7560_v38 = vld [vmem:[#allocation93_spill] sm:$0xff]  ;;  %v7561_v60 = vld [vmem:[#allocation32_spill] sm:$0xff] }
 0x25f   :  { %v1748_v53 = vmax.f32 %v7536_v51, -5.2983174  ;;  %v1900_v49 = vmul.f32 %v1868_v34, %v1836_v6  ;;  %v1929_v8 = vadd.f32 %v1928_v46, %v1898_v11  ;;  %v1969_v39 = vadd.f32 %v1968_v4, %v1866_v54  ;;  %v7556_v11 = vld [vmem:[#allocation80_spill] sm:$0xff] }
 0x260   :  { %v1870_v37 = vmul.f32 %v7540_v56, %v7539_v1  ;;  %v7542_v16 = vsub.f32 0.0, %v7541_v26  ;;  %v1779_v59 = vmul.f32 %v1747_v14, %v7423_v33  ;;  %v1809_v62 = vadd.f32 %v1777_v48, %v7543_v43  ;;  %v7551_v33 = vld [vmem:[#allocation28_spill] sm:$0xff]  ;;  %v7558_v14 = vld [vmem:[#allocation29_spill] sm:$0xff]  ;;  %v7570_v26 = vld [vmem:[#allocation131_spill] sm:$0xff] }
 0x261   :  { %v1839_v0 = vsub.f32 0.0, %v1807_v27  ;;  %v7545_v2 = vcvt.s32.f32 %v7544_v17  ;;  %v1901_v45 = vmul.f32 %v1869_v28, %v1837_v58  ;;  %v1930_v55 = vadd.f32 %v1929_v8, %v1899_v20  ;;  %v7562_v46 = vld [vmem:[#allocation132_spill] sm:$0xff]  ;;  %v7572_v43 = vld [vmem:[#allocation31_spill] sm:$0xff] }
 0x262   :  { %v1749_v57 = vmax.f32 %v7542_v16, -5.2983174  ;;  %v1970_v15 = vadd.f32 %v1969_v39, %v1867_v22  ;;  %v7548_v18 = vsub.f32 1.0, %v7547_v42  ;;  %v1780_v54 = vmul.f32 %v1748_v53, %v7547_v42  ;;  %v7569_v39 = vld [vmem:[#allocation134_spill] sm:$0xff] }
 0x263   :  { %v1871_v44 = vmul.f32 %v7546_v13, %v7545_v2  ;;  %v1810_v23 = vadd.f32 %v1778_v5, %v7550_v47  ;;  %v1840_v29 = vsub.f32 0.0, %v1808_v52  ;;  %v7552_v7 = vcvt.s32.f32 %v7551_v33  ;;  %v7565_v5 = vld [vmem:[#allocation30_spill] sm:$0xff]  ;;  %v7567_v52 = vld [vmem:[#allocation96_spill] sm:$0xff] }
 0x264   :  { %v1716_v9 = vmul.f32 %v7549_v36, %v7548_v18  ;;  %v1902_v19 = vmul.f32 %v1870_v37, %v1838_v30  ;;  %v1931_v6 = vadd.f32 %v1930_v55, %v1900_v49  ;;  %v1971_v50 = vadd.f32 %v1970_v15, %v1868_v34  ;;  %v7563_v34 = vld [vmem:[#allocation128_spill] sm:$0xff]  ;;  %v7568_v49 = vld [vmem:[#allocation33_spill] sm:$0xff] }
 0x265   :  { %v1872_v3 = vmul.f32 %v7553_v41, %v7552_v7  ;;  %v7555_v10 = vsub.f32 1.0, %v7554_v25  ;;  %v1781_v32 = vmul.f32 %v1749_v57, %v7554_v25  ;;  %v1811_v35 = vadd.f32 %v1779_v59, %v7557_v31 }
 0x266   :  { %v1841_v63 = vsub.f32 0.0, %v1809_v62  ;;  %v7559_v48 = vcvt.s32.f32 %v7558_v14  ;;  %v1903_v58 = vmul.f32 %v1871_v44, %v1839_v0  ;;  %v1932_v12 = vadd.f32 %v1931_v6, %v1901_v45  ;;  %v7574_v0 = vld [vmem:[#allocation35_spill] sm:$0xff] }
 0x267   :  { %v1717_v22 = vmul.f32 %v7556_v11, %v7555_v10  ;;  %v1972_v61 = vadd.f32 %v1971_v50, %v1869_v28  ;;  %v180_v20 = vcvt.s32.f32 %v7561_v60  ;;  %v7564_v4 = vsub.f32 %v7562_v46, %v7563_v34 }
 0x268   :  { %v1873_v27 = vmul.f32 %v7560_v38, %v7559_v48  ;;  %v1812_v51 = vadd.f32 %v1780_v54, %v1716_v9  ;;  %v1842_v53 = vsub.f32 0.0, %v1810_v23  ;;  %v7566_v21 = vcvt.s32.f32 %v7565_v5 }
 0x269   :  { %v1012_v24 = vmax.f32 %v7564_v4, 0.0  ;;  %v1904_v40 = vmul.f32 %v1872_v3, %v1840_v29  ;;  %v1933_v1 = vadd.f32 %v1932_v12, %v1902_v19  ;;  %v1973_v56 = vadd.f32 %v1972_v61, %v1870_v37 }
 0x26a   :  { %v1874_v30 = vmul.f32 %v7567_v52, %v7566_v21  ;;  %v181_v8 = vcvt.s32.f32 %v7568_v49  ;;  %v7571_v28 = vsub.f32 %v7569_v39, %v7570_v26  ;;  %v1813_v57 = vadd.f32 %v1781_v32, %v1717_v22 }
 0x26b   :  { %v1843_v59 = vsub.f32 0.0, %v1811_v35  ;;  %v7573_v62 = vcvt.s32.f32 %v7572_v43  ;;  %v1905_v2 = vmul.f32 %v1873_v27, %v1841_v63  ;;  %v1934_v13 = vadd.f32 %v1933_v1, %v1903_v58 }
 0x26c   :  { %v1013_v16 = vmax.f32 %v7571_v28, 0.0  ;;  %v1974_v45 = vadd.f32 %v1973_v56, %v1871_v44  ;;  %v1844_v55 = vsub.f32 0.0, %v1812_v51  ;;  %v1876_v15 = vmul.f32 %v1012_v24, %v180_v20 }
 0x26d   :  { %v1875_v17 = vmul.f32 %v7574_v0, %v7573_v62  ;;  %v1906_v42 = vmul.f32 %v1874_v30, %v1842_v53  ;;  %v1935_v18 = vadd.f32 %v1934_v13, %v1904_v40  ;;  %v1845_v36 = vsub.f32 0.0, %v1813_v57 }
 0x26e   :  { %v1975_v37 = vadd.f32 %v1974_v45, %v1872_v3  ;;  %v1877_v9 = vmul.f32 %v1013_v16, %v181_v8  ;;  %v1908_v29 = vmul.f32 %v1876_v15, %v1844_v55  ;;  %v1990_v60 = vlaneseq }
 0x26f   :  { %v1907_v54 = vmul.f32 %v1875_v17, %v1843_v59  ;;  %v1936_v47 = vadd.f32 %v1935_v18, %v1905_v2 }
 0x270   :  { %v1976_v23 = vadd.f32 %v1975_v37, %v1873_v27  ;;  %v1909_v41 = vmul.f32 %v1877_v9, %v1845_v36  ;;  %v1991_v20 = vand.u32 127, %v1990_v60 }
 0x271   :  { %v1937_v33 = vadd.f32 %v1936_v47, %v1906_v42 }
 0x272   :  { %v1977_v7 = vadd.f32 %v1976_v23, %v1874_v30  ;;  %vm1993_vm0 = vcmp.eq.s32.totalorder %v1991_v20, 1  ;;  %vm1992_vm1 = vcmp.eq.s32.totalorder %v1991_v20, 0 }
 0x273   :  { %v1938_v19 = vadd.f32 %v1937_v33, %v1907_v54 }
 0x274   :  { %v1978_v50 = vadd.f32 %v1977_v7, %v1875_v17 }
 0x275   :  { %v1939_v6 = vadd.f32 %v1938_v19, %v1908_v29 }
 0x276   :  { %v1979_v44 = vadd.f32 %v1978_v50, %v1876_v15 }
 0x277   :  { %v1940_v25 = vadd.f32 %v1939_v6, %v1909_v41 }
 0x278   :  { %v1980_v10 = vadd.f32 %v1979_v44, %v1877_v9 }
 0x279   :  { %1941 = vadd.xlane.f32.xlu0 %v1940_v25 }
 0x281   :  { %1981 = vadd.xlane.f32.xlu0 %v1980_v10 }
 0x2ec   :  { %v1942_v11 = vpop.xlane.xlu0 %1941 }
 0x2ed   :  { %v1943_v22 = vrot.slane %v1942_v11, 4 }
 0x2ef   :  { %v1944_v3 = vadd.f32 %v1943_v22, %v1942_v11 }
 0x2f1   :  { %v1945_v32 = vrot.slane %v1944_v3, 2 }
 0x2f3   :  { %v1946_v31 = vadd.f32 %v1945_v32, %v1944_v3 }
 0x2f4   :  { %v1982_v35 = vpop.xlane.xlu0 %1981 }
 0x2f5   :  { %v1947_v63 = vrot.slane %v1946_v31, 1  ;;  %v1983_v14 = vrot.slane %v1982_v35, 4 }
 0x2f7   :  { %v1948_v48 = vadd.f32 %v1947_v63, %v1946_v31  ;;  %v1984_v38 = vadd.f32 %v1983_v14, %v1982_v35 }
 0x2f9   :  { %2003 = vpush %v1948_v48  ;;  %v1985_v27 = vrot.slane %v1984_v38, 2 }
 0x2fb   :  { %v1986_v58 = vadd.f32 %v1985_v27, %v1984_v38 }
 0x2fd   :  { %v1987_v12 = vrot.slane %v1986_v58, 1 }
 0x2ff   :  { %v1988_v61 = vadd.f32 %v1987_v12, %v1986_v58 }
 0x301   :  { %2005 = vpush %v1988_v61 }
 0x32a   :  { %s2004_s1 = spop %2003 }
 0x32b   :  { %v1996_v4 = vstv %s2004_s1 }
 0x332   :  { %s2006_s29 = spop %2005 }
 0x333   :  { %v1994_v46 = vstv %s2006_s29 }
 0x334   :  { %v1995_v34 = vsel %vm1993_vm0, %v1994_v46, 0.0 }
 0x335   :  { %v1997_v24 = vsel %vm1992_vm1, %v1996_v4, %v1995_v34 }
 0x336   :  { %1998 = vst [vmem:[%s6207_s3] sm:$0x1] %v1997_v24 }

</bundles_post_ra>
